<compile_context>
chip_gen: v6e
topology: v6e:2x2x1
jax: 0.10.0
libtpu: 0.0.40
codegen_flags: <defaults>
</compile_context>

<pallas_src>
import functools
import numpy as np
import jax
import jax.numpy as jnp
from jax.experimental import pallas as pl
from jax.experimental.pallas import tpu as pltpu


# ----------------------------------------------------------------------------- kernel
def _rpn_fused_kernel(cols_ref, w3_ref, b3_ref, w1_ref, b1_ref, out_ref):
    """One row-tile of the fused RPN.

    cols_ref : (tm, 9*Cin)   bf16  im2col rows (tap-major, cin-minor)
    w3_ref   : (9*Cin, Cmid) bf16  3x3 conv weights, rows = tap*Cin + cin
    b3_ref   : (1, Cmid)     f32
    w1_ref   : (Cmid, Npad)  bf16  [score_w | coord_w | zero pad] -> lane-dense columns
    b1_ref   : (1, Npad)     f32
    out_ref  : (tm, Npad)    f32   lane-dense fused [score | coords] output rows
    """
    # 3x3 conv as a single fat-K matmul (K = 9*Cin), f32 accumulation on the MXU.
    feat = jnp.dot(cols_ref[...], w3_ref[...],
                   preferred_element_type=jnp.float32) + b3_ref[...]
    # fused 1x1 convs (score + coords share one matmul); rpn_feat never leaves VMEM.
    out_ref[...] = jnp.dot(feat.astype(jnp.bfloat16), w1_ref[...],
                           preferred_element_type=jnp.float32) + b1_ref[...]


def _pick_row_tile(total_m, k9, n_pad):
    """Largest convenient row tile that divides M, keeps VMEM modest and gives >=2 steps."""
    # double-buffered bf16 cols block + f32 out block per row, keep well under ~8 MiB
    per_row = 2 * (k9 * 2 + n_pad * 4)
    cap = max(8, (8 * 1024 * 1024) // per_row)
    for cand in (1024, 512, 256, 128, 64, 32, 16, 8):
        if cand <= cap and total_m % cand == 0 and total_m // cand >= 2:
            return cand
    return total_m                                   # tiny problem: single grid step


# ----------------------------------------------------------------------------- wrapper
def rpn_forward(x_nchw, params, *, k):
    """Returns (score NCHW (B,2k,H,W), coordinates (B, H*W*k, 4)) like the PyTorch RPN."""
    B, Cin, H, W = x_nchw.shape
    Cmid = params["conv_w"].shape[-1]
    k9 = 9 * Cin
    n_out = 6 * k
    n_pad = ((n_out + 127) // 128) * 128             # lane-dense fused output width

    # ---- input prep (XLA, tiny tensors): NHWC, bf16 once, halo pad, im2col ----------
    x = jnp.transpose(x_nchw, (0, 2, 3, 1)).astype(jnp.bfloat16)
    xp = jnp.pad(x, ((0, 0), (1, 1), (1, 1), (0, 0)))
    taps = [xp[:, dy:dy + H, dx:dx + W, :] for dy in range(3) for dx in range(3)]
    cols = jnp.concatenate(taps, axis=-1).reshape(B * H * W, k9)         # (M, 9*Cin) bf16

    # ---- weight prep (one-time, tiny): bf16 MXU operands, fused + lane-padded 1x1 ---
    w3 = params["conv_w"].reshape(k9, Cmid).astype(jnp.bfloat16)         # row = tap*Cin + cin
    b3 = params["conv_b"].reshape(1, Cmid).astype(jnp.float32)
    w1 = jnp.concatenate([params["score_w"], params["coord_w"]], axis=1)
    w1 = jnp.pad(w1, ((0, 0), (0, n_pad - n_out))).astype(jnp.bfloat16)
    b1 = jnp.pad(jnp.concatenate([params["score_b"], params["coord_b"]]),
                 (0, n_pad - n_out)).reshape(1, n_pad).astype(jnp.float32)

    total_m = B * H * W
    tm = _pick_row_tile(total_m, k9, n_pad)

    out = pl.pallas_call(
        _rpn_fused_kernel,
        out_shape=jax.ShapeDtypeStruct((total_m, n_pad), jnp.float32),
        grid=(total_m // tm,),
        in_specs=[
            pl.BlockSpec((tm, k9), lambda m: (m, 0)),
            pl.BlockSpec((k9, Cmid), lambda m: (0, 0)),
            pl.BlockSpec((1, Cmid), lambda m: (0, 0)),
            pl.BlockSpec((Cmid, n_pad), lambda m: (0, 0)),
            pl.BlockSpec((1, n_pad), lambda m: (0, 0)),
        ],
        out_specs=pl.BlockSpec((tm, n_pad), lambda m: (m, 0)),
        compiler_params=pltpu.CompilerParams(dimension_semantics=("parallel",)),
    )(cols, w3, b3, w1, b1)

    # ---- tiny layout tail (XLA) ------------------------------------------------------
    out = out.reshape(B, H, W, n_pad)
    score = jnp.transpose(out[..., :2 * k], (0, 3, 1, 2))                # (B, 2k, H, W)
    coords = out[..., 2 * k:6 * k].reshape(B, H, W, 4, k)                # channel = d*k + kk
    coords = jnp.transpose(coords, (0, 1, 2, 4, 3)).reshape(B, H * W * k, 4)
    return score, coords


# ----------------------------------------------------------------------------- plain-JAX reference
def rpn_reference(x_nchw, params, *, k):
    B, Cin, H, W = x_nchw.shape
    x = jnp.transpose(x_nchw, (0, 2, 3, 1)).astype(jnp.bfloat16)
    feat = jax.lax.conv_general_dilated(
        x, params["conv_w"].astype(jnp.bfloat16), (1, 1), ((1, 1), (1, 1)),
        dimension_numbers=("NHWC", "HWIO", "NHWC"),
        preferred_element_type=jnp.float32) + params["conv_b"]
    featb = feat.reshape(B * H * W, -1).astype(jnp.bfloat16)
    score = (jnp.dot(featb, params["score_w"].astype(jnp.bfloat16),
                     preferred_element_type=jnp.float32)
             + params["score_b"]).reshape(B, H, W, 2 * k)
    coords = (jnp.dot(featb, params["coord_w"].astype(jnp.bfloat16),
                      preferred_element_type=jnp.float32)
              + params["coord_b"]).reshape(B, H, W, 4 * k)
    score = jnp.transpose(score, (0, 3, 1, 2))
    coords = coords.reshape(B, H, W, 4, k)
    coords = jnp.transpose(coords, (0, 1, 2, 4, 3)).reshape(B, H * W * k, 4)
    return score, coords


# ----------------------------------------------------------------------------- params
def init_rpn_params(key, in_ch, out_ch, k):
    def conv_init(key, kh, kw, cin, cout):
        kwk, kbk = jax.random.split(key)
        bound = 1.0 / np.sqrt(kh * kw * cin)
        w = jax.random.uniform(kwk, (kh, kw, cin, cout), jnp.float32, -bound, bound)
        b = jax.random.uniform(kbk, (cout,), jnp.float32, -bound, bound)
        return w, b

    ks = jax.random.split(key, 3)
    conv_w, conv_b = conv_init(ks[0], 3, 3, in_ch, out_ch)
    sw, sb = conv_init(ks[1], 1, 1, out_ch, 2 * k)
    cw, cb = conv_init(ks[2], 1, 1, out_ch, 4 * k)
    return dict(conv_w=conv_w, conv_b=conv_b,
                score_w=sw.reshape(out_ch, 2 * k), score_b=sb,
                coord_w=cw.reshape(out_ch, 4 * k), coord_b=cb)


# ----------------------------------------------------------------------------- main
if __name__ == "__main__":
    B, in_ch, H, W = 2, 64, 16, 16      # small feature-map input (RPN sits on backbone features)
    out_ch, k = 512, 3                  # module defaults

    key = jax.random.PRNGKey(0)
    k_x, k_p = jax.random.split(key)
    x = jax.random.normal(k_x, (B, in_ch, H, W), dtype=jnp.float32)      # NCHW like PyTorch
    params = init_rpn_params(k_p, in_ch, out_ch, k)

    fwd = jax.jit(functools.partial(rpn_forward, k=k))
    score, coords = fwd(x, params)
    score = jax.block_until_ready(score)
    coords = jax.block_until_ready(coords)

    assert score.shape == (B, 2 * k, H, W), score.shape
    assert coords.shape == (B, H * W * k, 4), coords.shape

    score_ref, coords_ref = jax.jit(functools.partial(rpn_reference, k=k))(x, params)
    score_ref = jax.block_until_ready(score_ref)
    coords_ref = jax.block_until_ready(coords_ref)

    err_s = float(jnp.max(jnp.abs(score - score_ref)))
    err_c = float(jnp.max(jnp.abs(coords - coords_ref)))
    assert err_s < 5e-3 and err_c < 5e-3, (err_s, err_c)

    print("KERNEL_OK")
</pallas_src>

<mosaic_0001>
module attributes {stable_mosaic.version = 11 : i64} {
  func.func @_rpn_fused_kernel(%arg0: i32, %arg1: memref<256x576xbf16, #tpu.memory_space<vmem>>, %arg2: memref<576x512xbf16, #tpu.memory_space<vmem>>, %arg3: memref<1x512xf32, #tpu.memory_space<vmem>>, %arg4: memref<512x128xbf16, #tpu.memory_space<vmem>>, %arg5: memref<1x128xf32, #tpu.memory_space<vmem>>, %arg6: memref<256x128xf32, #tpu.memory_space<vmem>>) attributes {dimension_semantics = [#tpu.dimension_semantics<parallel>], iteration_bounds = array<i64: 2>, scalar_prefetch = 0 : i64, scratch_operands = 0 : i64, tpu.core_type = #tpu.core_type<tc>, window_params = [{transform_indices = @transform_0, window_bounds = array<i64: 256, 576>}, {pipeline_mode = #tpu.pipeline_mode<synchronous>, transform_indices = @transform_1, window_bounds = array<i64: 576, 512>}, {pipeline_mode = #tpu.pipeline_mode<synchronous>, transform_indices = @transform_2, window_bounds = array<i64: 1, 512>}, {pipeline_mode = #tpu.pipeline_mode<synchronous>, transform_indices = @transform_3, window_bounds = array<i64: 512, 128>}, {pipeline_mode = #tpu.pipeline_mode<synchronous>, transform_indices = @transform_4, window_bounds = array<i64: 1, 128>}, {transform_indices = @transform_5, window_bounds = array<i64: 256, 128>}]} {
    %c0 = arith.constant 0 : index
    %c0_0 = arith.constant 0 : index
    %0 = vector.load %arg1[%c0, %c0_0] : memref<256x576xbf16, #tpu.memory_space<vmem>>, vector<256x576xbf16>
    %c0_1 = arith.constant 0 : index
    %c0_2 = arith.constant 0 : index
    %1 = vector.load %arg2[%c0_1, %c0_2] : memref<576x512xbf16, #tpu.memory_space<vmem>>, vector<576x512xbf16>
    %cst = arith.constant dense<0.000000e+00> : vector<256x512xf32>
    %2 = tpu.matmul %0, %1, %cst {dimension_numbers = #tpu.dot_dimension_numbers<[1], [0], [0], [1], [0, 0, 1, 1], [], []>} : vector<256x576xbf16>, vector<576x512xbf16>, vector<256x512xf32> -> vector<256x512xf32>
    %c0_3 = arith.constant 0 : index
    %c0_4 = arith.constant 0 : index
    %3 = vector.load %arg3[%c0_3, %c0_4] : memref<1x512xf32, #tpu.memory_space<vmem>>, vector<1x512xf32>
    %4 = vector.broadcast %3 : vector<1x512xf32> to vector<256x512xf32>
    %5 = arith.addf %2, %4 : vector<256x512xf32>
    %6 = arith.truncf %5 : vector<256x512xf32> to vector<256x512xbf16>
    %c0_5 = arith.constant 0 : index
    %c0_6 = arith.constant 0 : index
    %7 = vector.load %arg4[%c0_5, %c0_6] : memref<512x128xbf16, #tpu.memory_space<vmem>>, vector<512x128xbf16>
    %cst_7 = arith.constant dense<0.000000e+00> : vector<256x128xf32>
    %8 = tpu.matmul %6, %7, %cst_7 {dimension_numbers = #tpu.dot_dimension_numbers<[1], [0], [0], [1], [0, 0, 1, 1], [], []>} : vector<256x512xbf16>, vector<512x128xbf16>, vector<256x128xf32> -> vector<256x128xf32>
    %c0_8 = arith.constant 0 : index
    %c0_9 = arith.constant 0 : index
    %9 = vector.load %arg5[%c0_8, %c0_9] : memref<1x128xf32, #tpu.memory_space<vmem>>, vector<1x128xf32>
    %10 = vector.broadcast %9 : vector<1x128xf32> to vector<256x128xf32>
    %11 = arith.addf %8, %10 : vector<256x128xf32>
    %c0_10 = arith.constant 0 : index
    %c0_11 = arith.constant 0 : index
    %12 = vector.load %arg6[%c0_10, %c0_11] : memref<256x128xf32, #tpu.memory_space<vmem>>, vector<256x128xf32>
    tpu.vector_store %arg6[%c0_10, %c0_11], %11 {strides = array<i32>} : memref<256x128xf32, #tpu.memory_space<vmem>>, vector<256x128xf32>,
    return
  }
  func.func @transform_0(%arg0: i32) -> (i32, i32) {
    %c0_i32 = arith.constant 0 : i32
    %c0_i32_0 = arith.constant 0 : i32
    return %arg0, %c0_i32 : i32, i32
  }
  func.func @transform_1(%arg0: i32) -> (i32, i32) {
    %c0_i32 = arith.constant 0 : i32
    %c0_i32_0 = arith.constant 0 : i32
    %c0_i32_1 = arith.constant 0 : i32
    return %c0_i32, %c0_i32_0 : i32, i32
  }
  func.func @transform_2(%arg0: i32) -> (i32, i32) {
    %c0_i32 = arith.constant 0 : i32
    %c0_i32_0 = arith.constant 0 : i32
    %c0_i32_1 = arith.constant 0 : i32
    return %c0_i32, %c0_i32_0 : i32, i32
  }
  func.func @transform_3(%arg0: i32) -> (i32, i32) {
    %c0_i32 = arith.constant 0 : i32
    %c0_i32_0 = arith.constant 0 : i32
    %c0_i32_1 = arith.constant 0 : i32
    return %c0_i32, %c0_i32_0 : i32, i32
  }
  func.func @transform_4(%arg0: i32) -> (i32, i32) {
    %c0_i32 = arith.constant 0 : i32
    %c0_i32_0 = arith.constant 0 : i32
    %c0_i32_1 = arith.constant 0 : i32
    return %c0_i32, %c0_i32_0 : i32, i32
  }
  func.func @transform_5(%arg0: i32) -> (i32, i32) {
    %c0_i32 = arith.constant 0 : i32
    %c0_i32_0 = arith.constant 0 : i32
    return %arg0, %c0_i32 : i32, i32
  }
}

</mosaic_0001>

<bundles_post_ra>
// kernel: rpn_forward.1
= control target key start
LH: loop header
LB: loop body
LE: loop exit
PB: predicated region body
PF: predicated region fallthrough
CT: control target
= control target key end

     0   :  { %s4524_s18 = smov 0   ;;  %s6447_s0 = inlined_call_operand.vmem [shape: bf16[512,576], index: 0, kind: input, shape index: {}]   ;;  %s6448_s1 = inlined_call_operand.vmem [shape: bf16[576,512], index: 1, kind: input, shape index: {}]   ;;  %s6449_s2 = inlined_call_operand.vmem [shape: f32[1,512], index: 2, kind: input, shape index: {}]   ;;  %s6450_s3 = inlined_call_operand.vmem [shape: bf16[512,128], index: 3, kind: input, shape index: {}]   ;;  %s6451_s4 = inlined_call_operand.vmem [shape: f32[1,128], index: 4, kind: input, shape index: {}]   ;;  %s6452_s5 = inlined_call_operand.vmem [shape: f32[512,128], index: 5, kind: output, shape index: {}]  }
   0x1 LB: > { %s3558_s19 = sadd.s32 4294967295, %s4491_s18   ;;  %p3562_p0 = scmp.ge.s32.totalorder %s4491_s18, 1  ;;  %s4491_s18 = sphi %s4524_s18, %s15_s18  }
   0x2   : > { %p189_p1 = scmp.lt.s32.totalorder %s4491_s18, 3 }
   0x4   : > { %p190_p2 = pnand %p3562_p0, %p189_p1 }
   0x6   : > { %193 = sbr.rel (%p190_p2) target bundleno = 862 (0x35e), region = 40 }
   0xb   : > { %v4092_v0 = vld [vmem:[%s6448_s1 + $0xe4] ss:$16 sps:$4 sm:$0xff]   ;;  %v4096_v2 = vld [vmem:[%s6448_s1 + $0xe0] ss:$16 sps:$4 sm:$0xff]   ;;  %s3563_s9 = sshll.u32 %s3558_s19, 5  ;;  %vm1614_vm0 = vcmask 523264  }
   0xc   : > { %v4094_v1 = vld [vmem:[%s6448_s1 + $0x2e4] ss:$16 sps:$4 sm:$0xff]   ;;  %1663 = vmatprep.subr.bf16.mxu0 %v4092_v0  ;;  %v4097_v3 = vld [vmem:[%s6448_s1 + $0x2e0] ss:$16 sps:$4 sm:$0xff]   ;;  %p219_p3 = scmp.lt.s32.totalorder %s3563_s9, 63 }
   0xd   : > { %1856 = vmatprep.subr.bf16.mxu1 %v4094_v1  ;;  %v4098_v4 = vld [vmem:[%s6448_s1 + $0xc4] ss:$16 sps:$4 sm:$0xff]   ;;  %1664 = vmatpush1.bf16.msra.mxu0 %v4096_v2  ;;  %v4102_v6 = vld [vmem:[%s6448_s1 + $0xc0] ss:$16 sps:$4 sm:$0xff]  }
   0xe   : > { %1857 = vmatpush1.bf16.msra.mxu1 %v4097_v3  ;;  %v4100_v5 = vld [vmem:[%s6448_s1 + $0x2c4] ss:$16 sps:$4 sm:$0xff]   ;;  %1665 = vmatprep.subr.bf16.mxu0 %v4098_v4  ;;  %v4103_v7 = vld [vmem:[%s6448_s1 + $0x2c0] ss:$16 sps:$4 sm:$0xff]   ;;  %s6637_s9 = smov (!%p219_p3, %s3563_s9), 63 }
   0xf   : > { %1858 = vmatprep.subr.bf16.mxu1 %v4100_v5  ;;  %v4104_v8 = vld [vmem:[%s6448_s1 + $0xa4] ss:$16 sps:$4 sm:$0xff]   ;;  %v4108_v10 = vld [vmem:[%s6448_s1 + $0xa0] ss:$16 sps:$4 sm:$0xff]   ;;  %s4082_s8 = smul.u32 20, %s6637_s9  ;;  %s3566_s25 = sshll.u32 %s6637_s9, 3 }
  0x10   : > { %v4106_v9 = vld [vmem:[%s6448_s1 + $0x2a4] ss:$16 sps:$4 sm:$0xff]   ;;  %v4109_v11 = vld [vmem:[%s6448_s1 + $0x2a0] ss:$16 sps:$4 sm:$0xff]   ;;  %v4199_v4 = vld [vmem:[%s6448_s1 + $0xec] ss:$16 sps:$4 sm:$0xff]   ;;  %s6314_s28 = scalar_lea.vmem %s6452_s5, %s3566_s25 }
  0x11   : > { %1666 = vmatpush1.bf16.msra.mxu0 %v4102_v6  ;;  %v4110_v12 = vld [vmem:[%s6448_s1 + $0x84] ss:$16 sps:$4 sm:$0xff]   ;;  %v4114_v14 = vld [vmem:[%s6448_s1 + $0x80] ss:$16 sps:$4 sm:$0xff]   ;;  %s4675_s21 = scalar_lea.vmem %s6447_s0, %s4082_s8 }
  0x12   : > { %1859 = vmatpush1.bf16.msra.mxu1 %v4103_v7  ;;  %1667 = vmatprep.subr.bf16.mxu0 %v4104_v8  ;;  %v4112_v13 = vld [vmem:[%s6448_s1 + $0x284] ss:$16 sps:$4 sm:$0xff]   ;;  %v4115_v15 = vld [vmem:[%s6448_s1 + $0x280] ss:$16 sps:$4 sm:$0xff]   ;;  %v4191_v5 = vld [vmem:[%s4675_s21 + $0x8] ss:$20 sps:$4 sm:$0xff]  }
  0x13   : > { %1860 = vmatprep.subr.bf16.mxu1 %v4106_v9  ;;  %v4116_v16 = vld [vmem:[%s6448_s1 + $0x64] ss:$16 sps:$4 sm:$0xff]   ;;  %v4120_v18 = vld [vmem:[%s6448_s1 + $0x60] ss:$16 sps:$4 sm:$0xff]   ;;  %v4197_v7 = vld [vmem:[%s6448_s1 + $0xe8] ss:$16 sps:$4 sm:$0xff]  }
  0x14   : > { %v4118_v17 = vld [vmem:[%s6448_s1 + $0x264] ss:$16 sps:$4 sm:$0xff]   ;;  %v4121_v19 = vld [vmem:[%s6448_s1 + $0x260] ss:$16 sps:$4 sm:$0xff]  }
  0x15   : > { %1668 = vmatpush1.bf16.msra.mxu0 %v4108_v10  ;;  %v4122_v20 = vld [vmem:[%s6448_s1 + $0x44] ss:$16 sps:$4 sm:$0xff]   ;;  %v4126_v22 = vld [vmem:[%s6448_s1 + $0x40] ss:$16 sps:$4 sm:$0xff]   ;;  %v4208_v10 = vld [vmem:[%s6448_s1 + $0xcc] ss:$16 sps:$4 sm:$0xff]  }
  0x16   : > { %1861 = vmatpush1.bf16.msra.mxu1 %v4109_v11  ;;  %1669 = vmatprep.subr.bf16.mxu0 %v4110_v12  ;;  %v4124_v21 = vld [vmem:[%s6448_s1 + $0x244] ss:$16 sps:$4 sm:$0xff]   ;;  %v4127_v23 = vld [vmem:[%s6448_s1 + $0x240] ss:$16 sps:$4 sm:$0xff]   ;;  %v4206_v12 = vld [vmem:[%s6448_s1 + $0xc8] ss:$16 sps:$4 sm:$0xff]  }
  0x17   : > { %1862 = vmatprep.subr.bf16.mxu1 %v4112_v13  ;;  %v4128_v24 = vld [vmem:[%s6448_s1 + $0x24] ss:$16 sps:$4 sm:$0xff]   ;;  %v4132_v26 = vld [vmem:[%s6448_s1 + $0x20] ss:$16 sps:$4 sm:$0xff]  }
  0x18   : > { %v4130_v25 = vld [vmem:[%s6448_s1 + $0x224] ss:$16 sps:$4 sm:$0xff]   ;;  %v4133_v27 = vld [vmem:[%s6448_s1 + $0x220] ss:$16 sps:$4 sm:$0xff]  }
  0x19   : > { %1670 = vmatpush1.bf16.msra.mxu0 %v4114_v14  ;;  %v4134_v28 = vld [vmem:[%s6448_s1 + $0x4] ss:$16 sps:$4 sm:$0xff]   ;;  %v4138_v30 = vld [vmem:[%s6448_s1] ss:$16 sps:$4 sm:$0xff]   ;;  %v4217_v14 = vld [vmem:[%s6448_s1 + $0xac] ss:$16 sps:$4 sm:$0xff]  }
  0x1a   : > { %1863 = vmatpush1.bf16.msra.mxu1 %v4115_v15  ;;  %1671 = vmatprep.subr.bf16.mxu0 %v4116_v16  ;;  %v4136_v29 = vld [vmem:[%s6448_s1 + $0x204] ss:$16 sps:$4 sm:$0xff]   ;;  %v4139_v31 = vld [vmem:[%s6448_s1 + $0x200] ss:$16 sps:$4 sm:$0xff]   ;;  %v4777_v15 = vld [vmem:[%s4675_s21 + $0x28] ss:$20 sps:$4 sm:$0xff]  }
  0x1b   : > { %1864 = vmatprep.subr.bf16.mxu1 %v4118_v17  ;;  %v4140_v32 = vld [vmem:[%s6448_s1 + $0x1e4] ss:$16 sps:$4 sm:$0xff]   ;;  %v4144_v34 = vld [vmem:[%s6448_s1 + $0x1e0] ss:$16 sps:$4 sm:$0xff]  }
  0x1c   : > { %v4142_v33 = vld [vmem:[%s6448_s1 + $0x3e4] ss:$16 sps:$4 sm:$0xff]   ;;  %v4145_v35 = vld [vmem:[%s6448_s1 + $0x3e0] ss:$16 sps:$4 sm:$0xff]  }
  0x1d   : > { %1672 = vmatpush1.bf16.msra.mxu0 %v4120_v18  ;;  %v4146_v36 = vld [vmem:[%s6448_s1 + $0x1c4] ss:$16 sps:$4 sm:$0xff]   ;;  %v4150_v38 = vld [vmem:[%s6448_s1 + $0x1c0] ss:$16 sps:$4 sm:$0xff]  }
  0x1e   : > { %1865 = vmatpush1.bf16.msra.mxu1 %v4121_v19  ;;  %1673 = vmatprep.subr.bf16.mxu0 %v4122_v20  ;;  %v4148_v37 = vld [vmem:[%s6448_s1 + $0x3c4] ss:$16 sps:$4 sm:$0xff]   ;;  %v4151_v39 = vld [vmem:[%s6448_s1 + $0x3c0] ss:$16 sps:$4 sm:$0xff]   ;;  %v4215_v19 = vld [vmem:[%s6448_s1 + $0xa8] ss:$16 sps:$4 sm:$0xff]  }
  0x1f   : > { %1866 = vmatprep.subr.bf16.mxu1 %v4124_v21  ;;  %v4152_v40 = vld [vmem:[%s6448_s1 + $0x1a4] ss:$16 sps:$4 sm:$0xff]   ;;  %v4156_v42 = vld [vmem:[%s6448_s1 + $0x1a0] ss:$16 sps:$4 sm:$0xff]   ;;  %v4226_v20 = vld [vmem:[%s6448_s1 + $0x8c] ss:$16 sps:$4 sm:$0xff]  }
  0x20   : > { %v4154_v41 = vld [vmem:[%s6448_s1 + $0x3a4] ss:$16 sps:$4 sm:$0xff]   ;;  %v4157_v43 = vld [vmem:[%s6448_s1 + $0x3a0] ss:$16 sps:$4 sm:$0xff]  }
  0x21   : > { %1674 = vmatpush1.bf16.msra.mxu0 %v4126_v22  ;;  %v4158_v44 = vld [vmem:[%s6448_s1 + $0x184] ss:$16 sps:$4 sm:$0xff]   ;;  %v4162_v46 = vld [vmem:[%s6448_s1 + $0x180] ss:$16 sps:$4 sm:$0xff]   ;;  %v4224_v22 = vld [vmem:[%s6448_s1 + $0x88] ss:$16 sps:$4 sm:$0xff]  }
  0x22   : > { %1867 = vmatpush1.bf16.msra.mxu1 %v4127_v23  ;;  %1675 = vmatprep.subr.bf16.mxu0 %v4128_v24  ;;  %v4160_v45 = vld [vmem:[%s6448_s1 + $0x384] ss:$16 sps:$4 sm:$0xff]   ;;  %v4163_v47 = vld [vmem:[%s6448_s1 + $0x380] ss:$16 sps:$4 sm:$0xff]   ;;  %v4238_v23 = vld [vmem:[%s6448_s1 + $0x6c] ss:$16 sps:$4 sm:$0xff]  }
  0x23   : > { %1868 = vmatprep.subr.bf16.mxu1 %v4130_v25  ;;  %v4164_v48 = vld [vmem:[%s6448_s1 + $0x164] ss:$16 sps:$4 sm:$0xff]   ;;  %v4193_v51 = vld [vmem:[%s4675_s21 + $0xc] ss:$20 sps:$4 sm:$0xff]   ;;  %v4211_v18 = vld [vmem:[%s4675_s21 + $0x5c] ss:$20 sps:$4 sm:$0xff]  }
  0x24   : > { %v4690_v49 = vld [vmem:[%s4675_s21 + $0x4] ss:$20 sps:$4 sm:$0xff]   ;;  %v4168_v52 = vld [vmem:[%s6448_s1 + $0x160] ss:$16 sps:$4 sm:$0xff]   ;;  %1888 = vmatprep.mubr.bf16.mxu1 %v4193_v51  ;;  %v4202_v9 = vld [vmem:[%s4675_s21 + $0x34] ss:$20 sps:$4 sm:$0xff]  }
  0x25   : > { %1676 = vmatpush1.bf16.msra.mxu0 %v4132_v26  ;;  %v4166_v50 = vld [vmem:[%s6448_s1 + $0x364] ss:$16 sps:$4 sm:$0xff]   ;;  %1695 = vmatprep.mubr.bf16.mxu0 %v4690_v49  ;;  %v4169_v53 = vld [vmem:[%s6448_s1 + $0x360] ss:$16 sps:$4 sm:$0xff]   ;;  %v4214_v24 = vld [vmem:[%s4675_s21 + $0x58] ss:$20 sps:$4 sm:$0xff]  }
  0x26   : > { %1869 = vmatpush1.bf16.msra.mxu1 %v4133_v27  ;;  %1677 = vmatprep.subr.bf16.mxu0 %v4134_v28  ;;  %v4170_v54 = vld [vmem:[%s6448_s1 + $0x144] ss:$16 sps:$4 sm:$0xff]   ;;  %v4174_v56 = vld [vmem:[%s6448_s1 + $0x140] ss:$16 sps:$4 sm:$0xff]   ;;  %v4236_v27 = vld [vmem:[%s6448_s1 + $0x68] ss:$16 sps:$4 sm:$0xff]  }
  0x27   : > { %1870 = vmatprep.subr.bf16.mxu1 %v4136_v29  ;;  %v4172_v55 = vld [vmem:[%s6448_s1 + $0x344] ss:$16 sps:$4 sm:$0xff]   ;;  %v4175_v57 = vld [vmem:[%s6448_s1 + $0x340] ss:$16 sps:$4 sm:$0xff]   ;;  %v4247_v29 = vld [vmem:[%s6448_s1 + $0x4c] ss:$16 sps:$4 sm:$0xff]  }
  0x28   : > { %v4176_v58 = vld [vmem:[%s6448_s1 + $0x124] ss:$16 sps:$4 sm:$0xff]   ;;  %v4180_v60 = vld [vmem:[%s6448_s1 + $0x120] ss:$16 sps:$4 sm:$0xff]   ;;  %v4874_v51 = vld [vmem:[%s4675_s21 + $0xc8] ss:$20 sps:$4 sm:$0xff]  }
  0x29   : > { %1678 = vmatpush1.bf16.msra.mxu0 %v4138_v30  ;;  %v4178_v59 = vld [vmem:[%s6448_s1 + $0x324] ss:$16 sps:$4 sm:$0xff]   ;;  %v4181_v61 = vld [vmem:[%s6448_s1 + $0x320] ss:$16 sps:$4 sm:$0xff]  }
  0x2a   : > { %1871 = vmatpush1.bf16.msra.mxu1 %v4139_v31  ;;  %1679 = vmatprep.subr.bf16.mxu0 %v4140_v32  ;;  %v4182_v62 = vld [vmem:[%s6448_s1 + $0x104] ss:$16 sps:$4 sm:$0xff]   ;;  %v4186_v0 = vld [vmem:[%s6448_s1 + $0x100] ss:$16 sps:$4 sm:$0xff]   ;;  %v4245_v31 = vld [vmem:[%s6448_s1 + $0x48] ss:$16 sps:$4 sm:$0xff]  }
  0x2b   : > { %1872 = vmatprep.subr.bf16.mxu1 %v4142_v33  ;;  %v4184_v63 = vld [vmem:[%s6448_s1 + $0x304] ss:$16 sps:$4 sm:$0xff]   ;;  %v4187_v1 = vld [vmem:[%s6448_s1 + $0x300] ss:$16 sps:$4 sm:$0xff]   ;;  %v4824_v32 = vld [vmem:[%s4675_s21 + $0x78] ss:$20 sps:$4 sm:$0xff]  }
  0x2c   : > { %v4196_v2 = vld [vmem:[%s6448_s1 + $0x464] ss:$16 sps:$4 sm:$0xff]   ;;  %v4194_v6 = vld [vmem:[%s6448_s1 + $0x460] ss:$16 sps:$4 sm:$0xff]   ;;  %v4256_v33 = vld [vmem:[%s6448_s1 + $0x2c] ss:$16 sps:$4 sm:$0xff]  }
  0x2d   : > { %1680 = vmatpush2.bf16.msra.mxu0 %v4144_v34  ;;  %v4743_v3 = vld [vmem:[%s4675_s21] ss:$20 sps:$4 sm:$0xff]   ;;  %v4205_v16 = vld [vmem:[%s4675_s21 + $0x30] ss:$20 sps:$4 sm:$0xff]  }
  0x2e   : > { %1873 = vmatpush2.bf16.msra.mxu1 %v4145_v35  ;;  %1681 = vmatprep.subr.bf16.mxu0 %v4146_v36  ;;  %v4756_v8 = vld [vmem:[%s4675_s21 + $0x2c] ss:$20 sps:$4 sm:$0xff]   ;;  %v4235_v11 = vld [vmem:[%s6448_s1 + $0x444] ss:$16 sps:$4 sm:$0xff]   ;;  %v4803_v25 = vld [vmem:[%s4675_s21 + $0x7c] ss:$20 sps:$4 sm:$0xff]  }
  0x2f   : > { %1874 = vmatprep.subr.bf16.mxu1 %v4148_v37  ;;  %v4233_v13 = vld [vmem:[%s6448_s1 + $0x440] ss:$16 sps:$4 sm:$0xff]   ;;  %v4781_v17 = vld [vmem:[%s4675_s21 + $0x54] ss:$20 sps:$4 sm:$0xff]   ;;  %v4220_v26 = vld [vmem:[%s4675_s21 + $0x84] ss:$20 sps:$4 sm:$0xff]  }
  0x30   : > { %v4793_v21 = vld [vmem:[%s4675_s21 + $0x50] ss:$20 sps:$4 sm:$0xff]   ;;  %v4223_v34 = vld [vmem:[%s4675_s21 + $0x80] ss:$20 sps:$4 sm:$0xff]   ;;  %v4254_v37 = vld [vmem:[%s6448_s1 + $0x28] ss:$16 sps:$4 sm:$0xff]  }
  0x31   : > { %1682 = vmatpush2.bf16.msra.mxu0 %v4150_v38  ;;  %v4274_v28 = vld [vmem:[%s6448_s1 + $0x424] ss:$16 sps:$4 sm:$0xff]   ;;  %v4272_v30 = vld [vmem:[%s6448_s1 + $0x420] ss:$16 sps:$4 sm:$0xff]   ;;  %v4265_v38 = vld [vmem:[%s6448_s1 + $0xc] ss:$16 sps:$4 sm:$0xff]  }
  0x32   : > { %1875 = vmatpush2.bf16.msra.mxu1 %v4151_v39  ;;  %1683 = vmatprep.subr.bf16.mxu0 %v4152_v40  ;;  %v4831_v35 = vld [vmem:[%s4675_s21 + $0xa4] ss:$20 sps:$4 sm:$0xff]   ;;  %v4229_v36 = vld [vmem:[%s4675_s21 + $0xac] ss:$20 sps:$4 sm:$0xff]  }
  0x33   : > { %1876 = vmatprep.subr.bf16.mxu1 %v4154_v41  ;;  %v4843_v39 = vld [vmem:[%s4675_s21 + $0xa0] ss:$20 sps:$4 sm:$0xff]   ;;  %v4263_v40 = vld [vmem:[%s6448_s1 + $0x8] ss:$16 sps:$4 sm:$0xff]  }
  0x34   : > { %v4232_v41 = vld [vmem:[%s4675_s21 + $0xa8] ss:$20 sps:$4 sm:$0xff]  }
  0x35   : > { %1684 = vmatpush2.bf16.msra.mxu0 %v4156_v42  ;;  %v4277_v42 = vld [vmem:[%s6448_s1 + $0x1ec] ss:$16 sps:$4 sm:$0xff]  }
  0x36   : > { %1877 = vmatpush2.bf16.msra.mxu1 %v4157_v43  ;;  %1685 = vmatprep.subr.bf16.mxu0 %v4158_v44  ;;  %v4853_v43 = vld [vmem:[%s4675_s21 + $0xcc] ss:$20 sps:$4 sm:$0xff]   ;;  %v4241_v44 = vld [vmem:[%s4675_s21 + $0xd4] ss:$20 sps:$4 sm:$0xff]  }
  0x37   : > { %1878 = vmatprep.subr.bf16.mxu1 %v4160_v45  ;;  %v4275_v45 = vld [vmem:[%s6448_s1 + $0x1e8] ss:$16 sps:$4 sm:$0xff]  }
  0x39   : > { %1686 = vmatpush2.bf16.msra.mxu0 %v4162_v46  ;;  %v4286_v46 = vld [vmem:[%s6448_s1 + $0x1cc] ss:$16 sps:$4 sm:$0xff]  }
  0x3a   : > { %1879 = vmatpush2.bf16.msra.mxu1 %v4163_v47  ;;  %1687 = vmatprep.subr.bf16.mxu0 %v4164_v48  ;;  %v4311_v47 = vld [vmem:[%s6448_s1 + $0x400] ss:$16 sps:$4 sm:$0xff]   ;;  %v4313_v48 = vld [vmem:[%s6448_s1 + $0x404] ss:$16 sps:$4 sm:$0xff]  }
  0x3b   : > { %1880 = vmatprep.subr.bf16.mxu1 %v4166_v50  ;;  %v4284_v50 = vld [vmem:[%s6448_s1 + $0x1c8] ss:$16 sps:$4 sm:$0xff]  }
  0x3d   : > { %1688 = vmatpush2.bf16.msra.mxu0 %v4168_v52  ;;  %v4295_v52 = vld [vmem:[%s6448_s1 + $0x1ac] ss:$16 sps:$4 sm:$0xff]  }
  0x3e   : > { %1881 = vmatpush2.bf16.msra.mxu1 %v4169_v53  ;;  %1689 = vmatprep.subr.bf16.mxu0 %v4170_v54  ;;  %v4244_v53 = vld [vmem:[%s4675_s21 + $0xd0] ss:$20 sps:$4 sm:$0xff]   ;;  %v4881_v54 = vld [vmem:[%s4675_s21 + $0xf4] ss:$20 sps:$4 sm:$0xff]  }
  0x3f   : > { %1882 = vmatprep.subr.bf16.mxu1 %v4172_v55  ;;  %v4250_v55 = vld [vmem:[%s4675_s21 + $0xfc] ss:$20 sps:$4 sm:$0xff]  }
  0x41   : > { %1690 = vmatpush2.bf16.msra.mxu0 %v4174_v56  ;;  %v4293_v56 = vld [vmem:[%s6448_s1 + $0x1a8] ss:$16 sps:$4 sm:$0xff]  }
  0x42   : > { %1883 = vmatpush2.bf16.msra.mxu1 %v4175_v57  ;;  %1691 = vmatprep.subr.bf16.mxu0 %v4176_v58  ;;  %v4304_v57 = vld [vmem:[%s6448_s1 + $0x18c] ss:$16 sps:$4 sm:$0xff]   ;;  %v4893_v58 = vld [vmem:[%s4675_s21 + $0xf0] ss:$20 sps:$4 sm:$0xff]  }
  0x43   : > { %1884 = vmatprep.subr.bf16.mxu1 %v4178_v59  ;;  %v4302_v59 = vld [vmem:[%s6448_s1 + $0x188] ss:$16 sps:$4 sm:$0xff]  }
  0x45   : > { %1692 = vmatpush2.bf16.msra.mxu0 %v4180_v60  ;;  %v4253_v60 = vld [vmem:[%s4675_s21 + $0xf8] ss:$20 sps:$4 sm:$0xff]  }
  0x46   : > { %1885 = vmatpush2.bf16.msra.mxu1 %v4181_v61  ;;  %1693 = vmatprep.subr.bf16.mxu0 %v4182_v62  ;;  %v4316_v61 = vld [vmem:[%s6448_s1 + $0x16c] ss:$16 sps:$4 sm:$0xff]  }
  0x47   : > { %1886 = vmatprep.subr.bf16.mxu1 %v4184_v63  ;;  %v4903_v62 = vld [vmem:[%s4675_s21 + $0x11c] ss:$20 sps:$4 sm:$0xff]   ;;  %v4259_v63 = vld [vmem:[%s4675_s21 + $0x124] ss:$20 sps:$4 sm:$0xff]  }
  0x49   : > { %1694 = vmatpush2.bf16.msra.mxu0 %v4186_v0  ;;  %v4314_v0 = vld [vmem:[%s6448_s1 + $0x168] ss:$16 sps:$4 sm:$0xff]  }
  0x4a   : > { %1887 = vmatpush2.bf16.msra.mxu1 %v4187_v1  ;;  %2057 = vmatprep.subr.bf16.mxu0 %v4196_v2  ;;  %v4325_v1 = vld [vmem:[%s6448_s1 + $0x14c] ss:$16 sps:$4 sm:$0xff]  }
  0x4b   : > { %2242 = vmatprep.subr.bf16.mxu1 %v4199_v4  ;;  %v4347_v2 = vld [vmem:[%s6448_s1 + $0x2ec] ss:$16 sps:$4 sm:$0xff]  }
  0x4c   : > { %1696 = vmatmul.mubr.bf16.vlgmr.msra.gmra.mxu0 %v4743_v3  ;;  %v4918_v4 = vld [vmem:[%s4675_s21 + $0x118] ss:$20 sps:$4 sm:$0xff]  }
  0x4d   : > { %1889 = vmatmul.mubr.bf16.vlgmr.msra.gmra.mxu1 %v4191_v5  ;;  %2058 = vmatpush1.bf16.msra.mxu0 %v4194_v6  ;;  %v4262_v5 = vld [vmem:[%s4675_s21 + $0x120] ss:$20 sps:$4 sm:$0xff]   ;;  %v4323_v6 = vld [vmem:[%s6448_s1 + $0x148] ss:$16 sps:$4 sm:$0xff]  }
  0x4e   : > { %2243 = vmatpush1.bf16.msra.mxu1 %v4197_v7  ;;  %1705 = vmatprep.mubr.bf16.mxu0 %v4756_v8  ;;  %v4334_v7 = vld [vmem:[%s6448_s1 + $0x12c] ss:$16 sps:$4 sm:$0xff]  }
  0x4f   : > { %1898 = vmatprep.mubr.bf16.mxu1 %v4202_v9  ;;  %2244 = vmatprep.subr.bf16.mxu1 %v4208_v10  ;;  %v4928_v9 = vld [vmem:[%s4675_s21 + $0x144] ss:$20 sps:$4 sm:$0xff]   ;;  %v4268_v10 = vld [vmem:[%s4675_s21 + $0x14c] ss:$20 sps:$4 sm:$0xff]  }
  0x50   : > { %2059 = vmatprep.subr.bf16.mxu0 %v4235_v11  ;;  %v4332_v11 = vld [vmem:[%s6448_s1 + $0x128] ss:$16 sps:$4 sm:$0xff]  }
  0x51   : > { %2060 = vmatpush1.bf16.msra.mxu0 %v4233_v13  ;;  %v4940_v13 = vld [vmem:[%s4675_s21 + $0x140] ss:$20 sps:$4 sm:$0xff]  }
  0x52   : > { %2245 = vmatpush1.bf16.msra.mxu1 %v4206_v12  ;;  %2061 = vmatprep.subr.bf16.mxu0 %v4274_v28  ;;  %v4343_v12 = vld [vmem:[%s6448_s1 + $0x10c] ss:$16 sps:$4 sm:$0xff]  }
  0x53   : > { %2246 = vmatprep.subr.bf16.mxu1 %v4217_v14  ;;  %v4341_v14 = vld [vmem:[%s6448_s1 + $0x108] ss:$16 sps:$4 sm:$0xff]  }
  0x54   : > { %1706 = vmatmul.mubr.bf16.gmra.mxu0 %v4777_v15  ;;  %v4292_v28 = vld [vmem:[%s4675_s21 + $0x198] ss:$20 sps:$4 sm:$0xff]  }
  0x55   : > { %1899 = vmatmul.mubr.bf16.gmra.mxu1 %v4205_v16  ;;  %1715 = vmatprep.mubr.bf16.mxu0 %v4781_v17  ;;  %v4350_v16 = vld [vmem:[%s6448_s1 + $0x46c] ss:$16 sps:$4 sm:$0xff]  }
  0x56   : > { %1908 = vmatprep.mubr.bf16.mxu1 %v4211_v18  ;;  %2247 = vmatpush1.bf16.msra.mxu1 %v4215_v19  ;;  %v4271_v18 = vld [vmem:[%s4675_s21 + $0x148] ss:$20 sps:$4 sm:$0xff]   ;;  %v4950_v19 = vld [vmem:[%s4675_s21 + $0x16c] ss:$20 sps:$4 sm:$0xff]  }
  0x57   : > { %2248 = vmatprep.subr.bf16.mxu1 %v4226_v20  ;;  %2062 = vmatpush1.bf16.msra.mxu0 %v4272_v30  ;;  %v4280_v20 = vld [vmem:[%s4675_s21 + $0x174] ss:$20 sps:$4 sm:$0xff]   ;;  %v4298_v30 = vld [vmem:[%s4675_s21 + $0x1c4] ss:$20 sps:$4 sm:$0xff]  }
  0x58   : > { %2063 = vmatprep.subr.bf16.mxu0 %v4313_v48  ;;  %v4331_v48 = vld [vmem:[%s4675_s21 + $0x238] ss:$20 sps:$4 sm:$0xff]  }
  0x5a   : > { %2249 = vmatpush1.bf16.msra.mxu1 %v4224_v22  ;;  %v4956_v22 = vld [vmem:[%s4675_s21 + $0x168] ss:$20 sps:$4 sm:$0xff]  }
  0x5b   : > { %2250 = vmatprep.subr.bf16.mxu1 %v4238_v23  ;;  %2064 = vmatpush1.bf16.msra.mxu0 %v4311_v47  ;;  %v4283_v23 = vld [vmem:[%s4675_s21 + $0x170] ss:$20 sps:$4 sm:$0xff]  }
  0x5c   : > { %1716 = vmatmul.mubr.bf16.gmra.mxu0 %v4793_v21  ;;  %2435 = vmatprep.subr.bf16.mxu0 %v4347_v2  ;;  %v5006_v47 = vld [vmem:[%s4675_s21 + $0x230] ss:$20 sps:$4 sm:$0xff]   ;;  %v5055_v2 = vld [vmem:[%s4675_s21 + $0x38] ss:$20 sps:$4 sm:$0xff]  }
  0x5d   : > { %1909 = vmatmul.mubr.bf16.gmra.mxu1 %v4214_v24  ;;  %1725 = vmatprep.mubr.bf16.mxu0 %v4803_v25  ;;  %v4960_v24 = vld [vmem:[%s4675_s21 + $0x194] ss:$20 sps:$4 sm:$0xff]  }
  0x5e   : > { %1918 = vmatprep.mubr.bf16.mxu1 %v4220_v26  ;;  %2251 = vmatpush1.bf16.msra.mxu1 %v4236_v27  ;;  %v4289_v26 = vld [vmem:[%s4675_s21 + $0x19c] ss:$20 sps:$4 sm:$0xff]  }
  0x5f   : > { %2252 = vmatprep.subr.bf16.mxu1 %v4247_v29  ;;  %v4966_v27 = vld [vmem:[%s4675_s21 + $0x190] ss:$20 sps:$4 sm:$0xff]  }
  0x60   : > { %v4970_v29 = vld [vmem:[%s4675_s21 + $0x1bc] ss:$20 sps:$4 sm:$0xff]  }
  0x62   : > { %2253 = vmatpush1.bf16.msra.mxu1 %v4245_v31  ;;  %v4976_v31 = vld [vmem:[%s4675_s21 + $0x1b8] ss:$20 sps:$4 sm:$0xff]  }
  0x63   : > { %2254 = vmatprep.subr.bf16.mxu1 %v4256_v33  ;;  %v4301_v33 = vld [vmem:[%s4675_s21 + $0x1c0] ss:$20 sps:$4 sm:$0xff]  }
  0x64   : > { %1726 = vmatmul.mubr.bf16.gmra.mxu0 %v4824_v32 }
  0x65   : > { %1919 = vmatmul.mubr.bf16.gmra.mxu1 %v4223_v34  ;;  %1735 = vmatprep.mubr.bf16.mxu0 %v4831_v35  ;;  %v4980_v34 = vld [vmem:[%s4675_s21 + $0x1e4] ss:$20 sps:$4 sm:$0xff]  }
  0x66   : > { %1928 = vmatprep.mubr.bf16.mxu1 %v4229_v36  ;;  %2255 = vmatpush1.bf16.msra.mxu1 %v4254_v37  ;;  %v4307_v36 = vld [vmem:[%s4675_s21 + $0x1ec] ss:$20 sps:$4 sm:$0xff]  }
  0x67   : > { %2256 = vmatprep.subr.bf16.mxu1 %v4265_v38  ;;  %v4986_v37 = vld [vmem:[%s4675_s21 + $0x1e0] ss:$20 sps:$4 sm:$0xff]   ;;  %v4310_v38 = vld [vmem:[%s4675_s21 + $0x1e8] ss:$20 sps:$4 sm:$0xff]  }
  0x6a   : > { %2257 = vmatpush1.bf16.msra.mxu1 %v4263_v40  ;;  %v4990_v40 = vld [vmem:[%s4675_s21 + $0x20c] ss:$20 sps:$4 sm:$0xff]  }
  0x6b   : > { %2258 = vmatprep.subr.bf16.mxu1 %v4277_v42  ;;  %v4996_v42 = vld [vmem:[%s4675_s21 + $0x208] ss:$20 sps:$4 sm:$0xff]  }
  0x6c   : > { %1736 = vmatmul.mubr.bf16.gmra.mxu0 %v4843_v39 }
  0x6d   : > { %1929 = vmatmul.mubr.bf16.gmra.mxu1 %v4232_v41  ;;  %1745 = vmatprep.mubr.bf16.mxu0 %v4853_v43  ;;  %v4319_v41 = vld [vmem:[%s4675_s21 + $0x214] ss:$20 sps:$4 sm:$0xff]  }
  0x6e   : > { %1938 = vmatprep.mubr.bf16.mxu1 %v4241_v44  ;;  %2259 = vmatpush2.bf16.msra.mxu1 %v4275_v45  ;;  %v4322_v44 = vld [vmem:[%s4675_s21 + $0x210] ss:$20 sps:$4 sm:$0xff]   ;;  %v5000_v45 = vld [vmem:[%s4675_s21 + $0x234] ss:$20 sps:$4 sm:$0xff]  }
  0x6f   : > { %2260 = vmatprep.subr.bf16.mxu1 %v4286_v46  ;;  %v4328_v46 = vld [vmem:[%s4675_s21 + $0x23c] ss:$20 sps:$4 sm:$0xff]  }
  0x72   : > { %2261 = vmatpush2.bf16.msra.mxu1 %v4284_v50  ;;  %v5010_v50 = vld [vmem:[%s4675_s21 + $0x25c] ss:$20 sps:$4 sm:$0xff]  }
  0x73   : > { %2262 = vmatprep.subr.bf16.mxu1 %v4295_v52  ;;  %v4337_v52 = vld [vmem:[%s4675_s21 + $0x264] ss:$20 sps:$4 sm:$0xff]  }
  0x74   : > { %1746 = vmatmul.mubr.bf16.gmra.mxu0 %v4874_v51 }
  0x75   : > { %1939 = vmatmul.mubr.bf16.gmra.mxu1 %v4244_v53  ;;  %1755 = vmatprep.mubr.bf16.mxu0 %v4881_v54  ;;  %v5016_v53 = vld [vmem:[%s4675_s21 + $0x258] ss:$20 sps:$4 sm:$0xff]  }
  0x76   : > { %1948 = vmatprep.mubr.bf16.mxu1 %v4250_v55  ;;  %2263 = vmatpush2.bf16.msra.mxu1 %v4293_v56  ;;  %v4340_v55 = vld [vmem:[%s4675_s21 + $0x260] ss:$20 sps:$4 sm:$0xff]   ;;  %v6455_v56 = vmov 0  }
  0x77   : > { %2264 = vmatprep.subr.bf16.mxu1 %v4304_v57  ;;  %v5023_v57 = vld [vmem:[%s4675_s21 + $0x10] ss:$20 sps:$4 sm:$0xff]  }
  0x7a   : > { %2265 = vmatpush2.bf16.msra.mxu1 %v4302_v59  ;;  %v4345_v59 = vld [vmem:[%s6448_s1 + $0x2e8] ss:$16 sps:$4 sm:$0xff]  }
  0x7b   : > { %2266 = vmatprep.subr.bf16.mxu1 %v4316_v61  ;;  %v4354_v61 = vld [vmem:[%s6448_s1 + $0x2cc] ss:$16 sps:$4 sm:$0xff]  }
  0x7c   : > { %1756 = vmatmul.mubr.bf16.gmra.mxu0 %v4893_v58 }
  0x7d   : > { %1949 = vmatmul.mubr.bf16.gmra.mxu1 %v4253_v60  ;;  %1765 = vmatprep.mubr.bf16.mxu0 %v4903_v62  ;;  %v4348_v60 = vld [vmem:[%s6448_s1 + $0x468] ss:$16 sps:$4 sm:$0xff]  }
  0x7e   : > { %1958 = vmatprep.mubr.bf16.mxu1 %v4259_v63  ;;  %2267 = vmatpush2.bf16.msra.mxu1 %v4314_v0  ;;  %v4352_v63 = vld [vmem:[%s6448_s1 + $0x2c8] ss:$16 sps:$4 sm:$0xff]  }
  0x7f   : > { %2268 = vmatprep.subr.bf16.mxu1 %v4325_v1  ;;  %v4367_v0 = vld [vmem:[%s6448_s1 + $0x448] ss:$16 sps:$4 sm:$0xff]   ;;  %v4358_v1 = vld [vmem:[%s6448_s1 + $0x2ac] ss:$16 sps:$4 sm:$0xff]  }
  0x82   : > { %2269 = vmatpush2.bf16.msra.mxu1 %v4323_v6  ;;  %v4362_v6 = vld [vmem:[%s6448_s1 + $0x28c] ss:$16 sps:$4 sm:$0xff]  }
  0x83   : > { %2270 = vmatprep.subr.bf16.mxu1 %v4334_v7  ;;  %v4407_v7 = vld [vmem:[%s6448_s1 + $0x40c] ss:$16 sps:$4 sm:$0xff]  }
  0x84   : > { %1766 = vmatmul.mubr.bf16.gmra.mxu0 %v4918_v4 }
  0x85   : > { %1959 = vmatmul.mubr.bf16.gmra.mxu1 %v4262_v5  ;;  %1775 = vmatprep.mubr.bf16.mxu0 %v4928_v9  ;;  %v4356_v5 = vld [vmem:[%s6448_s1 + $0x2a8] ss:$16 sps:$4 sm:$0xff]  }
  0x86   : > { %1968 = vmatprep.mubr.bf16.mxu1 %v4268_v10  ;;  %2271 = vmatpush2.bf16.msra.mxu1 %v4332_v11  ;;  %v4360_v10 = vld [vmem:[%s6448_s1 + $0x288] ss:$16 sps:$4 sm:$0xff]  }
  0x87   : > { %2272 = vmatprep.subr.bf16.mxu1 %v4343_v12  ;;  %v4405_v11 = vld [vmem:[%s6448_s1 + $0x408] ss:$16 sps:$4 sm:$0xff]   ;;  %v4366_v12 = vld [vmem:[%s6448_s1 + $0x26c] ss:$16 sps:$4 sm:$0xff]  }
  0x8a   : > { %2273 = vmatpush2.bf16.msra.mxu1 %v4341_v14  ;;  %v4373_v14 = vld [vmem:[%s6448_s1 + $0x24c] ss:$16 sps:$4 sm:$0xff]  }
  0x8b   : > { %2636 = vmatprep.subr.bf16.mxu1 %v4350_v16  ;;  %v4371_v16 = vld [vmem:[%s6448_s1 + $0x248] ss:$16 sps:$4 sm:$0xff]  }
  0x8c   : > { %1776 = vmatmul.mubr.bf16.gmra.mxu0 %v4940_v13 }
  0x8d   : > { %1969 = vmatmul.mubr.bf16.gmra.mxu1 %v4271_v18  ;;  %1785 = vmatprep.mubr.bf16.mxu0 %v4950_v19  ;;  %v4377_v18 = vld [vmem:[%s6448_s1 + $0x22c] ss:$16 sps:$4 sm:$0xff]  }
  0x8e   : > { %1978 = vmatprep.mubr.bf16.mxu1 %v4280_v20  ;;  %v5104_v20 = vld [vmem:[%s4675_s21 + $0x88] ss:$20 sps:$4 sm:$0xff]  }
  0x94   : > { %1786 = vmatmul.mubr.bf16.gmra.mxu0 %v4956_v22 }
  0x95   : > { %1979 = vmatmul.mubr.bf16.gmra.mxu1 %v4283_v23  ;;  %1795 = vmatprep.mubr.bf16.mxu0 %v4960_v24  ;;  %v4379_v23 = vld [vmem:[%s6448_s1 + $0x208] ss:$16 sps:$4 sm:$0xff]  }
  0x96   : > { %1988 = vmatprep.mubr.bf16.mxu1 %v4289_v26  ;;  %v4385_v26 = vld [vmem:[%s6448_s1 + $0x3ec] ss:$16 sps:$4 sm:$0xff]  }
  0x9c   : > { %1796 = vmatmul.mubr.bf16.gmra.mxu0 %v4966_v27 }
  0x9d   : > { %1989 = vmatmul.mubr.bf16.gmra.mxu1 %v4292_v28  ;;  %1805 = vmatprep.mubr.bf16.mxu0 %v4970_v29  ;;  %v5124_v28 = vld [vmem:[%s4675_s21 + $0xb0] ss:$20 sps:$4 sm:$0xff]  }
  0x9e   : > { %1998 = vmatprep.mubr.bf16.mxu1 %v4298_v30  ;;  %v4390_v30 = vld [vmem:[%s6448_s1 + $0x3c8] ss:$16 sps:$4 sm:$0xff]  }
  0xa4   : > { %1806 = vmatmul.mubr.bf16.gmra.mxu0 %v4976_v31 }
  0xa5   : > { %1999 = vmatmul.mubr.bf16.gmra.mxu1 %v4301_v33  ;;  %1815 = vmatprep.mubr.bf16.mxu0 %v4980_v34  ;;  %v4396_v33 = vld [vmem:[%s6448_s1 + $0x3ac] ss:$16 sps:$4 sm:$0xff]  }
  0xa6   : > { %2008 = vmatprep.mubr.bf16.mxu1 %v4307_v36  ;;  %v5144_v36 = vld [vmem:[%s4675_s21 + $0xd8] ss:$20 sps:$4 sm:$0xff]  }
  0xac   : > { %1816 = vmatmul.mubr.bf16.gmra.mxu0 %v4986_v37 }
  0xad   : > { %2009 = vmatmul.mubr.bf16.gmra.mxu1 %v4310_v38  ;;  %1825 = vmatprep.mubr.bf16.mxu0 %v4990_v40  ;;  %v4398_v38 = vld [vmem:[%s6448_s1 + $0x388] ss:$16 sps:$4 sm:$0xff]  }
  0xae   : > { %2018 = vmatprep.mubr.bf16.mxu1 %v4319_v41  ;;  %v4404_v41 = vld [vmem:[%s6448_s1 + $0x36c] ss:$16 sps:$4 sm:$0xff]  }
  0xb4   : > { %1826 = vmatmul.mubr.bf16.gmra.mxu0 %v4996_v42 }
  0xb5   : > { %2019 = vmatmul.mubr.bf16.gmra.mxu1 %v4322_v44  ;;  %1835 = vmatprep.mubr.bf16.mxu0 %v5000_v45  ;;  %v5164_v44 = vld [vmem:[%s4675_s21 + $0x100] ss:$20 sps:$4 sm:$0xff]  }
  0xb6   : > { %2028 = vmatprep.mubr.bf16.mxu1 %v4328_v46  ;;  %v474_v46 = vlaneseq }
  0xbc   : > { %1836 = vmatmul.mubr.bf16.gmra.mxu0 %v5006_v47 }
  0xbd   : > { %2029 = vmatmul.mubr.bf16.gmra.mxu1 %v4331_v48  ;;  %1845 = vmatprep.mubr.bf16.mxu0 %v5010_v50  ;;  %v4409_v48 = vld [vmem:[%s6448_s1 + $0x348] ss:$16 sps:$4 sm:$0xff]  }
  0xbe   : > { %2038 = vmatprep.mubr.bf16.mxu1 %v4337_v52  ;;  %v4415_v52 = vld [vmem:[%s6448_s1 + $0x32c] ss:$16 sps:$4 sm:$0xff]  }
  0xc4   : > { %1846 = vmatmul.mubr.bf16.gmra.mxu0 %v5016_v53 }
  0xc5   : > { %2039 = vmatmul.mubr.bf16.gmra.mxu1 %v4340_v55  ;;  %2081 = vmatprep.mubr.bf16.mxu0 %v6455_v56  ;;  %v5184_v55 = vld [vmem:[%s4675_s21 + $0x128] ss:$20 sps:$4 sm:$0xff]  }
  0xc6   : > { %2274 = vmatprep.mubr.bf16.mxu1 %v4690_v49  ;;  %v4369_v49 = vld [vmem:[%s6448_s1 + $0x44c] ss:$16 sps:$4 sm:$0xff]  }
  0xcc   : > { %3791 = vmatmul.mubr.msk.bf16.vlgmr.msra.gmra.mxu0 %vm1614_vm0, %v5023_v57 }
  0xcd   : > { %2275 = vmatmul.mubr.bf16.vlgmr.msra.gmra.mxu1 %v4743_v3  ;;  %2436 = vmatpush1.bf16.msra.mxu0 %v4345_v59  ;;  %v4388_v3 = vld [vmem:[%s6448_s1 + $0x42c] ss:$16 sps:$4 sm:$0xff]   ;;  %v5186_v59 = vshrl.u32 %v474_v46, 7 }
  0xce   : > { %2637 = vmatpush1.bf16.msra.mxu1 %v4348_v60  ;;  %2091 = vmatprep.mubr.bf16.mxu0 %v6455_v56 }
  0xcf   : > { %2284 = vmatprep.mubr.bf16.mxu1 %v4756_v8  ;;  %2437 = vmatprep.subr.bf16.mxu0 %v4354_v61  ;;  %v4386_v8 = vld [vmem:[%s6448_s1 + $0x428] ss:$16 sps:$4 sm:$0xff]   ;;  %6457 = vst [vmem:[#allocation2_spill] sm:$0xff] %v5186_v59  ;;  %v476_v60 = vsub.s32 0, %v5186_v59  ;;  %v472_v61 = vld [vmem:[%s6449_s2] sm:$0xf] }
  0xd0   : > { %2638 = vmatprep.subr.bf16.mxu1 %v4369_v49  ;;  %v4417_v49 = vld [vmem:[%s6448_s1 + $0x308] ss:$16 sps:$4 sm:$0xff]  }
  0xd1   : > { %2438 = vmatpush1.bf16.msra.mxu0 %v4352_v63  ;;  %v480_v63 = vsub.s32 1, %v5186_v59 }
  0xd2   : > { %2639 = vmatpush1.bf16.msra.mxu1 %v4367_v0  ;;  %2439 = vmatprep.subr.bf16.mxu0 %v4358_v1  ;;  %v5208_v0 = vld [vmem:[%s4675_s21 + $0x150] ss:$20 sps:$4 sm:$0xff]  }
  0xd3   : > { %2640 = vmatprep.subr.bf16.mxu1 %v4388_v3 }
  0xd4   : > { %3792 = vmatmul.mubr.msk.bf16.gmra.mxu0 %vm1614_vm0, %v5055_v2 }
  0xd5   : > { %2285 = vmatmul.mubr.bf16.gmra.mxu1 %v4777_v15  ;;  %2101 = vmatprep.mubr.bf16.mxu0 %v6455_v56  ;;  %v5084_v15 = vld [vmem:[%s4675_s21 + $0x60] ss:$20 sps:$4 sm:$0xff]  }
  0xd6   : > { %2294 = vmatprep.mubr.bf16.mxu1 %v4781_v17  ;;  %2440 = vmatpush1.bf16.msra.mxu0 %v4356_v5  ;;  %v4364_v17 = vld [vmem:[%s6448_s1 + $0x268] ss:$16 sps:$4 sm:$0xff]  }
  0xd7   : > { %2641 = vmatpush1.bf16.msra.mxu1 %v4386_v8  ;;  %2441 = vmatprep.subr.bf16.mxu0 %v4362_v6 }
  0xd8   : > { %2642 = vmatprep.subr.bf16.mxu1 %v4407_v7 }
  0xda   : > { %2442 = vmatpush1.bf16.msra.mxu0 %v4360_v10 }
  0xdb   : > { %2643 = vmatpush1.bf16.msra.mxu1 %v4405_v11  ;;  %2443 = vmatprep.subr.bf16.mxu0 %v4366_v12 }
  0xdc   : > { %3793 = vmatmul.mubr.msk.bf16.gmra.mxu0 %vm1614_vm0, %v5084_v15 }
  0xdd   : > { %2295 = vmatmul.mubr.bf16.gmra.mxu1 %v4793_v21  ;;  %2111 = vmatprep.mubr.bf16.mxu0 %v6455_v56  ;;  %v4375_v21 = vld [vmem:[%s6448_s1 + $0x228] ss:$16 sps:$4 sm:$0xff]  }
  0xde   : > { %2304 = vmatprep.mubr.bf16.mxu1 %v4803_v25  ;;  %2444 = vmatpush1.bf16.msra.mxu0 %v4364_v17  ;;  %v4381_v25 = vld [vmem:[%s6448_s1 + $0x20c] ss:$16 sps:$4 sm:$0xff]  }
  0xdf   : > { %2445 = vmatprep.subr.bf16.mxu0 %v4373_v14  ;;  %v5224_v17 = vld [vmem:[%s4675_s21 + $0x178] ss:$20 sps:$4 sm:$0xff]  }
  0xe2   : > { %2446 = vmatpush1.bf16.msra.mxu0 %v4371_v16 }
  0xe3   : > { %2447 = vmatprep.subr.bf16.mxu0 %v4377_v18 }
  0xe4   : > { %3794 = vmatmul.mubr.msk.bf16.gmra.mxu0 %vm1614_vm0, %v5104_v20 }
  0xe5   : > { %2305 = vmatmul.mubr.bf16.gmra.mxu1 %v4824_v32  ;;  %2121 = vmatprep.mubr.bf16.mxu0 %v6455_v56  ;;  %v4383_v32 = vld [vmem:[%s6448_s1 + $0x3e8] ss:$16 sps:$4 sm:$0xff]  }
  0xe6   : > { %2314 = vmatprep.mubr.bf16.mxu1 %v4831_v35  ;;  %2448 = vmatpush1.bf16.msra.mxu0 %v4375_v21  ;;  %v4392_v35 = vld [vmem:[%s6448_s1 + $0x3cc] ss:$16 sps:$4 sm:$0xff]  }
  0xe7   : > { %2449 = vmatprep.subr.bf16.mxu0 %v4381_v25 }
  0xea   : > { %2450 = vmatpush1.bf16.msra.mxu0 %v4379_v23 }
  0xeb   : > { %2451 = vmatprep.subr.bf16.mxu0 %v4385_v26 }
  0xec   : > { %3795 = vmatmul.mubr.msk.bf16.gmra.mxu0 %vm1614_vm0, %v5124_v28 }
  0xed   : > { %2315 = vmatmul.mubr.bf16.gmra.mxu1 %v4843_v39  ;;  %2131 = vmatprep.mubr.bf16.mxu0 %v6455_v56  ;;  %v4394_v39 = vld [vmem:[%s6448_s1 + $0x3a8] ss:$16 sps:$4 sm:$0xff]  }
  0xee   : > { %2324 = vmatprep.mubr.bf16.mxu1 %v4853_v43  ;;  %2452 = vmatpush2.bf16.msra.mxu0 %v4383_v32  ;;  %v4400_v43 = vld [vmem:[%s6448_s1 + $0x38c] ss:$16 sps:$4 sm:$0xff]  }
  0xef   : > { %2453 = vmatprep.subr.bf16.mxu0 %v4392_v35 }
  0xf2   : > { %2454 = vmatpush2.bf16.msra.mxu0 %v4390_v30 }
  0xf3   : > { %2455 = vmatprep.subr.bf16.mxu0 %v4396_v33 }
  0xf4   : > { %3796 = vmatmul.mubr.msk.bf16.gmra.mxu0 %vm1614_vm0, %v5144_v36 }
  0xf5   : > { %2325 = vmatmul.mubr.bf16.gmra.mxu1 %v4874_v51  ;;  %2141 = vmatprep.mubr.bf16.mxu0 %v6455_v56  ;;  %v4402_v51 = vld [vmem:[%s6448_s1 + $0x368] ss:$16 sps:$4 sm:$0xff]  }
  0xf6   : > { %2334 = vmatprep.mubr.bf16.mxu1 %v4881_v54  ;;  %2456 = vmatpush2.bf16.msra.mxu0 %v4394_v39  ;;  %v4411_v54 = vld [vmem:[%s6448_s1 + $0x34c] ss:$16 sps:$4 sm:$0xff]  }
  0xf7   : > { %2457 = vmatprep.subr.bf16.mxu0 %v4400_v43 }
  0xfa   : > { %2458 = vmatpush2.bf16.msra.mxu0 %v4398_v38 }
  0xfb   : > { %2459 = vmatprep.subr.bf16.mxu0 %v4404_v41  ;;  %v5244_v41 = vld [vmem:[%s4675_s21 + $0x1a0] ss:$20 sps:$4 sm:$0xff]  }
  0xfc   : > { %3797 = vmatmul.mubr.msk.bf16.gmra.mxu0 %vm1614_vm0, %v5164_v44 }
  0xfd   : > { %2335 = vmatmul.mubr.bf16.gmra.mxu1 %v4893_v58  ;;  %2151 = vmatprep.mubr.bf16.mxu0 %v6455_v56  ;;  %v4413_v58 = vld [vmem:[%s6448_s1 + $0x328] ss:$16 sps:$4 sm:$0xff]  }
  0xfe   : > { %2344 = vmatprep.mubr.bf16.mxu1 %v4903_v62  ;;  %2460 = vmatpush2.bf16.msra.mxu0 %v4402_v51  ;;  %v4419_v62 = vld [vmem:[%s6448_s1 + $0x30c] ss:$16 sps:$4 sm:$0xff]  }
  0xff   : > { %2461 = vmatprep.subr.bf16.mxu0 %v4411_v54 }
 0x102   : > { %2462 = vmatpush2.bf16.msra.mxu0 %v4409_v48 }
 0x103   : > { %2463 = vmatprep.subr.bf16.mxu0 %v4415_v52  ;;  %v4420_v52 = vld [vmem:[%s6450_s3 + $0x78] sm:$0xff]  }
 0x104   : > { %3798 = vmatmul.mubr.msk.bf16.gmra.mxu0 %vm1614_vm0, %v5184_v55 }
 0x105   : > { %2345 = vmatmul.mubr.bf16.gmra.mxu1 %v4918_v4  ;;  %2161 = vmatprep.mubr.bf16.mxu0 %v6455_v56  ;;  %v5210_v4 = vrot.slane %v472_v61, %v476_v60 }
 0x106   : > { %2354 = vmatprep.mubr.bf16.mxu1 %v4928_v9  ;;  %2464 = vmatpush2.bf16.msra.mxu0 %v4413_v58  ;;  %v5212_v9 = vrot.slane %v472_v61, %v480_v63 }
 0x107   : > { %2465 = vmatprep.subr.bf16.mxu0 %v4419_v62 }
 0x10a   : > { %2466 = vmatpush2.bf16.msra.mxu0 %v4417_v49  ;;  %v4422_v49 = vld [vmem:[%s6450_s3 + $0xf8] sm:$0xff]  }
 0x10b   : > { %3858 = vmatprep.subr.bf16.mxu0 %v4420_v52  ;;  %3970 = vmatprep.subr.bf16.mxu1 %v4422_v49 }
 0x10c   : > { %v1697_v1 = vpop.f32.mrf.mxu0  ;;  %3799 = vmatmul.mubr.msk.bf16.gmra.mxu0 %vm1614_vm0, %v5208_v0 }
 0x10d   : > { %v1890_v3 = vpop.f32.mrf.mxu1  ;;  %2355 = vmatmul.mubr.bf16.gmra.mxu1 %v4940_v13  ;;  %v1698_v5 = vadd.f32 %v1697_v1, %v5210_v4  ;;  %2171 = vmatprep.mubr.bf16.mxu0 %v6455_v56 }
 0x10e   : > { %2364 = vmatprep.mubr.bf16.mxu1 %v4950_v19  ;;  %v1699_v8 = vpop.f32.mrf.mxu0 }
 0x10f   : > { %v1892_v6 = vpop.f32.mrf.mxu1  ;;  %v5220_v7 = vadd.f32 %v1890_v3, %v1698_v5  ;;  %v1700_v10 = vadd.f32 %v1699_v8, %v5212_v9 }
 0x110   : > { %v1701_v11 = vpop.f32.mrf.mxu0 }
 0x111   : > { %v1894_v12 = vpop.f32.mrf.mxu1  ;;  %v5226_v14 = vadd.f32 %v1892_v6, %v1700_v10  ;;  %v1702_v13 = vadd.f32 %v1701_v11, %v5210_v4  ;;  %v5270_v6 = vld [vmem:[%s4675_s21 + $0x1c8] ss:$20 sps:$4 sm:$0xff]  }
 0x112   : > { %v1703_v16 = vpop.f32.mrf.mxu0 }
 0x113   : > { %v1896_v18 = vpop.f32.mrf.mxu1  ;;  %v5229_v21 = vadd.f32 %v1894_v12, %v1702_v13  ;;  %v1704_v19 = vadd.f32 %v1703_v16, %v5212_v9 }
 0x114   : > { %v1707_v25 = vpop.f32.mrf.mxu0  ;;  %3800 = vmatmul.mubr.msk.bf16.gmra.mxu0 %vm1614_vm0, %v5224_v17 }
 0x115   : > { %v1900_v23 = vpop.f32.mrf.mxu1  ;;  %2365 = vmatmul.mubr.bf16.gmra.mxu1 %v4956_v22  ;;  %v5235_v26 = vadd.f32 %v1896_v18, %v1704_v19  ;;  %v1708_v32 = vadd.f32 %v1707_v25, %v5210_v4  ;;  %2181 = vmatprep.mubr.bf16.mxu0 %v6455_v56 }
 0x116   : > { %2374 = vmatprep.mubr.bf16.mxu1 %v4960_v24  ;;  %v1709_v35 = vpop.f32.mrf.mxu0 }
 0x117   : > { %v1902_v30 = vpop.f32.mrf.mxu1  ;;  %v5240_v33 = vadd.f32 %v1900_v23, %v1708_v32  ;;  %v1710_v39 = vadd.f32 %v1709_v35, %v5212_v9 }
 0x118   : > { %v1711_v43 = vpop.f32.mrf.mxu0 }
 0x119   : > { %v1904_v38 = vpop.f32.mrf.mxu1  ;;  %v5246_v51 = vadd.f32 %v1902_v30, %v1710_v39  ;;  %v1712_v22 = vadd.f32 %v1711_v43, %v5210_v4 }
 0x11a   : > { %v1713_v54 = vpop.f32.mrf.mxu0 }
 0x11b   : > { %v1906_v46 = vpop.f32.mrf.mxu1  ;;  %v5249_v48 = vadd.f32 %v1904_v38, %v1712_v22  ;;  %v1714_v24 = vadd.f32 %v1713_v54, %v5212_v9  ;;  %v5290_v22 = vld [vmem:[%s4675_s21 + $0x1f0] ss:$20 sps:$4 sm:$0xff]  }
 0x11c   : > { %v1717_v58 = vpop.f32.mrf.mxu0  ;;  %3801 = vmatmul.mubr.msk.bf16.gmra.mxu0 %vm1614_vm0, %v5244_v41 }
 0x11d   : > { %v1910_v62 = vpop.f32.mrf.mxu1  ;;  %2375 = vmatmul.mubr.bf16.gmra.mxu1 %v4966_v27  ;;  %v5258_v60 = vadd.f32 %v1906_v46, %v1714_v24  ;;  %v1718_v61 = vadd.f32 %v1717_v58, %v5210_v4  ;;  %2191 = vmatprep.mubr.bf16.mxu0 %v6455_v56 }
 0x11e   : > { %2384 = vmatprep.mubr.bf16.mxu1 %v4970_v29  ;;  %v1719_v63 = vpop.f32.mrf.mxu0 }
 0x11f   : > { %v1912_v1 = vpop.f32.mrf.mxu1  ;;  %v5266_v3 = vadd.f32 %v1910_v62, %v1718_v61  ;;  %v1720_v5 = vadd.f32 %v1719_v63, %v5212_v9 }
 0x120   : > { %v1721_v27 = vpop.f32.mrf.mxu0 }
 0x121   : > { %v1914_v8 = vpop.f32.mrf.mxu1  ;;  %v5272_v10 = vadd.f32 %v1912_v1, %v1720_v5  ;;  %v1722_v29 = vadd.f32 %v1721_v27, %v5210_v4 }
 0x122   : > { %v1723_v11 = vpop.f32.mrf.mxu0 }
 0x123   : > { %v1916_v12 = vpop.f32.mrf.mxu1  ;;  %v5275_v13 = vadd.f32 %v1914_v8, %v1722_v29  ;;  %v1724_v16 = vadd.f32 %v1723_v11, %v5212_v9  ;;  %v5310_v11 = vld [vmem:[%s4675_s21 + $0x218] ss:$20 sps:$4 sm:$0xff]  }
 0x124   : > { %v1727_v18 = vpop.f32.mrf.mxu0  ;;  %3802 = vmatmul.mubr.msk.bf16.gmra.mxu0 %vm1614_vm0, %v5270_v6 }
 0x125   : > { %v1920_v19 = vpop.f32.mrf.mxu1  ;;  %2385 = vmatmul.mubr.bf16.gmra.mxu1 %v4976_v31  ;;  %v5281_v25 = vadd.f32 %v1916_v12, %v1724_v16  ;;  %v1728_v23 = vadd.f32 %v1727_v18, %v5210_v4  ;;  %2201 = vmatprep.mubr.bf16.mxu0 %v6455_v56 }
 0x126   : > { %2394 = vmatprep.mubr.bf16.mxu1 %v4980_v34  ;;  %v1729_v32 = vpop.f32.mrf.mxu0 }
 0x127   : > { %v1922_v35 = vpop.f32.mrf.mxu1  ;;  %v5286_v30 = vadd.f32 %v1920_v19, %v1728_v23  ;;  %v1730_v39 = vadd.f32 %v1729_v32, %v5212_v9 }
 0x128   : > { %v1731_v43 = vpop.f32.mrf.mxu0 }
 0x129   : > { %v1924_v38 = vpop.f32.mrf.mxu1  ;;  %v5292_v54 = vadd.f32 %v1922_v35, %v1730_v39  ;;  %v1732_v31 = vadd.f32 %v1731_v43, %v5210_v4 }
 0x12a   : > { %v1733_v46 = vpop.f32.mrf.mxu0 }
 0x12b   : > { %v1926_v24 = vpop.f32.mrf.mxu1  ;;  %v5295_v52 = vadd.f32 %v1924_v38, %v1732_v31  ;;  %v1734_v34 = vadd.f32 %v1733_v46, %v5212_v9 }
 0x12c   : > { %v1737_v58 = vpop.f32.mrf.mxu0  ;;  %3803 = vmatmul.mubr.msk.bf16.gmra.mxu0 %vm1614_vm0, %v5290_v22 }
 0x12d   : > { %v1930_v62 = vpop.f32.mrf.mxu1  ;;  %2395 = vmatmul.mubr.bf16.gmra.mxu1 %v4986_v37  ;;  %v5301_v61 = vadd.f32 %v1926_v24, %v1734_v34  ;;  %v1738_v49 = vadd.f32 %v1737_v58, %v5210_v4  ;;  %2211 = vmatprep.mubr.bf16.mxu0 %v6455_v56  ;;  %v5330_v58 = vld [vmem:[%s4675_s21 + $0x240] ss:$20 sps:$4 sm:$0xff]  }
 0x12e   : > { %2404 = vmatprep.mubr.bf16.mxu1 %v4990_v40  ;;  %v1739_v63 = vpop.f32.mrf.mxu0 }
 0x12f   : > { %v1932_v1 = vpop.f32.mrf.mxu1  ;;  %v5306_v5 = vadd.f32 %v1930_v62, %v1738_v49  ;;  %v1740_v27 = vadd.f32 %v1739_v63, %v5212_v9 }
 0x130   : > { %v1741_v8 = vpop.f32.mrf.mxu0 }
 0x131   : > { %v1934_v29 = vpop.f32.mrf.mxu1  ;;  %v5312_v12 = vadd.f32 %v1932_v1, %v1740_v27  ;;  %v1742_v37 = vadd.f32 %v1741_v8, %v5210_v4 }
 0x132   : > { %v1743_v16 = vpop.f32.mrf.mxu0 }
 0x133   : > { %v1936_v18 = vpop.f32.mrf.mxu1  ;;  %v5315_v19 = vadd.f32 %v1934_v29, %v1742_v37  ;;  %v1744_v40 = vadd.f32 %v1743_v16, %v5212_v9 }
 0x134   : > { %v1747_v23 = vpop.f32.mrf.mxu0  ;;  %3804 = vmatmul.mubr.msk.bf16.gmra.mxu0 %vm1614_vm0, %v5310_v11 }
 0x135   : > { %v1940_v32 = vpop.f32.mrf.mxu1  ;;  %2405 = vmatmul.mubr.bf16.gmra.mxu1 %v4996_v42  ;;  %v5321_v35 = vadd.f32 %v1936_v18, %v1744_v40  ;;  %v1748_v39 = vadd.f32 %v1747_v23, %v5210_v4  ;;  %2221 = vmatprep.mubr.bf16.mxu0 %v6455_v56 }
 0x136   : > { %2414 = vmatprep.mubr.bf16.mxu1 %v5000_v45  ;;  %v1749_v43 = vpop.f32.mrf.mxu0 }
 0x137   : > { %v1942_v38 = vpop.f32.mrf.mxu1  ;;  %v5326_v31 = vadd.f32 %v1940_v32, %v1748_v39  ;;  %v1750_v46 = vadd.f32 %v1749_v43, %v5212_v9  ;;  %v5350_v43 = vld [vmem:[%s4675_s21 + $0x268] ss:$20 sps:$4 sm:$0xff]  }
 0x138   : > { %v1751_v24 = vpop.f32.mrf.mxu0 }
 0x139   : > { %v1944_v34 = vpop.f32.mrf.mxu1  ;;  %v5332_v62 = vadd.f32 %v1942_v38, %v1750_v46  ;;  %v1752_v42 = vadd.f32 %v1751_v24, %v5210_v4 }
 0x13a   : > { %v1753_v49 = vpop.f32.mrf.mxu0 }
 0x13b   : > { %v1946_v63 = vpop.f32.mrf.mxu1  ;;  %v5335_v1 = vadd.f32 %v1944_v34, %v1752_v42  ;;  %v1754_v45 = vadd.f32 %v1753_v49, %v5212_v9 }
 0x13c   : > { %v1757_v27 = vpop.f32.mrf.mxu0  ;;  %3805 = vmatmul.mubr.msk.bf16.gmra.mxu0 %vm1614_vm0, %v5330_v58 }
 0x13d   : > { %v1950_v8 = vpop.f32.mrf.mxu1  ;;  %2415 = vmatmul.mubr.bf16.gmra.mxu1 %v5006_v47  ;;  %v5341_v29 = vadd.f32 %v1946_v63, %v1754_v45  ;;  %v1758_v37 = vadd.f32 %v1757_v27, %v5210_v4  ;;  %2231 = vmatprep.mubr.bf16.mxu0 %v6455_v56  ;;  %v4452_v27 = vld [vmem:[%s4675_s21 + $0xc] ss:$20 sps:$4 sm:$0xff]  }
 0x13e   : > { %2424 = vmatprep.mubr.bf16.mxu1 %v5010_v50  ;;  %v1759_v16 = vpop.f32.mrf.mxu0 }
 0x13f   : > { %v1952_v18 = vpop.f32.mrf.mxu1  ;;  %v5346_v40 = vadd.f32 %v1950_v8, %v1758_v37  ;;  %v1760_v23 = vadd.f32 %v1759_v16, %v5212_v9 }
 0x140   : > { %v1761_v32 = vpop.f32.mrf.mxu0 }
 0x141   : > { %v1954_v39 = vpop.f32.mrf.mxu1  ;;  %v5352_v47 = vadd.f32 %v1952_v18, %v1760_v23  ;;  %v1762_v38 = vadd.f32 %v1761_v32, %v5210_v4 }
 0x142   : > { %v1763_v46 = vpop.f32.mrf.mxu0 }
 0x143   : > { %v1956_v24 = vpop.f32.mrf.mxu1  ;;  %v5355_v34 = vadd.f32 %v1954_v39, %v1762_v38  ;;  %v1764_v50 = vadd.f32 %v1763_v46, %v5212_v9 }
 0x144   : > { %v1767_v42 = vpop.f32.mrf.mxu0  ;;  %3806 = vmatmul.mubr.msk.bf16.gmra.mxu0 %vm1614_vm0, %v5350_v43 }
 0x145   : > { %v1960_v49 = vpop.f32.mrf.mxu1  ;;  %2425 = vmatmul.mubr.bf16.gmra.mxu1 %v5016_v53  ;;  %v5361_v63 = vadd.f32 %v1956_v24, %v1764_v50  ;;  %v1768_v45 = vadd.f32 %v1767_v42, %v5210_v4  ;;  %2467 = vmatprep.mubr.bf16.mxu0 %v4452_v27  ;;  %v4421_v24 = vld [vmem:[%s6450_s3 + $0x38] sm:$0xff]   ;;  %v4426_v27 = vld [vmem:[%s6450_s3 + $0xf0] sm:$0xff]  }
 0x146   : > { %2660 = vmatprep.mubr.bf16.mxu1 %v6455_v56  ;;  %v1769_v8 = vpop.f32.mrf.mxu0  ;;  %v4423_v50 = vld [vmem:[%s6450_s3 + $0xb8] sm:$0xff]  }
 0x147   : > { %v1962_v37 = vpop.f32.mrf.mxu1  ;;  %v5366_v16 = vadd.f32 %v1960_v49, %v1768_v45  ;;  %v1770_v18 = vadd.f32 %v1769_v8, %v5212_v9  ;;  %v4424_v45 = vld [vmem:[%s6450_s3 + $0x70] sm:$0xff]  }
 0x148   : > { %v1771_v23 = vpop.f32.mrf.mxu0 }
 0x149   : > { %v1964_v32 = vpop.f32.mrf.mxu1  ;;  %v5369_v39 = vadd.f32 %v1962_v37, %v1770_v18  ;;  %v1772_v53 = vadd.f32 %v1771_v23, %v5210_v4  ;;  %v4453_v18 = vld [vmem:[%s4675_s21 + $0x8] ss:$20 sps:$4 sm:$0xff]  }
 0x14a   : > { %v1773_v38 = vpop.f32.mrf.mxu0 }
 0x14b   : > { %6458 = vst [vmem:[#allocation3_spill] sm:$0xff] %v5369_v39  ;;  %v1966_v46 = vpop.f32.mrf.mxu1  ;;  %v5378_v42 = vadd.f32 %v1964_v32, %v1772_v53  ;;  %v1774_v49 = vadd.f32 %v1773_v38, %v5212_v9  ;;  %v4454_v53 = vld [vmem:[%s4675_s21 + $0x34] ss:$20 sps:$4 sm:$0xff]  }
 0x14c   : > { %v1777_v8 = vpop.f32.mrf.mxu0  ;;  %2468 = vmatmul.mubr.bf16.vlgmr.msra.gmra.mxu0 %v4453_v18  ;;  %v4425_v39 = vld [vmem:[%s6450_s3 + $0x30] sm:$0xff]  }
 0x14d   : > { %v1970_v37 = vpop.f32.mrf.mxu1  ;;  %3807 = vmatmul.mubr.msk.bf16.vlgmr.msra.gmra.mxu1 %vm1614_vm0, %v5023_v57  ;;  %v5390_v23 = vadd.f32 %v1966_v46, %v1774_v49  ;;  %v1778_v32 = vadd.f32 %v1777_v8, %v5210_v4  ;;  %2477 = vmatprep.mubr.bf16.mxu0 %v4454_v53  ;;  %v4427_v57 = vld [vmem:[%s6450_s3 + $0xb0] sm:$0xff]   ;;  %v4428_v8 = vld [vmem:[%s6450_s3 + $0x68] sm:$0xff]  }
 0x14e   : > { %2670 = vmatprep.mubr.bf16.mxu1 %v6455_v56  ;;  %v1779_v38 = vpop.f32.mrf.mxu0  ;;  %3859 = vmatpush3.bf16.msra.mxu0 %v4421_v24  ;;  %v4432_v24 = vld [vmem:[%s6450_s3 + $0xe8] sm:$0xff]  }
 0x14f   : > { %6459 = vst [vmem:[#allocation4_spill] sm:$0xff] %v5390_v23  ;;  %v1972_v59 = vpop.f32.mrf.mxu1  ;;  %3971 = vmatpush3.bf16.msra.mxu1 %v4423_v50  ;;  %v5401_v46 = vadd.f32 %v1970_v37, %v1778_v32  ;;  %v1780_v49 = vadd.f32 %v1779_v38, %v5212_v9  ;;  %3860 = vmatprep.subr.bf16.mxu0 %v4424_v45  ;;  %v4429_v45 = vld [vmem:[%s6450_s3 + $0x28] sm:$0xff]  }
 0x150   : > { %3972 = vmatprep.subr.bf16.mxu1 %v4426_v27  ;;  %v1781_v50 = vpop.f32.mrf.mxu0  ;;  %v4433_v27 = vld [vmem:[%s6450_s3 + $0xa8] sm:$0xff]  }
 0x151   : > { %6460 = vst [vmem:[#allocation5_spill] sm:$0xff] %v5401_v46  ;;  %v1974_v18 = vpop.f32.mrf.mxu1  ;;  %v5410_v53 = vadd.f32 %v1972_v59, %v1780_v49  ;;  %v1782_v37 = vadd.f32 %v1781_v50, %v5210_v4  ;;  %v4430_v49 = vld [vmem:[%s6450_s3 + $0x60] sm:$0xff]  }
 0x152   : > { %v1783_v32 = vpop.f32.mrf.mxu0  ;;  %3861 = vmatpush3.bf16.msra.mxu0 %v4425_v39  ;;  %v4442_v39 = vld [vmem:[%s6450_s3 + $0xe0] sm:$0xff]  }
 0x153   : > { %6461 = vst [vmem:[#allocation6_spill] sm:$0xff] %v5410_v53  ;;  %v1976_v56 = vpop.f32.mrf.mxu1  ;;  %3973 = vmatpush3.bf16.msra.mxu1 %v4427_v57  ;;  %v5419_v38 = vadd.f32 %v1974_v18, %v1782_v37  ;;  %v1784_v59 = vadd.f32 %v1783_v32, %v5212_v9  ;;  %3862 = vmatprep.subr.bf16.mxu0 %v4428_v8  ;;  %v4455_v53 = vld [vmem:[%s4675_s21 + $0x30] ss:$20 sps:$4 sm:$0xff]   ;;  %v6464_v32 = vmov 0  }
 0x154   : > { %3974 = vmatprep.subr.bf16.mxu1 %v4432_v24  ;;  %v1787_v57 = vpop.f32.mrf.mxu0  ;;  %2478 = vmatmul.mubr.bf16.gmra.mxu0 %v4455_v53  ;;  %v4456_v37 = vld [vmem:[%s4675_s21 + $0x5c] ss:$20 sps:$4 sm:$0xff]   ;;  %v4431_v46 = vld [vmem:[%s6450_s3 + $0x20] sm:$0xff]  }
 0x155   : > { %6462 = vst [vmem:[#allocation7_spill] sm:$0xff] %v5419_v38  ;;  %v1980_v50 = vpop.f32.mrf.mxu1  ;;  %3808 = vmatmul.mubr.msk.bf16.gmra.mxu1 %vm1614_vm0, %v5055_v2  ;;  %v5431_v18 = vadd.f32 %v1976_v56, %v1784_v59  ;;  %v1788_v8 = vadd.f32 %v1787_v57, %v5210_v4  ;;  %2487 = vmatprep.mubr.bf16.mxu0 %v4456_v37  ;;  %v4443_v2 = vld [vmem:[%s6450_s3 + $0xa0] sm:$0xff]   ;;  %v4434_v59 = vld [vmem:[%s6450_s3 + $0x58] sm:$0xff]  }
 0x156   : > { %2680 = vmatprep.mubr.bf16.mxu1 %v6464_v32  ;;  %v1789_v24 = vpop.f32.mrf.mxu0  ;;  %3863 = vmatpush3.bf16.msra.mxu0 %v4429_v45 }
 0x157   : > { %6463 = vst [vmem:[#allocation8_spill] sm:$0xff] %v5431_v18  ;;  %v1982_v38 = vpop.f32.mrf.mxu1  ;;  %3975 = vmatpush3.bf16.msra.mxu1 %v4433_v27  ;;  %v5442_v56 = vadd.f32 %v1980_v50, %v1788_v8  ;;  %v1790_v53 = vadd.f32 %v1789_v24, %v5212_v9  ;;  %3864 = vmatprep.subr.bf16.mxu0 %v4430_v49  ;;  %v4435_v49 = vld [vmem:[%s6450_s3 + $0x18] sm:$0xff]  }
 0x158   : > { %3976 = vmatprep.subr.bf16.mxu1 %v4442_v39  ;;  %v1791_v45 = vpop.f32.mrf.mxu0 }
 0x159   : > { %v1984_v57 = vpop.f32.mrf.mxu1  ;;  %v5448_v37 = vadd.f32 %v1982_v38, %v1790_v53  ;;  %v1792_v27 = vadd.f32 %v1791_v45, %v5210_v4  ;;  %v4436_v38 = vld [vmem:[%s6450_s3 + $0x50] sm:$0xff]   ;;  %v4457_v53 = vld [vmem:[%s4675_s21 + $0x58] ss:$20 sps:$4 sm:$0xff]  }
 0x15a   : > { %v1793_v18 = vpop.f32.mrf.mxu0  ;;  %3865 = vmatpush3.bf16.msra.mxu0 %v4431_v46  ;;  %v4458_v45 = vld [vmem:[%s4675_s21 + $0x84] ss:$20 sps:$4 sm:$0xff]  }
 0x15b   : > { %6465 = vst [vmem:[#allocation9_spill] sm:$0xff] %v5448_v37  ;;  %v1986_v23 = vpop.f32.mrf.mxu1  ;;  %3977 = vmatpush3.bf16.msra.mxu1 %v4443_v2  ;;  %v5454_v50 = vadd.f32 %v1984_v57, %v1792_v27  ;;  %v1794_v39 = vadd.f32 %v1793_v18, %v5212_v9  ;;  %3866 = vmatprep.subr.bf16.mxu0 %v4434_v59  ;;  %v4444_v18 = vld [vmem:[%s6450_s3 + $0xd8] sm:$0xff]  }
 0x15c   : > { %v1797_v8 = vpop.f32.mrf.mxu0  ;;  %2488 = vmatmul.mubr.bf16.gmra.mxu0 %v4457_v53  ;;  %v4445_v59 = vld [vmem:[%s6450_s3 + $0x98] sm:$0xff]   ;;  %3978 = vmatprep.subr.bf16.mxu1 %v4444_v18 }
 0x15d   : > { %v1990_v24 = vpop.f32.mrf.mxu1  ;;  %3809 = vmatmul.mubr.msk.bf16.gmra.mxu1 %vm1614_vm0, %v5084_v15  ;;  %v5463_v46 = vadd.f32 %v1986_v23, %v1794_v39  ;;  %v1798_v2 = vadd.f32 %v1797_v8, %v5210_v4  ;;  %2497 = vmatprep.mubr.bf16.mxu0 %v4458_v45  ;;  %v4437_v15 = vld [vmem:[%s6450_s3 + $0x10] sm:$0xff]   ;;  %v4438_v8 = vld [vmem:[%s6450_s3 + $0x48] sm:$0xff]  }
 0x15e   : > { %2690 = vmatprep.mubr.bf16.mxu1 %v6464_v32  ;;  %v1799_v57 = vpop.f32.mrf.mxu0  ;;  %3867 = vmatpush3.bf16.msra.mxu0 %v4435_v49 }
 0x15f   : > { %6466 = vst [vmem:[#allocation10_spill] sm:$0xff] %v5463_v46  ;;  %v1992_v27 = vpop.f32.mrf.mxu1  ;;  %v5477_v23 = vadd.f32 %v1990_v24, %v1798_v2  ;;  %v1800_v39 = vadd.f32 %v1799_v57, %v5212_v9  ;;  %3868 = vmatprep.subr.bf16.mxu0 %v4436_v38  ;;  %3979 = vmatpush3.bf16.msra.mxu1 %v4445_v59  ;;  %v4439_v38 = vld [vmem:[%s6450_s3 + $0x8] sm:$0xff]   ;;  %v4440_v59 = vld [vmem:[%s6450_s3 + $0x40] sm:$0xff]  }
 0x160   : > { %v1801_v53 = vpop.f32.mrf.mxu0 }
 0x161   : > { %6467 = vst [vmem:[#allocation11_spill] sm:$0xff] %v5477_v23  ;;  %v1994_v45 = vpop.f32.mrf.mxu1  ;;  %v5483_v46 = vadd.f32 %v1992_v27, %v1800_v39  ;;  %v1802_v49 = vadd.f32 %v1801_v53, %v5210_v4  ;;  %v4459_v39 = vld [vmem:[%s4675_s21 + $0x80] ss:$20 sps:$4 sm:$0xff]  }
 0x162   : > { %v1803_v37 = vpop.f32.mrf.mxu0  ;;  %3869 = vmatpush3.bf16.msra.mxu0 %v4437_v15 }
 0x163   : > { %6468 = vst [vmem:[#allocation12_spill] sm:$0xff] %v5483_v46  ;;  %v1996_v24 = vpop.f32.mrf.mxu1  ;;  %v5489_v2 = vadd.f32 %v1994_v45, %v1802_v49  ;;  %v1804_v18 = vadd.f32 %v1803_v37, %v5212_v9  ;;  %3870 = vmatprep.subr.bf16.mxu0 %v4438_v8  ;;  %v4460_v45 = vld [vmem:[%s4675_s21 + $0xac] ss:$20 sps:$4 sm:$0xff]  }
 0x164   : > { %v1807_v57 = vpop.f32.mrf.mxu0  ;;  %2498 = vmatmul.mubr.bf16.gmra.mxu0 %v4459_v39  ;;  %v4441_v49 = vld [vmem:[%s6450_s3] sm:$0xff]  }
 0x165   : > { %6469 = vst [vmem:[#allocation13_spill] sm:$0xff] %v5489_v2  ;;  %v2000_v27 = vpop.f32.mrf.mxu1  ;;  %3810 = vmatmul.mubr.msk.bf16.gmra.mxu1 %vm1614_vm0, %v5104_v20  ;;  %v5498_v15 = vadd.f32 %v1996_v24, %v1804_v18  ;;  %v1808_v53 = vadd.f32 %v1807_v57, %v5210_v4  ;;  %2507 = vmatprep.mubr.bf16.mxu0 %v4460_v45 }
 0x166   : > { %2700 = vmatprep.mubr.bf16.mxu1 %v6464_v32  ;;  %v1809_v37 = vpop.f32.mrf.mxu0  ;;  %3871 = vmatpush3.bf16.msra.mxu0 %v4439_v38 }
 0x167   : > { %6470 = vst [vmem:[#allocation14_spill] sm:$0xff] %v5498_v15  ;;  %v2002_v8 = vpop.f32.mrf.mxu1  ;;  %v5506_v39 = vadd.f32 %v2000_v27, %v1808_v53  ;;  %v1810_v20 = vadd.f32 %v1809_v37, %v5212_v9  ;;  %3872 = vmatprep.subr.bf16.mxu0 %v4440_v59  ;;  %v4461_v53 = vld [vmem:[%s4675_s21 + $0xa8] ss:$20 sps:$4 sm:$0xff]  }
 0x168   : > { %v1811_v24 = vpop.f32.mrf.mxu0 }
 0x169   : > { %v2004_v18 = vpop.f32.mrf.mxu1  ;;  %v5509_v57 = vadd.f32 %v2002_v8, %v1810_v20  ;;  %v1812_v45 = vadd.f32 %v1811_v24, %v5210_v4  ;;  %v4462_v8 = vld [vmem:[%s4675_s21 + $0xd4] ss:$20 sps:$4 sm:$0xff]  }
 0x16a   : > { %v1813_v15 = vpop.f32.mrf.mxu0  ;;  %3873 = vmatpush3.bf16.msra.mxu0 %v4441_v49  ;;  %v4446_v49 = vld [vmem:[%s6450_s3 + $0xd0] sm:$0xff]  }
 0x16b   : > { %6471 = vst [vmem:[#allocation15_spill] sm:$0xff] %v5509_v57  ;;  %v2006_v46 = vpop.f32.mrf.mxu1  ;;  %v5512_v38 = vadd.f32 %v2004_v18, %v1812_v45  ;;  %v1814_v2 = vadd.f32 %v1813_v15, %v5212_v9  ;;  %v4447_v15 = vld [vmem:[%s6450_s3 + $0x90] sm:$0xff]   ;;  %3980 = vmatprep.subr.bf16.mxu1 %v4446_v49 }
 0x16c   : > { %v1817_v23 = vpop.f32.mrf.mxu0  ;;  %2508 = vmatmul.mubr.bf16.gmra.mxu0 %v4461_v53  ;;  %3981 = vmatpush3.bf16.msra.mxu1 %v4447_v15 }
 0x16d   : > { %6472 = vst [vmem:[#allocation16_spill] sm:$0xff] %v5512_v38  ;;  %v2010_v27 = vpop.f32.mrf.mxu1  ;;  %3811 = vmatmul.mubr.msk.bf16.gmra.mxu1 %vm1614_vm0, %v5124_v28  ;;  %v5518_v59 = vadd.f32 %v2006_v46, %v1814_v2  ;;  %v1818_v37 = vadd.f32 %v1817_v23, %v5210_v4  ;;  %2517 = vmatprep.mubr.bf16.mxu0 %v4462_v8 }
 0x16e   : > { %2710 = vmatprep.mubr.bf16.mxu1 %v6464_v32  ;;  %v1819_v20 = vpop.f32.mrf.mxu0 }
 0x16f   : > { %6473 = vst [vmem:[#allocation17_spill] sm:$0xff] %v5518_v59  ;;  %v2012_v24 = vpop.f32.mrf.mxu1  ;;  %v5529_v28 = vadd.f32 %v2010_v27, %v1818_v37  ;;  %v1820_v46 = vadd.f32 %v1819_v20, %v5212_v9  ;;  %v4463_v37 = vld [vmem:[%s4675_s21 + $0xd0] ss:$20 sps:$4 sm:$0xff]  }
 0x170   : > { %v1821_v23 = vpop.f32.mrf.mxu0  ;;  %v4464_v20 = vld [vmem:[%s4675_s21 + $0xfc] ss:$20 sps:$4 sm:$0xff]  }
 0x171   : > { %v2014_v2 = vpop.f32.mrf.mxu1  ;;  %v5532_v18 = vadd.f32 %v2012_v24, %v1820_v46  ;;  %v1822_v45 = vadd.f32 %v1821_v23, %v5210_v4 }
 0x172   : > { %v1823_v53 = vpop.f32.mrf.mxu0 }
 0x173   : > { %6474 = vst [vmem:[#allocation18_spill] sm:$0xff] %v5532_v18  ;;  %v2016_v8 = vpop.f32.mrf.mxu1  ;;  %v5535_v59 = vadd.f32 %v2014_v2, %v1822_v45  ;;  %v1824_v57 = vadd.f32 %v1823_v53, %v5212_v9 }
 0x174   : > { %v1827_v38 = vpop.f32.mrf.mxu0  ;;  %2518 = vmatmul.mubr.bf16.gmra.mxu0 %v4463_v37 }
 0x175   : > { %6475 = vst [vmem:[#allocation19_spill] sm:$0xff] %v5535_v59  ;;  %v2020_v27 = vpop.f32.mrf.mxu1  ;;  %3812 = vmatmul.mubr.msk.bf16.gmra.mxu1 %vm1614_vm0, %v5144_v36  ;;  %v5541_v49 = vadd.f32 %v2016_v8, %v1824_v57  ;;  %v1828_v15 = vadd.f32 %v1827_v38, %v5210_v4  ;;  %2527 = vmatprep.mubr.bf16.mxu0 %v4464_v20  ;;  %v4465_v59 = vld [vmem:[%s4675_s21 + $0xf8] ss:$20 sps:$4 sm:$0xff]  }
 0x176   : > { %2720 = vmatprep.mubr.bf16.mxu1 %v6464_v32  ;;  %v1829_v24 = vpop.f32.mrf.mxu0 }
 0x177   : > { %6476 = vst [vmem:[#allocation20_spill] sm:$0xff] %v5541_v49  ;;  %v2022_v46 = vpop.f32.mrf.mxu1  ;;  %v5546_v23 = vadd.f32 %v2020_v27, %v1828_v15  ;;  %v1830_v2 = vadd.f32 %v1829_v24, %v5212_v9  ;;  %v4466_v24 = vld [vmem:[%s4675_s21 + $0x124] ss:$20 sps:$4 sm:$0xff]  }
 0x178   : > { %v1831_v45 = vpop.f32.mrf.mxu0 }
 0x179   : > { %v2024_v53 = vpop.f32.mrf.mxu1  ;;  %v5549_v37 = vadd.f32 %v2022_v46, %v1830_v2  ;;  %v1832_v36 = vadd.f32 %v1831_v45, %v5210_v4  ;;  %v4448_v46 = vld [vmem:[%s6450_s3 + $0xc8] sm:$0xff]  }
 0x17a   : > { %v1833_v57 = vpop.f32.mrf.mxu0  ;;  %v4449_v2 = vld [vmem:[%s6450_s3 + $0x88] sm:$0xff]   ;;  %3982 = vmatprep.subr.bf16.mxu1 %v4448_v46 }
 0x17b   : > { %6477 = vst [vmem:[#allocation21_spill] sm:$0xff] %v5549_v37  ;;  %v2026_v38 = vpop.f32.mrf.mxu1  ;;  %v5552_v8 = vadd.f32 %v2024_v53, %v1832_v36  ;;  %v1834_v20 = vadd.f32 %v1833_v57, %v5212_v9  ;;  %3983 = vmatpush3.bf16.msra.mxu1 %v4449_v2 }
 0x17c   : > { %v1837_v49 = vpop.f32.mrf.mxu0  ;;  %2528 = vmatmul.mubr.bf16.gmra.mxu0 %v4465_v59 }
 0x17d   : > { %6478 = vst [vmem:[#allocation22_spill] sm:$0xff] %v5552_v8  ;;  %v2030_v18 = vpop.f32.mrf.mxu1  ;;  %3813 = vmatmul.mubr.msk.bf16.gmra.mxu1 %vm1614_vm0, %v5164_v44  ;;  %v5558_v27 = vadd.f32 %v2026_v38, %v1834_v20  ;;  %v1838_v15 = vadd.f32 %v1837_v49, %v5210_v4  ;;  %2537 = vmatprep.mubr.bf16.mxu0 %v4466_v24 }
 0x17e   : > { %2730 = vmatprep.mubr.bf16.mxu1 %v6464_v32  ;;  %v1839_v59 = vpop.f32.mrf.mxu0 }
 0x17f   : > { %6479 = vst [vmem:[#allocation23_spill] sm:$0xff] %v5558_v27  ;;  %v2032_v45 = vpop.f32.mrf.mxu1  ;;  %v5569_v44 = vadd.f32 %v2030_v18, %v1838_v15  ;;  %v1840_v53 = vadd.f32 %v1839_v59, %v5212_v9  ;;  %v4467_v15 = vld [vmem:[%s4675_s21 + $0x120] ss:$20 sps:$4 sm:$0xff]  }
 0x180   : > { %v1841_v49 = vpop.f32.mrf.mxu0  ;;  %v4468_v59 = vld [vmem:[%s4675_s21 + $0x14c] ss:$20 sps:$4 sm:$0xff]  }
 0x181   : > { %v2034_v36 = vpop.f32.mrf.mxu1  ;;  %v5572_v57 = vadd.f32 %v2032_v45, %v1840_v53  ;;  %v1842_v38 = vadd.f32 %v1841_v49, %v5210_v4 }
 0x182   : > { %v1843_v20 = vpop.f32.mrf.mxu0 }
 0x183   : > { %6480 = vst [vmem:[#allocation24_spill] sm:$0xff] %v5572_v57  ;;  %v2036_v24 = vpop.f32.mrf.mxu1  ;;  %v5575_v27 = vadd.f32 %v2034_v36, %v1842_v38  ;;  %v1844_v37 = vadd.f32 %v1843_v20, %v5212_v9 }
 0x184   : > { %v1847_v8 = vpop.f32.mrf.mxu0  ;;  %2538 = vmatmul.mubr.bf16.gmra.mxu0 %v4467_v15 }
 0x185   : > { %v2040_v18 = vpop.f32.mrf.mxu1  ;;  %3814 = vmatmul.mubr.msk.bf16.gmra.mxu1 %vm1614_vm0, %v5184_v55  ;;  %v5581_v46 = vadd.f32 %v2036_v24, %v1844_v37  ;;  %v1848_v2 = vadd.f32 %v1847_v8, %v5210_v4  ;;  %2547 = vmatprep.mubr.bf16.mxu0 %v4468_v59 }
 0x186   : > { %2740 = vmatprep.mubr.bf16.mxu1 %v6464_v32  ;;  %v1849_v45 = vpop.f32.mrf.mxu0 }
 0x187   : > { %6481 = vst [vmem:[#allocation25_spill] sm:$0xff] %v5581_v46  ;;  %v2042_v53 = vpop.f32.mrf.mxu1  ;;  %v5586_v49 = vadd.f32 %v2040_v18, %v1848_v2  ;;  %v1850_v36 = vadd.f32 %v1849_v45, %v5212_v9  ;;  %v4469_v18 = vld [vmem:[%s4675_s21 + $0x148] ss:$20 sps:$4 sm:$0xff]  }
 0x188   : > { %v1851_v38 = vpop.f32.mrf.mxu0  ;;  %v4470_v45 = vld [vmem:[%s4675_s21 + $0x174] ss:$20 sps:$4 sm:$0xff]  }
 0x189   : > { %v2044_v20 = vpop.f32.mrf.mxu1  ;;  %v5589_v15 = vadd.f32 %v2042_v53, %v1850_v36  ;;  %v1852_v55 = vadd.f32 %v1851_v38, %v5210_v4  ;;  %v4450_v4 = vld [vmem:[%s6450_s3 + $0xc0] sm:$0xff]  }
 0x18a   : > { %v1853_v37 = vpop.f32.mrf.mxu0  ;;  %3984 = vmatprep.subr.bf16.mxu1 %v4450_v4 }
 0x18b   : > { %v2046_v8 = vpop.f32.mrf.mxu1  ;;  %v5592_v24 = vadd.f32 %v2044_v20, %v1852_v55  ;;  %v1854_v59 = vadd.f32 %v1853_v37, %v5212_v9  ;;  %v4451_v9 = vld [vmem:[%s6450_s3 + $0x80] sm:$0xff]  }
 0x18c   : > { %v2083_v46 = vpop.f32.mrf.mxu0  ;;  %2548 = vmatmul.mubr.bf16.gmra.mxu0 %v4469_v18  ;;  %3985 = vmatpush3.bf16.msra.mxu1 %v4451_v9 }
 0x18d   : > { %v5595_v57 = vpop.f32.mrf.mxu1  ;;  %3815 = vmatmul.mubr.msk.bf16.gmra.mxu1 %vm1614_vm0, %v5208_v0  ;;  %v5600_v2 = vadd.f32 %v2046_v8, %v1854_v59  ;;  %2557 = vmatprep.mubr.bf16.mxu0 %v4470_v45  ;;  %v5615_v20 = vadd.f32 %v2083_v46, %v5220_v7  ;;  %v4471_v7 = vld [vmem:[%s4675_s21 + $0x170] ss:$20 sps:$4 sm:$0xff]  }
 0x18e   : > { %2750 = vmatprep.mubr.bf16.mxu1 %v6464_v32  ;;  %v2085_v53 = vpop.f32.mrf.mxu0  ;;  %v4472_v46 = vld [vmem:[%s4675_s21 + $0x19c] ss:$20 sps:$4 sm:$0xff]  }
 0x18f   : > { %v5610_v36 = vpop.f32.mrf.mxu1  ;;  %v5623_v59 = vadd.f32 %v2085_v53, %v5226_v14 }
 0x190   : > { %v2087_v0 = vpop.f32.mrf.mxu0 }
 0x191   : > { %v5612_v38 = vpop.f32.mrf.mxu1  ;;  %v5618_v55 = vadd.f32 %v2087_v0, %v5229_v21 }
 0x192   : > { %v2089_v37 = vpop.f32.mrf.mxu0 }
 0x193   : > { %v5620_v8 = vpop.f32.mrf.mxu1  ;;  %v5628_v45 = vadd.f32 %v2089_v37, %v5235_v26 }
 0x194   : > { %v2093_v4 = vpop.f32.mrf.mxu0  ;;  %2558 = vmatmul.mubr.bf16.gmra.mxu0 %v4471_v7 }
 0x195   : > { %v5630_v9 = vpop.f32.mrf.mxu1  ;;  %3816 = vmatmul.mubr.msk.bf16.gmra.mxu1 %vm1614_vm0, %v5224_v17  ;;  %2567 = vmatprep.mubr.bf16.mxu0 %v4472_v46  ;;  %v5644_v37 = vadd.f32 %v2093_v4, %v5240_v33  ;;  %v4473_v33 = vld [vmem:[%s4675_s21 + $0x198] ss:$20 sps:$4 sm:$0xff]  }
 0x196   : > { %6482 = vst [vmem:[#allocation26_spill] sm:$0xff] %v5630_v9  ;;  %2760 = vmatprep.mubr.bf16.mxu1 %v6464_v32  ;;  %v2095_v14 = vpop.f32.mrf.mxu0  ;;  %v4474_v4 = vld [vmem:[%s4675_s21 + $0x1c4] ss:$20 sps:$4 sm:$0xff]  }
 0x197   : > { %v5639_v53 = vpop.f32.mrf.mxu1  ;;  %v5652_v46 = vadd.f32 %v2095_v14, %v5246_v51 }
 0x198   : > { %6483 = vst [vmem:[#allocation27_spill] sm:$0xff] %v5639_v53  ;;  %v2097_v26 = vpop.f32.mrf.mxu0 }
 0x199   : > { %v5641_v0 = vpop.f32.mrf.mxu1  ;;  %v5647_v17 = vadd.f32 %v2097_v26, %v5249_v48 }
 0x19a   : > { %6484 = vst [vmem:[#allocation28_spill] sm:$0xff] %v5641_v0  ;;  %v2099_v7 = vpop.f32.mrf.mxu0 }
 0x19b   : > { %v5649_v18 = vpop.f32.mrf.mxu1  ;;  %v5657_v53 = vadd.f32 %v2099_v7, %v5258_v60 }
 0x19c   : > { %v2103_v9 = vpop.f32.mrf.mxu0  ;;  %2568 = vmatmul.mubr.bf16.gmra.mxu0 %v4473_v33 }
 0x19d   : > { %v5659_v0 = vpop.f32.mrf.mxu1  ;;  %3817 = vmatmul.mubr.msk.bf16.gmra.mxu1 %vm1614_vm0, %v5244_v41  ;;  %2577 = vmatprep.mubr.bf16.mxu0 %v4474_v4  ;;  %v5673_v7 = vadd.f32 %v2103_v9, %v5266_v3  ;;  %v4475_v3 = vld [vmem:[%s4675_s21 + $0x1c0] ss:$20 sps:$4 sm:$0xff]  }
 0x19e   : > { %6485 = vst [vmem:[#allocation29_spill] sm:$0xff] %v5659_v0  ;;  %2770 = vmatprep.mubr.bf16.mxu1 %v6464_v32  ;;  %v2105_v51 = vpop.f32.mrf.mxu0  ;;  %v4476_v9 = vld [vmem:[%s4675_s21 + $0x1ec] ss:$20 sps:$4 sm:$0xff]  }
 0x19f   : > { %v5668_v14 = vpop.f32.mrf.mxu1  ;;  %v5681_v4 = vadd.f32 %v2105_v51, %v5272_v10 }
 0x1a0   : > { %6486 = vst [vmem:[#allocation30_spill] sm:$0xff] %v5668_v14  ;;  %v2107_v60 = vpop.f32.mrf.mxu0 }
 0x1a1   : > { %v5670_v26 = vpop.f32.mrf.mxu1  ;;  %v5676_v41 = vadd.f32 %v2107_v60, %v5275_v13 }
 0x1a2   : > { %6487 = vst [vmem:[#allocation31_spill] sm:$0xff] %v5670_v26  ;;  %v2109_v33 = vpop.f32.mrf.mxu0 }
 0x1a3   : > { %v5678_v21 = vpop.f32.mrf.mxu1  ;;  %v5686_v14 = vadd.f32 %v2109_v33, %v5281_v25 }
 0x1a4   : > { %v2113_v0 = vpop.f32.mrf.mxu0  ;;  %2578 = vmatmul.mubr.bf16.gmra.mxu0 %v4475_v3 }
 0x1a5   : > { %v5688_v26 = vpop.f32.mrf.mxu1  ;;  %3818 = vmatmul.mubr.msk.bf16.gmra.mxu1 %vm1614_vm0, %v5270_v6  ;;  %2587 = vmatprep.mubr.bf16.mxu0 %v4476_v9  ;;  %v5702_v33 = vadd.f32 %v2113_v0, %v5286_v30  ;;  %v4477_v30 = vld [vmem:[%s4675_s21 + $0x1e8] ss:$20 sps:$4 sm:$0xff]  }
 0x1a6   : > { %6488 = vst [vmem:[#allocation32_spill] sm:$0xff] %v5688_v26  ;;  %2780 = vmatprep.mubr.bf16.mxu1 %v6464_v32  ;;  %v2115_v10 = vpop.f32.mrf.mxu0  ;;  %v4478_v0 = vld [vmem:[%s4675_s21 + $0x214] ss:$20 sps:$4 sm:$0xff]  }
 0x1a7   : > { %v5697_v51 = vpop.f32.mrf.mxu1  ;;  %v5710_v9 = vadd.f32 %v2115_v10, %v5292_v54 }
 0x1a8   : > { %6489 = vst [vmem:[#allocation33_spill] sm:$0xff] %v5697_v51  ;;  %v2117_v25 = vpop.f32.mrf.mxu0 }
 0x1a9   : > { %v5699_v60 = vpop.f32.mrf.mxu1  ;;  %v5705_v6 = vadd.f32 %v2117_v25, %v5295_v52 }
 0x1aa   : > { %6490 = vst [vmem:[#allocation34_spill] sm:$0xff] %v5699_v60  ;;  %v2119_v3 = vpop.f32.mrf.mxu0 }
 0x1ab   : > { %v5707_v48 = vpop.f32.mrf.mxu1  ;;  %v5715_v51 = vadd.f32 %v2119_v3, %v5301_v61 }
 0x1ac   : > { %v2123_v26 = vpop.f32.mrf.mxu0  ;;  %2588 = vmatmul.mubr.bf16.gmra.mxu0 %v4477_v30 }
 0x1ad   : > { %v5717_v60 = vpop.f32.mrf.mxu1  ;;  %3819 = vmatmul.mubr.msk.bf16.gmra.mxu1 %vm1614_vm0, %v5290_v22  ;;  %2597 = vmatprep.mubr.bf16.mxu0 %v4478_v0  ;;  %v5731_v3 = vadd.f32 %v2123_v26, %v5306_v5  ;;  %v4479_v5 = vld [vmem:[%s4675_s21 + $0x210] ss:$20 sps:$4 sm:$0xff]  }
 0x1ae   : > { %6491 = vst [vmem:[#allocation35_spill] sm:$0xff] %v5717_v60  ;;  %2790 = vmatprep.mubr.bf16.mxu1 %v6464_v32  ;;  %v2125_v54 = vpop.f32.mrf.mxu0  ;;  %v4480_v26 = vld [vmem:[%s4675_s21 + $0x23c] ss:$20 sps:$4 sm:$0xff]  }
 0x1af   : > { %v5726_v10 = vpop.f32.mrf.mxu1  ;;  %v5739_v0 = vadd.f32 %v2125_v54, %v5312_v12 }
 0x1b0   : > { %6492 = vst [vmem:[#allocation36_spill] sm:$0xff] %v5726_v10  ;;  %v2127_v61 = vpop.f32.mrf.mxu0 }
 0x1b1   : > { %v5728_v25 = vpop.f32.mrf.mxu1  ;;  %v5734_v22 = vadd.f32 %v2127_v61, %v5315_v19 }
 0x1b2   : > { %6493 = vst [vmem:[#allocation37_spill] sm:$0xff] %v5728_v25  ;;  %v2129_v30 = vpop.f32.mrf.mxu0 }
 0x1b3   : > { %v5736_v13 = vpop.f32.mrf.mxu1  ;;  %v5744_v10 = vadd.f32 %v2129_v30, %v5321_v35 }
 0x1b4   : > { %v2133_v60 = vpop.f32.mrf.mxu0  ;;  %2598 = vmatmul.mubr.bf16.gmra.mxu0 %v4479_v5 }
 0x1b5   : > { %v5746_v25 = vpop.f32.mrf.mxu1  ;;  %3820 = vmatmul.mubr.msk.bf16.gmra.mxu1 %vm1614_vm0, %v5310_v11  ;;  %2607 = vmatprep.mubr.bf16.mxu0 %v4480_v26  ;;  %v5760_v30 = vadd.f32 %v2133_v60, %v5326_v31  ;;  %v4481_v31 = vld [vmem:[%s4675_s21 + $0x238] ss:$20 sps:$4 sm:$0xff]  }
 0x1b6   : > { %6494 = vst [vmem:[#allocation38_spill] sm:$0xff] %v5746_v25  ;;  %2800 = vmatprep.mubr.bf16.mxu1 %v6464_v32  ;;  %v2135_v12 = vpop.f32.mrf.mxu0  ;;  %v4482_v60 = vld [vmem:[%s4675_s21 + $0x264] ss:$20 sps:$4 sm:$0xff]  }
 0x1b7   : > { %v5755_v54 = vpop.f32.mrf.mxu1  ;;  %v5768_v26 = vadd.f32 %v2135_v12, %v5332_v62 }
 0x1b8   : > { %6495 = vst [vmem:[#allocation39_spill] sm:$0xff] %v5755_v54  ;;  %v2137_v35 = vpop.f32.mrf.mxu0 }
 0x1b9   : > { %v5757_v61 = vpop.f32.mrf.mxu1  ;;  %v5763_v11 = vadd.f32 %v2137_v35, %v5335_v1 }
 0x1ba   : > { %6496 = vst [vmem:[#allocation40_spill] sm:$0xff] %v5757_v61  ;;  %v2139_v5 = vpop.f32.mrf.mxu0 }
 0x1bb   : > { %v5765_v52 = vpop.f32.mrf.mxu1  ;;  %v5773_v54 = vadd.f32 %v2139_v5, %v5341_v29 }
 0x1bc   : > { %v2143_v25 = vpop.f32.mrf.mxu0  ;;  %2608 = vmatmul.mubr.bf16.gmra.mxu0 %v4481_v31 }
 0x1bd   : > { %v5775_v61 = vpop.f32.mrf.mxu1  ;;  %3821 = vmatmul.mubr.msk.bf16.gmra.mxu1 %vm1614_vm0, %v5330_v58  ;;  %2617 = vmatprep.mubr.bf16.mxu0 %v4482_v60  ;;  %v5789_v5 = vadd.f32 %v2143_v25, %v5346_v40  ;;  %v4483_v40 = vld [vmem:[%s4675_s21 + $0x260] ss:$20 sps:$4 sm:$0xff]  }
 0x1be   : > { %2810 = vmatprep.mubr.bf16.mxu1 %v6464_v32  ;;  %v2145_v62 = vpop.f32.mrf.mxu0 }
 0x1bf   : > { %v5784_v12 = vpop.f32.mrf.mxu1  ;;  %v5797_v1 = vadd.f32 %v2145_v62, %v5352_v47  ;;  %v6500_v47 = vpack.c.bf16 %v5628_v45, %v5623_v59  ;;  %v6505_v45 = vld [vmem:[#allocation4_spill] sm:$0xff] }
 0x1c0   : > { %6497 = vst [vmem:[#allocation41_spill] sm:$0xff] %v5784_v12  ;;  %v2147_v29 = vpop.f32.mrf.mxu0 }
 0x1c1   : > { %v5786_v35 = vpop.f32.mrf.mxu1  ;;  %v5792_v31 = vadd.f32 %v2147_v29, %v5355_v34  ;;  %v6504_v34 = vld [vmem:[#allocation3_spill] sm:$0xff] }
 0x1c2   : > { %6498 = vst [vmem:[#allocation42_spill] sm:$0xff] %v5786_v35  ;;  %v2149_v58 = vpop.f32.mrf.mxu0 }
 0x1c3   : > { %v5794_v19 = vpop.f32.mrf.mxu1  ;;  %v5802_v60 = vadd.f32 %v2149_v58, %v5361_v63 }
 0x1c4   : > { %v2153_v12 = vpop.f32.mrf.mxu0  ;;  %2618 = vmatmul.mubr.bf16.gmra.mxu0 %v4483_v40 }
 0x1c5   : > { %v5804_v35 = vpop.f32.mrf.mxu1  ;;  %3822 = vmatmul.mubr.msk.bf16.gmra.mxu1 %vm1614_vm0, %v5350_v43  ;;  %3180 = vmatprep.mubr.bf16.mxu0 %v6500_v47  ;;  %v5819_v58 = vadd.f32 %v2153_v12, %v5366_v16  ;;  %v6507_v16 = vpack.c.bf16 %v5618_v55, %v5615_v20  ;;  %v6508_v12 = vpack.c.bf16 %v5657_v53, %v5652_v46  ;;  %v6514_v46 = vld [vmem:[#allocation8_spill] sm:$0xff] }
 0x1c6   : > { %6499 = vst [vmem:[#allocation43_spill] sm:$0xff] %v5804_v35  ;;  %v2155_v25 = vpop.f32.mrf.mxu0 }
 0x1c7   : > { %v5814_v62 = vpop.f32.mrf.mxu1  ;;  %v5827_v35 = vadd.f32 %v2155_v25, %v6504_v34 }
 0x1c8   : > { %6501 = vst [vmem:[#allocation44_spill] sm:$0xff] %v5814_v62  ;;  %v2157_v63 = vpop.f32.mrf.mxu0 }
 0x1c9   : > { %v5816_v29 = vpop.f32.mrf.mxu1  ;;  %v5822_v40 = vadd.f32 %v2157_v63, %v5378_v42 }
 0x1ca   : > { %6502 = vst [vmem:[#allocation45_spill] sm:$0xff] %v5816_v29  ;;  %v2159_v43 = vpop.f32.mrf.mxu0 }
 0x1cb   : > { %v5824_v32 = vpop.f32.mrf.mxu1  ;;  %v5832_v47 = vadd.f32 %v2159_v43, %v6505_v45  ;;  %v6511_v45 = vld [vmem:[#allocation5_spill] sm:$0xff] }
 0x1cc   : > { %6503 = vst [vmem:[#allocation46_spill] sm:$0xff] %v5824_v32  ;;  %v2163_v62 = vpop.f32.mrf.mxu0  ;;  %3181 = vmatmul.mubr.bf16.vlgmr.msra.gmra.mxu0 %v6507_v16  ;;  %v6513_v16 = vld [vmem:[#allocation6_spill] sm:$0xff] }
 0x1cd   : > { %v5834_v29 = vpop.f32.mrf.mxu1  ;;  %3188 = vmatprep.mubr.bf16.mxu0 %v6508_v12  ;;  %v5849_v59 = vadd.f32 %v2163_v62, %v6511_v45  ;;  %v6515_v62 = vpack.c.bf16 %v5647_v17, %v5644_v37 }
 0x1ce   : > { %6506 = vst [vmem:[#allocation3_spill] sm:$0xff] %v5834_v29  ;;  %v2165_v34 = vpop.f32.mrf.mxu0  ;;  %v6512_v29 = vld [vmem:[#allocation7_spill] sm:$0xff] }
 0x1cf   : > { %v5844_v25 = vpop.f32.mrf.mxu1  ;;  %v5857_v42 = vadd.f32 %v2165_v34, %v6513_v16  ;;  %v6516_v34 = vpack.c.bf16 %v5686_v14, %v5681_v4  ;;  %v6521_v4 = vld [vmem:[#allocation10_spill] sm:$0xff] }
 0x1d0   : > { %6509 = vst [vmem:[#allocation4_spill] sm:$0xff] %v5844_v25  ;;  %v2167_v63 = vpop.f32.mrf.mxu0 }
 0x1d1   : > { %v5846_v43 = vpop.f32.mrf.mxu1  ;;  %v5852_v32 = vadd.f32 %v2167_v63, %v6512_v29 }
 0x1d2   : > { %6510 = vst [vmem:[#allocation47_spill] sm:$0xff] %v5846_v43  ;;  %v2169_v20 = vpop.f32.mrf.mxu0 }
 0x1d3   : > { %v5854_v55 = vpop.f32.mrf.mxu1  ;;  %v5862_v12 = vadd.f32 %v2169_v20, %v6514_v46 }
 0x1d4   : > { %v2173_v25 = vpop.f32.mrf.mxu0  ;;  %3189 = vmatmul.mubr.bf16.gmra.mxu0 %v6515_v62  ;;  %v6520_v62 = vld [vmem:[#allocation9_spill] sm:$0xff] }
 0x1d5   : > { %v5864_v43 = vpop.f32.mrf.mxu1  ;;  %3196 = vmatprep.mubr.bf16.mxu0 %v6516_v34  ;;  %v5879_v46 = vadd.f32 %v2173_v25, %v5442_v56  ;;  %v6523_v56 = vpack.c.bf16 %v5676_v41, %v5673_v7  ;;  %v6524_v25 = vpack.c.bf16 %v5715_v51, %v5710_v9  ;;  %v6530_v9 = vld [vmem:[#allocation14_spill] sm:$0xff]  ;;  %v6536_v51 = vld [vmem:[#allocation16_spill] sm:$0xff] }
 0x1d6   : > { %v2175_v63 = vpop.f32.mrf.mxu0 }
 0x1d7   : > { %v5874_v45 = vpop.f32.mrf.mxu1  ;;  %v5887_v29 = vadd.f32 %v2175_v63, %v6520_v62 }
 0x1d8   : > { %6517 = vst [vmem:[#allocation5_spill] sm:$0xff] %v5874_v45  ;;  %v2177_v16 = vpop.f32.mrf.mxu0 }
 0x1d9   : > { %v5876_v20 = vpop.f32.mrf.mxu1  ;;  %v5882_v53 = vadd.f32 %v2177_v16, %v5454_v50 }
 0x1da   : > { %6518 = vst [vmem:[#allocation7_spill] sm:$0xff] %v5876_v20  ;;  %v2179_v37 = vpop.f32.mrf.mxu0 }
 0x1db   : > { %v5884_v17 = vpop.f32.mrf.mxu1  ;;  %v5892_v34 = vadd.f32 %v2179_v37, %v6521_v4  ;;  %v6527_v4 = vld [vmem:[#allocation11_spill] sm:$0xff] }
 0x1dc   : > { %6519 = vst [vmem:[#allocation6_spill] sm:$0xff] %v5884_v17  ;;  %v2183_v45 = vpop.f32.mrf.mxu0  ;;  %3197 = vmatmul.mubr.bf16.gmra.mxu0 %v6523_v56  ;;  %v6529_v56 = vld [vmem:[#allocation12_spill] sm:$0xff] }
 0x1dd   : > { %v5894_v20 = vpop.f32.mrf.mxu1  ;;  %3204 = vmatprep.mubr.bf16.mxu0 %v6524_v25  ;;  %v5909_v14 = vadd.f32 %v2183_v45, %v6527_v4  ;;  %v6532_v45 = vpack.c.bf16 %v5705_v6, %v5702_v33 }
 0x1de   : > { %6522 = vst [vmem:[#allocation8_spill] sm:$0xff] %v5894_v20  ;;  %v2185_v63 = vpop.f32.mrf.mxu0  ;;  %v6528_v20 = vld [vmem:[#allocation13_spill] sm:$0xff] }
 0x1df   : > { %v5904_v16 = vpop.f32.mrf.mxu1  ;;  %v5917_v50 = vadd.f32 %v2185_v63, %v6529_v56  ;;  %v6533_v63 = vpack.c.bf16 %v5744_v10, %v5739_v0  ;;  %v6538_v0 = vld [vmem:[#allocation17_spill] sm:$0xff]  ;;  %v6544_v10 = vld [vmem:[#allocation19_spill] sm:$0xff] }
 0x1e0   : > { %6525 = vst [vmem:[#allocation9_spill] sm:$0xff] %v5904_v16  ;;  %v2187_v62 = vpop.f32.mrf.mxu0 }
 0x1e1   : > { %v5906_v37 = vpop.f32.mrf.mxu1  ;;  %v5912_v17 = vadd.f32 %v2187_v62, %v6528_v20 }
 0x1e2   : > { %6526 = vst [vmem:[#allocation10_spill] sm:$0xff] %v5906_v37  ;;  %v2189_v7 = vpop.f32.mrf.mxu0 }
 0x1e3   : > { %v5914_v41 = vpop.f32.mrf.mxu1  ;;  %v5922_v25 = vadd.f32 %v2189_v7, %v6530_v9 }
 0x1e4   : > { %v2193_v16 = vpop.f32.mrf.mxu0  ;;  %3205 = vmatmul.mubr.bf16.gmra.mxu0 %v6532_v45  ;;  %v6537_v45 = vld [vmem:[#allocation15_spill] sm:$0xff] }
 0x1e5   : > { %v5924_v37 = vpop.f32.mrf.mxu1  ;;  %3212 = vmatprep.mubr.bf16.mxu0 %v6533_v63  ;;  %v5939_v9 = vadd.f32 %v2193_v16, %v5506_v39  ;;  %v6540_v39 = vpack.c.bf16 %v5734_v22, %v5731_v3 }
 0x1e6   : > { %6531 = vst [vmem:[#allocation11_spill] sm:$0xff] %v5924_v37  ;;  %v2195_v62 = vpop.f32.mrf.mxu0 }
 0x1e7   : > { %v5934_v4 = vpop.f32.mrf.mxu1  ;;  %v5947_v20 = vadd.f32 %v2195_v62, %v6537_v45 }
 0x1e8   : > { %6534 = vst [vmem:[#allocation13_spill] sm:$0xff] %v5934_v4  ;;  %v2197_v56 = vpop.f32.mrf.mxu0 }
 0x1e9   : > { %v5936_v7 = vpop.f32.mrf.mxu1  ;;  %v5942_v37 = vadd.f32 %v2197_v56, %v6536_v51  ;;  %v6541_v51 = vpack.c.bf16 %v5773_v54, %v5768_v26  ;;  %v6547_v26 = vld [vmem:[#allocation20_spill] sm:$0xff]  ;;  %v6553_v54 = vld [vmem:[#allocation22_spill] sm:$0xff] }
 0x1ea   : > { %6535 = vst [vmem:[#allocation12_spill] sm:$0xff] %v5936_v7  ;;  %v2199_v33 = vpop.f32.mrf.mxu0 }
 0x1eb   : > { %v5944_v6 = vpop.f32.mrf.mxu1  ;;  %v5952_v63 = vadd.f32 %v2199_v33, %v6538_v0 }
 0x1ec   : > { %v2203_v4 = vpop.f32.mrf.mxu0  ;;  %3213 = vmatmul.mubr.bf16.gmra.mxu0 %v6540_v39  ;;  %v6546_v39 = vld [vmem:[#allocation18_spill] sm:$0xff] }
 0x1ed   : > { %v5954_v7 = vpop.f32.mrf.mxu1  ;;  %3220 = vmatprep.mubr.bf16.mxu0 %v6541_v51  ;;  %v5969_v0 = vadd.f32 %v2203_v4, %v5529_v28  ;;  %v6549_v28 = vpack.c.bf16 %v5763_v11, %v5760_v30 }
 0x1ee   : > { %6539 = vst [vmem:[#allocation14_spill] sm:$0xff] %v5954_v7  ;;  %v2205_v62 = vpop.f32.mrf.mxu0 }
 0x1ef   : > { %v5964_v56 = vpop.f32.mrf.mxu1  ;;  %v5977_v16 = vadd.f32 %v2205_v62, %v6546_v39 }
 0x1f0   : > { %6542 = vst [vmem:[#allocation16_spill] sm:$0xff] %v5964_v56  ;;  %v2207_v45 = vpop.f32.mrf.mxu0 }
 0x1f1   : > { %v5966_v33 = vpop.f32.mrf.mxu1  ;;  %v5972_v7 = vadd.f32 %v2207_v45, %v6544_v10  ;;  %v6550_v10 = vpack.c.bf16 %v5802_v60, %v5797_v1  ;;  %v6556_v60 = vld [vmem:[#allocation23_spill] sm:$0xff] }
 0x1f2   : > { %6543 = vst [vmem:[#allocation15_spill] sm:$0xff] %v5966_v33  ;;  %v2209_v3 = vpop.f32.mrf.mxu0 }
 0x1f3   : > { %v5974_v22 = vpop.f32.mrf.mxu1  ;;  %v5982_v51 = vadd.f32 %v2209_v3, %v6547_v26 }
 0x1f4   : > { %6545 = vst [vmem:[#allocation17_spill] sm:$0xff] %v5974_v22  ;;  %v2213_v56 = vpop.f32.mrf.mxu0  ;;  %3221 = vmatmul.mubr.bf16.gmra.mxu0 %v6549_v28  ;;  %v6555_v28 = vld [vmem:[#allocation21_spill] sm:$0xff] }
 0x1f5   : > { %v5984_v33 = vpop.f32.mrf.mxu1  ;;  %3228 = vmatprep.mubr.bf16.mxu0 %v6550_v10  ;;  %v5999_v26 = vadd.f32 %v2213_v56, %v5546_v23  ;;  %v6558_v23 = vpack.c.bf16 %v5792_v31, %v5789_v5 }
 0x1f6   : > { %6548 = vst [vmem:[#allocation19_spill] sm:$0xff] %v5984_v33  ;;  %v2215_v62 = vpop.f32.mrf.mxu0 }
 0x1f7   : > { %v5994_v45 = vpop.f32.mrf.mxu1  ;;  %v6007_v4 = vadd.f32 %v2215_v62, %v6555_v28 }
 0x1f8   : > { %6551 = vst [vmem:[#allocation18_spill] sm:$0xff] %v5994_v45  ;;  %v2217_v39 = vpop.f32.mrf.mxu0 }
 0x1f9   : > { %v5996_v3 = vpop.f32.mrf.mxu1  ;;  %v6002_v33 = vadd.f32 %v2217_v39, %v6553_v54  ;;  %v6559_v54 = vpack.c.bf16 %v5832_v47, %v5827_v35  ;;  %v6564_v47 = vld [vmem:[#allocation25_spill] sm:$0xff] }
 0x1fa   : > { %6552 = vst [vmem:[#allocation20_spill] sm:$0xff] %v5996_v3  ;;  %v2219_v30 = vpop.f32.mrf.mxu0 }
 0x1fb   : > { %v6004_v11 = vpop.f32.mrf.mxu1  ;;  %v6012_v10 = vadd.f32 %v2219_v30, %v6556_v60 }
 0x1fc   : > { %6554 = vst [vmem:[#allocation22_spill] sm:$0xff] %v6004_v11  ;;  %v2223_v45 = vpop.f32.mrf.mxu0  ;;  %3229 = vmatmul.mubr.bf16.gmra.mxu0 %v6558_v23  ;;  %v6563_v23 = vld [vmem:[#allocation24_spill] sm:$0xff] }
 0x1fd   : > { %v6014_v3 = vpop.f32.mrf.mxu1  ;;  %3236 = vmatprep.mubr.bf16.mxu0 %v6559_v54  ;;  %v6029_v60 = vadd.f32 %v2223_v45, %v5569_v44  ;;  %v6566_v44 = vpack.c.bf16 %v5822_v40, %v5819_v58  ;;  %v4484_v58 = vld [vmem:[%s6449_s2] sm:$0xf] }
 0x1fe   : > { %6557 = vst [vmem:[#allocation21_spill] sm:$0xff] %v6014_v3  ;;  %v2225_v62 = vpop.f32.mrf.mxu0 }
 0x1ff   : > { %v6024_v39 = vpop.f32.mrf.mxu1  ;;  %v6037_v56 = vadd.f32 %v2225_v62, %v6563_v23  ;;  %v6568_v62 = vpack.c.bf16 %v5862_v12, %v5857_v42 }
 0x200   : > { %6560 = vst [vmem:[#allocation23_spill] sm:$0xff] %v6024_v39  ;;  %v2227_v28 = vpop.f32.mrf.mxu0 }
 0x201   : > { %v6026_v30 = vpop.f32.mrf.mxu1  ;;  %v6032_v1 = vadd.f32 %v2227_v28, %v5575_v27  ;;  %v6567_v27 = vld [vmem:[#allocation2_spill] sm:$0xff] }
 0x202   : > { %6561 = vst [vmem:[#allocation48_spill] sm:$0xff] %v6026_v30  ;;  %v2229_v5 = vpop.f32.mrf.mxu0  ;;  %v484_v45 = vsub.s32 2, %v6567_v27 }
 0x203   : > { %v6034_v31 = vpop.f32.mrf.mxu1  ;;  %v6042_v54 = vadd.f32 %v2229_v5, %v6564_v47  ;;  %v488_v5 = vsub.s32 3, %v6567_v27 }
 0x204   : > { %6562 = vst [vmem:[#allocation49_spill] sm:$0xff] %v6034_v31  ;;  %v2233_v39 = vpop.f32.mrf.mxu0  ;;  %3237 = vmatmul.mubr.bf16.gmra.mxu0 %v6566_v44  ;;  %v6063_v40 = vrot.slane %v4484_v58, %v484_v45 }
 0x205   : > { %v6044_v30 = vpop.f32.mrf.mxu1  ;;  %3244 = vmatprep.mubr.bf16.mxu0 %v6568_v62  ;;  %v6066_v44 = vadd.f32 %v2233_v39, %v5586_v49  ;;  %v6073_v28 = vrot.slane %v4484_v58, %v488_v5 }
 0x206   : > { %6565 = vst [vmem:[#allocation24_spill] sm:$0xff] %v6044_v30  ;;  %v2235_v23 = vpop.f32.mrf.mxu0  ;;  %v2277_v39 = vadd.f32 %v5595_v57, %v6063_v40  ;;  %v2281_v58 = vadd.f32 %v5612_v38, %v6063_v40  ;;  %v6575_v38 = vld [vmem:[#allocation26_spill] sm:$0xff] }
 0x207   : > { %v6055_v35 = vpop.f32.mrf.mxu1  ;;  %v6076_v27 = vadd.f32 %v2235_v23, %v5589_v15  ;;  %v6573_v15 = vpack.c.bf16 %v5892_v34, %v5887_v29  ;;  %v2283_v57 = vadd.f32 %v5620_v8, %v6073_v28  ;;  %v6576_v8 = vpack.c.bf16 %v5922_v25, %v5917_v50 }
 0x208   : > { %6569 = vst [vmem:[#allocation25_spill] sm:$0xff] %v6055_v35  ;;  %v2237_v47 = vpop.f32.mrf.mxu0 }
 0x209   : > { %v6058_v30 = vpop.f32.mrf.mxu1  ;;  %v6069_v42 = vadd.f32 %v2237_v47, %v5592_v24  ;;  %v6572_v24 = vpack.c.bf16 %v5852_v32, %v5849_v59 }
 0x20a   : > { %6570 = vst [vmem:[#allocation2_spill] sm:$0xff] %v6058_v30  ;;  %v2239_v12 = vpop.f32.mrf.mxu0 }
 0x20b   : > { %v6071_v62 = vpop.f32.mrf.mxu1  ;;  %v6081_v45 = vadd.f32 %v2239_v12, %v5600_v2  ;;  %v2279_v2 = vadd.f32 %v5610_v36, %v6073_v28  ;;  %v6574_v36 = vpack.c.bf16 %v5882_v53, %v5879_v46 }
 0x20c   : > { %6571 = vst [vmem:[#allocation50_spill] sm:$0xff] %v6071_v62  ;;  %v2469_v35 = vpop.f32.mrf.mxu0  ;;  %3245 = vmatmul.mubr.bf16.gmra.mxu0 %v6572_v24 }
 0x20d   : > { %v2662_v49 = vpop.f32.mrf.mxu1  ;;  %3252 = vmatprep.mubr.bf16.mxu0 %v6573_v15  ;;  %v2470_v32 = vadd.f32 %v2469_v35, %v2277_v39  ;;  %v2287_v35 = vadd.f32 %v6575_v38, %v6063_v40 }
 0x20e   : > { %v2471_v23 = vpop.f32.mrf.mxu0 }
 0x20f   : > { %v2664_v47 = vpop.f32.mrf.mxu1  ;;  %v2472_v24 = vadd.f32 %v2471_v23, %v2279_v2  ;;  %v2663_v29 = vadd.f32 %v2662_v49, %v2470_v32  ;;  %v6578_v2 = vld [vmem:[#allocation28_spill] sm:$0xff] }
 0x210   : > { %v2473_v59 = vpop.f32.mrf.mxu0 }
 0x211   : > { %v2666_v12 = vpop.f32.mrf.mxu1  ;;  %v2474_v30 = vadd.f32 %v2473_v59, %v2281_v58  ;;  %v2665_v39 = vadd.f32 %v2664_v47, %v2472_v24  ;;  %v2291_v58 = vadd.f32 %v6578_v2, %v6063_v40  ;;  %v2293_v47 = vadd.f32 %v5649_v18, %v6073_v28 }
 0x212   : > { %v2475_v5 = vpop.f32.mrf.mxu0 }
 0x213   : > { %v2668_v62 = vpop.f32.mrf.mxu1  ;;  %v2667_v34 = vadd.f32 %v2666_v12, %v2474_v30  ;;  %v2476_v15 = vadd.f32 %v2475_v5, %v2283_v57  ;;  %v6577_v30 = vld [vmem:[#allocation27_spill] sm:$0xff] }
 0x214   : > { %v2479_v31 = vpop.f32.mrf.mxu0  ;;  %3253 = vmatmul.mubr.bf16.gmra.mxu0 %v6574_v36  ;;  %v2289_v5 = vadd.f32 %v6577_v30, %v6073_v28  ;;  %v6583_v30 = vld [vmem:[#allocation31_spill] sm:$0xff] }
 0x215   : > { %v2672_v3 = vpop.f32.mrf.mxu1  ;;  %v2823_v11 = vpack.c.bf16 %v2667_v34, %v2663_v29  ;;  %v2669_v22 = vadd.f32 %v2668_v62, %v2476_v15  ;;  %3260 = vmatprep.mubr.bf16.mxu0 %v6576_v8  ;;  %v2480_v46 = vadd.f32 %v2479_v31, %v2287_v35  ;;  %v6580_v31 = vld [vmem:[#allocation29_spill] sm:$0xff]  ;;  %v6582_v8 = vld [vmem:[#allocation30_spill] sm:$0xff] }
 0x216   : > { %v2481_v23 = vpop.f32.mrf.mxu0  ;;  %v2297_v36 = vadd.f32 %v6580_v31, %v6063_v40  ;;  %v6587_v31 = vld [vmem:[#allocation33_spill] sm:$0xff] }
 0x217   : > { %v2674_v49 = vpop.f32.mrf.mxu1  ;;  %v2824_v53 = vpack.c.bf16 %v2669_v22, %v2665_v39  ;;  %v2482_v62 = vadd.f32 %v2481_v23, %v2289_v5  ;;  %v2673_v57 = vadd.f32 %v2672_v3, %v2480_v46  ;;  %v6579_v22 = vpack.c.bf16 %v5912_v17, %v5909_v14 }
 0x218   : > { %v2483_v32 = vpop.f32.mrf.mxu0  ;;  %v6581_v39 = vpack.c.bf16 %v5952_v63, %v5947_v20  ;;  %v2299_v23 = vadd.f32 %v6582_v8, %v6073_v28  ;;  %v2301_v5 = vadd.f32 %v6583_v30, %v6063_v40 }
 0x219   : > { %v2676_v59 = vpop.f32.mrf.mxu1  ;;  %v2484_v12 = vadd.f32 %v2483_v32, %v2291_v58  ;;  %3341 = vmatprep.mubr.bf16.mxu1 %v2824_v53  ;;  %v2675_v38 = vadd.f32 %v2674_v49, %v2482_v62  ;;  %v2303_v49 = vadd.f32 %v5678_v21, %v6073_v28 }
 0x21a   : > { %v2485_v50 = vpop.f32.mrf.mxu0  ;;  %3342 = vmatmul.mubr.bf16.vlgmr.msra.gmra.mxu1 %v2823_v11 }
 0x21b   : > { %v2678_v25 = vpop.f32.mrf.mxu1  ;;  %v2677_v24 = vadd.f32 %v2676_v59, %v2484_v12  ;;  %v2486_v29 = vadd.f32 %v2485_v50, %v2293_v47  ;;  %v6584_v50 = vpack.c.bf16 %v5942_v37, %v5939_v9 }
 0x21c   : > { %v2489_v34 = vpop.f32.mrf.mxu0  ;;  %3261 = vmatmul.mubr.bf16.gmra.mxu0 %v6579_v22 }
 0x21d   : > { %v2682_v15 = vpop.f32.mrf.mxu1  ;;  %v2827_v18 = vpack.c.bf16 %v2677_v24, %v2673_v57  ;;  %v2679_v35 = vadd.f32 %v2678_v25, %v2486_v29  ;;  %3268 = vmatprep.mubr.bf16.mxu0 %v6581_v39  ;;  %v2490_v14 = vadd.f32 %v2489_v34, %v2297_v36  ;;  %v6585_v25 = vld [vmem:[#allocation32_spill] sm:$0xff]  ;;  %v6586_v34 = vpack.c.bf16 %v5982_v51, %v5977_v16 }
 0x21e   : > { %v2491_v11 = vpop.f32.mrf.mxu0  ;;  %v2307_v57 = vadd.f32 %v6585_v25, %v6063_v40  ;;  %v2309_v36 = vadd.f32 %v6587_v31, %v6073_v28 }
 0x21f   : > { %v2684_v3 = vpop.f32.mrf.mxu1  ;;  %v2828_v17 = vpack.c.bf16 %v2679_v35, %v2675_v38  ;;  %v2492_v53 = vadd.f32 %v2491_v11, %v2299_v23  ;;  %v2683_v32 = vadd.f32 %v2682_v15, %v2490_v14  ;;  %v6588_v38 = vld [vmem:[#allocation34_spill] sm:$0xff]  ;;  %v2313_v11 = vadd.f32 %v5707_v48, %v6073_v28 }
 0x220   : > { %v2493_v2 = vpop.f32.mrf.mxu0 }
 0x221   : > { %v2686_v58 = vpop.f32.mrf.mxu1  ;;  %v2494_v46 = vadd.f32 %v2493_v2, %v2301_v5  ;;  %3349 = vmatprep.mubr.bf16.mxu1 %v2828_v17  ;;  %v2685_v24 = vadd.f32 %v2684_v3, %v2492_v53  ;;  %v6589_v2 = vpack.c.bf16 %v5972_v7, %v5969_v0 }
 0x222   : > { %v2495_v20 = vpop.f32.mrf.mxu0  ;;  %3350 = vmatmul.mubr.bf16.gmra.mxu1 %v2827_v18  ;;  %v2311_v18 = vadd.f32 %v6588_v38, %v6063_v40  ;;  %v6595_v38 = vld [vmem:[#allocation38_spill] sm:$0xff] }
 0x223   : > { %v2688_v63 = vpop.f32.mrf.mxu1  ;;  %v2687_v59 = vadd.f32 %v2686_v58, %v2494_v46  ;;  %v2496_v47 = vadd.f32 %v2495_v20, %v2303_v49  ;;  %v6590_v58 = vld [vmem:[#allocation35_spill] sm:$0xff]  ;;  %v6591_v20 = vpack.c.bf16 %v6012_v10, %v6007_v4 }
 0x224   : > { %v2499_v62 = vpop.f32.mrf.mxu0  ;;  %3269 = vmatmul.mubr.bf16.gmra.mxu0 %v6584_v50  ;;  %v2317_v49 = vadd.f32 %v6590_v58, %v6063_v40 }
 0x225   : > { %v2692_v12 = vpop.f32.mrf.mxu1  ;;  %v2831_v21 = vpack.c.bf16 %v2687_v59, %v2683_v32  ;;  %v2689_v29 = vadd.f32 %v2688_v63, %v2496_v47  ;;  %3276 = vmatprep.mubr.bf16.mxu0 %v6586_v34  ;;  %v2500_v9 = vadd.f32 %v2499_v62, %v2307_v57  ;;  %v6592_v59 = vld [vmem:[#allocation36_spill] sm:$0xff]  ;;  %v6593_v62 = vld [vmem:[#allocation37_spill] sm:$0xff]  ;;  %v2323_v57 = vadd.f32 %v5736_v13, %v6073_v28 }
 0x226   : > { %v2501_v22 = vpop.f32.mrf.mxu0  ;;  %v2319_v47 = vadd.f32 %v6592_v59, %v6073_v28  ;;  %v6600_v59 = vpack.c.bf16 %v6081_v45, %v6076_v27 }
 0x227   : > { %v2694_v15 = vpop.f32.mrf.mxu1  ;;  %v2832_v37 = vpack.c.bf16 %v2689_v29, %v2685_v24  ;;  %v2502_v3 = vadd.f32 %v2501_v22, %v2309_v36  ;;  %v2693_v23 = vadd.f32 %v2692_v12, %v2500_v9  ;;  %v2321_v12 = vadd.f32 %v6593_v62, %v6063_v40 }
 0x228   : > { %v2503_v35 = vpop.f32.mrf.mxu0  ;;  %v6594_v36 = vpack.c.bf16 %v6002_v33, %v5999_v26 }
 0x229   : > { %v2696_v39 = vpop.f32.mrf.mxu1  ;;  %v2504_v8 = vadd.f32 %v2503_v35, %v2311_v18  ;;  %3357 = vmatprep.mubr.bf16.mxu1 %v2832_v37  ;;  %v2695_v53 = vadd.f32 %v2694_v15, %v2502_v3  ;;  %v2327_v18 = vadd.f32 %v6595_v38, %v6063_v40  ;;  %v6596_v35 = vpack.c.bf16 %v6042_v54, %v6037_v56  ;;  %v6597_v3 = vld [vmem:[#allocation39_spill] sm:$0xff] }
 0x22a   : > { %v2505_v16 = vpop.f32.mrf.mxu0  ;;  %3358 = vmatmul.mubr.bf16.gmra.mxu1 %v2831_v21 }
 0x22b   : > { %v2698_v51 = vpop.f32.mrf.mxu1  ;;  %v2697_v30 = vadd.f32 %v2696_v39, %v2504_v8  ;;  %v2506_v5 = vadd.f32 %v2505_v16, %v2313_v11  ;;  %v2329_v8 = vadd.f32 %v6597_v3, %v6073_v28  ;;  %v6598_v16 = vld [vmem:[#allocation40_spill] sm:$0xff] }
 0x22c   : > { %v2509_v17 = vpop.f32.mrf.mxu0  ;;  %3277 = vmatmul.mubr.bf16.gmra.mxu0 %v6589_v2 }
 0x22d   : > { %v2702_v14 = vpop.f32.mrf.mxu1  ;;  %v2835_v48 = vpack.c.bf16 %v2697_v30, %v2693_v23  ;;  %v2699_v46 = vadd.f32 %v2698_v51, %v2506_v5  ;;  %3284 = vmatprep.mubr.bf16.mxu0 %v6591_v20  ;;  %v2510_v0 = vadd.f32 %v2509_v17, %v2317_v49  ;;  %v2331_v51 = vadd.f32 %v6598_v16, %v6063_v40 }
 0x22e   : > { %v2511_v63 = vpop.f32.mrf.mxu0  ;;  %v2333_v5 = vadd.f32 %v5765_v52, %v6073_v28  ;;  %v2337_v20 = vadd.f32 %v5775_v61, %v6063_v40  ;;  %v2343_v61 = vadd.f32 %v5794_v19, %v6073_v28 }
 0x22f   : > { %v2704_v32 = vpop.f32.mrf.mxu1  ;;  %v2836_v7 = vpack.c.bf16 %v2699_v46, %v2695_v53  ;;  %v2512_v24 = vadd.f32 %v2511_v63, %v2319_v47  ;;  %v2703_v29 = vadd.f32 %v2702_v14, %v2510_v0  ;;  %v6599_v46 = vpack.c.bf16 %v6032_v1, %v6029_v60  ;;  %v6602_v0 = vld [vmem:[#allocation42_spill] sm:$0xff] }
 0x230   : > { %v2513_v50 = vpop.f32.mrf.mxu0 }
 0x231   : > { %v2706_v25 = vpop.f32.mrf.mxu1  ;;  %v2514_v21 = vadd.f32 %v2513_v50, %v2321_v12  ;;  %3365 = vmatprep.mubr.bf16.mxu1 %v2836_v7  ;;  %v2705_v37 = vadd.f32 %v2704_v32, %v2512_v24  ;;  %v6601_v12 = vld [vmem:[#allocation41_spill] sm:$0xff]  ;;  %v2341_v50 = vadd.f32 %v6602_v0, %v6063_v40  ;;  %v2363_v0 = vadd.f32 %v5854_v55, %v6073_v28 }
 0x232   : > { %v2515_v4 = vpop.f32.mrf.mxu0  ;;  %3366 = vmatmul.mubr.bf16.gmra.mxu1 %v2835_v48  ;;  %v2339_v7 = vadd.f32 %v6601_v12, %v6073_v28  ;;  %v6611_v55 = vld [vmem:[#allocation5_spill] sm:$0xff] }
 0x233   : > { %v2708_v10 = vpop.f32.mrf.mxu1  ;;  %v2707_v34 = vadd.f32 %v2706_v25, %v2514_v21  ;;  %v2516_v22 = vadd.f32 %v2515_v4, %v2323_v57 }
 0x234   : > { %v2519_v15 = vpop.f32.mrf.mxu0  ;;  %3285 = vmatmul.mubr.bf16.gmra.mxu0 %v6594_v36 }
 0x235   : > { %v2712_v31 = vpop.f32.mrf.mxu1  ;;  %v2839_v13 = vpack.c.bf16 %v2707_v34, %v2703_v29  ;;  %v2709_v9 = vadd.f32 %v2708_v10, %v2516_v22  ;;  %3292 = vmatprep.mubr.bf16.mxu0 %v6596_v35  ;;  %v2520_v26 = vadd.f32 %v2519_v15, %v2327_v18  ;;  %v6603_v15 = vpack.c.bf16 %v6069_v42, %v6066_v44  ;;  %v6607_v44 = vld [vmem:[#allocation46_spill] sm:$0xff] }
 0x236   : > { %v2521_v39 = vpop.f32.mrf.mxu0  ;;  %v2353_v42 = vadd.f32 %v6607_v44, %v6073_v28 }
 0x237   : > { %v2714_v11 = vpop.f32.mrf.mxu1  ;;  %v2840_v33 = vpack.c.bf16 %v2709_v9, %v2705_v37  ;;  %v2522_v17 = vadd.f32 %v2521_v39, %v2329_v8  ;;  %v2713_v2 = vadd.f32 %v2712_v31, %v2520_v26  ;;  %v6604_v31 = vld [vmem:[#allocation43_spill] sm:$0xff]  ;;  %v6605_v9 = vld [vmem:[#allocation44_spill] sm:$0xff]  ;;  %v6606_v39 = vld [vmem:[#allocation45_spill] sm:$0xff] }
 0x238   : > { %v2523_v23 = vpop.f32.mrf.mxu0  ;;  %v2347_v36 = vadd.f32 %v6604_v31, %v6063_v40  ;;  %v2349_v35 = vadd.f32 %v6605_v9, %v6073_v28  ;;  %v6612_v31 = vld [vmem:[#allocation7_spill] sm:$0xff] }
 0x239   : > { %v2716_v30 = vpop.f32.mrf.mxu1  ;;  %v2524_v14 = vadd.f32 %v2523_v23, %v2331_v51  ;;  %3373 = vmatprep.mubr.bf16.mxu1 %v2840_v33  ;;  %v2715_v63 = vadd.f32 %v2714_v11, %v2522_v17  ;;  %v2351_v11 = vadd.f32 %v6606_v39, %v6063_v40 }
 0x23a   : > { %v2525_v56 = vpop.f32.mrf.mxu0  ;;  %3374 = vmatmul.mubr.bf16.gmra.mxu1 %v2839_v13 }
 0x23b   : > { %v2718_v54 = vpop.f32.mrf.mxu1  ;;  %v2717_v58 = vadd.f32 %v2716_v30, %v2524_v14  ;;  %v2526_v49 = vadd.f32 %v2525_v56, %v2333_v5 }
 0x23c   : > { %v2529_v53 = vpop.f32.mrf.mxu0  ;;  %3293 = vmatmul.mubr.bf16.gmra.mxu0 %v6599_v46 }
 0x23d   : > { %v2722_v48 = vpop.f32.mrf.mxu1  ;;  %v2843_v52 = vpack.c.bf16 %v2717_v58, %v2713_v2  ;;  %v2719_v32 = vadd.f32 %v2718_v54, %v2526_v49  ;;  %3300 = vmatprep.mubr.bf16.mxu0 %v6600_v59  ;;  %v2530_v60 = vadd.f32 %v2529_v53, %v2337_v20  ;;  %v6608_v2 = vld [vmem:[#allocation3_spill] sm:$0xff] }
 0x23e   : > { %v2531_v47 = vpop.f32.mrf.mxu0  ;;  %v2357_v58 = vadd.f32 %v6608_v2, %v6063_v40 }
 0x23f   : > { %v2724_v62 = vpop.f32.mrf.mxu1  ;;  %v2844_v1 = vpack.c.bf16 %v2719_v32, %v2715_v63  ;;  %v2532_v24 = vadd.f32 %v2531_v47, %v2339_v7  ;;  %v2723_v4 = vadd.f32 %v2722_v48, %v2530_v60  ;;  %v6609_v63 = vld [vmem:[#allocation4_spill] sm:$0xff]  ;;  %v6610_v32 = vld [vmem:[#allocation47_spill] sm:$0xff] }
 0x240   : > { %v2533_v25 = vpop.f32.mrf.mxu0  ;;  %v2361_v59 = vadd.f32 %v6610_v32, %v6063_v40 }
 0x241   : > { %v2726_v57 = vpop.f32.mrf.mxu1  ;;  %v2534_v21 = vadd.f32 %v2533_v25, %v2341_v50  ;;  %3381 = vmatprep.mubr.bf16.mxu1 %v2844_v1  ;;  %v2725_v38 = vadd.f32 %v2724_v62, %v2532_v24 }
 0x242   : > { %v2535_v27 = vpop.f32.mrf.mxu0  ;;  %3382 = vmatmul.mubr.bf16.gmra.mxu1 %v2843_v52  ;;  %v2359_v52 = vadd.f32 %v6609_v63, %v6073_v28 }
 0x243   : > { %v2728_v45 = vpop.f32.mrf.mxu1  ;;  %v2727_v10 = vadd.f32 %v2726_v57, %v2534_v21  ;;  %v2536_v29 = vadd.f32 %v2535_v27, %v2343_v61 }
 0x244   : > { %v2539_v34 = vpop.f32.mrf.mxu0  ;;  %3301 = vmatmul.mubr.bf16.gmra.mxu0 %v6603_v15  ;;  %v2369_v15 = vadd.f32 %v6611_v55, %v6073_v28 }
 0x245   : > { %v2732_v22 = vpop.f32.mrf.mxu1  ;;  %v2847_v19 = vpack.c.bf16 %v2727_v10, %v2723_v4  ;;  %v2729_v18 = vadd.f32 %v2728_v45, %v2536_v29  ;;  %v2540_v8 = vadd.f32 %v2539_v34, %v2347_v36  ;;  %v2367_v45 = vadd.f32 %v5864_v43, %v6063_v40 }
 0x246   : > { %v2541_v37 = vpop.f32.mrf.mxu0  ;;  %v2371_v36 = vadd.f32 %v6612_v31, %v6063_v40 }
 0x247   : > { %v2734_v13 = vpop.f32.mrf.mxu1  ;;  %v2848_v3 = vpack.c.bf16 %v2729_v18, %v2725_v38  ;;  %v2542_v33 = vadd.f32 %v2541_v37, %v2349_v35  ;;  %v2733_v5 = vadd.f32 %v2732_v22, %v2540_v8 }
 0x248   : > { %v2543_v16 = vpop.f32.mrf.mxu0 }
 0x249   : > { %v2736_v51 = vpop.f32.mrf.mxu1  ;;  %v2544_v26 = vadd.f32 %v2543_v16, %v2351_v11  ;;  %3389 = vmatprep.mubr.bf16.mxu1 %v2848_v3  ;;  %v2735_v49 = vadd.f32 %v2734_v13, %v2542_v33  ;;  %v6613_v13 = vld [vmem:[#allocation6_spill] sm:$0xff] }
 0x24a   : > { %v2545_v23 = vpop.f32.mrf.mxu0  ;;  %3390 = vmatmul.mubr.bf16.gmra.mxu1 %v2847_v19  ;;  %v2373_v9 = vadd.f32 %v6613_v13, %v6073_v28  ;;  %v6620_v13 = vld [vmem:[#allocation14_spill] sm:$0xff] }
 0x24b   : > { %v2738_v30 = vpop.f32.mrf.mxu1  ;;  %v2737_v17 = vadd.f32 %v2736_v51, %v2544_v26  ;;  %v2546_v14 = vadd.f32 %v2545_v23, %v2353_v42  ;;  %v6614_v42 = vld [vmem:[#allocation8_spill] sm:$0xff] }
 0x24c   : > { %v2549_v56 = vpop.f32.mrf.mxu0  ;;  %v2377_v33 = vadd.f32 %v6614_v42, %v6063_v40 }
 0x24d   : > { %v2742_v54 = vpop.f32.mrf.mxu1  ;;  %v2851_v53 = vpack.c.bf16 %v2737_v17, %v2733_v5  ;;  %v2739_v48 = vadd.f32 %v2738_v30, %v2546_v14  ;;  %v2550_v62 = vadd.f32 %v2549_v56, %v2357_v58  ;;  %v6615_v14 = vld [vmem:[#allocation9_spill] sm:$0xff] }
 0x24e   : > { %v2551_v46 = vpop.f32.mrf.mxu0  ;;  %v2379_v56 = vadd.f32 %v6615_v14, %v6073_v28 }
 0x24f   : > { %v2744_v20 = vpop.f32.mrf.mxu1  ;;  %v2852_v47 = vpack.c.bf16 %v2739_v48, %v2735_v49  ;;  %v2552_v50 = vadd.f32 %v2551_v46, %v2359_v52  ;;  %v2743_v57 = vadd.f32 %v2742_v54, %v2550_v62  ;;  %v6616_v54 = vld [vmem:[#allocation10_spill] sm:$0xff]  ;;  %v2383_v46 = vadd.f32 %v5914_v41, %v6073_v28  ;;  %v6618_v41 = vld [vmem:[#allocation13_spill] sm:$0xff] }
 0x250   : > { %v2553_v12 = vpop.f32.mrf.mxu0  ;;  %v2381_v2 = vadd.f32 %v6616_v54, %v6063_v40 }
 0x251   : > { %v2746_v7 = vpop.f32.mrf.mxu1  ;;  %v2554_v1 = vadd.f32 %v2553_v12, %v2361_v59  ;;  %3397 = vmatprep.mubr.bf16.mxu1 %v2852_v47  ;;  %v2745_v4 = vadd.f32 %v2744_v20, %v2552_v50 }
 0x252   : > { %v2555_v60 = vpop.f32.mrf.mxu0  ;;  %3398 = vmatmul.mubr.bf16.gmra.mxu1 %v2851_v53 }
 0x253   : > { %v2748_v25 = vpop.f32.mrf.mxu1  ;;  %v2747_v61 = vadd.f32 %v2746_v7, %v2554_v1  ;;  %v2556_v24 = vadd.f32 %v2555_v60, %v2363_v0  ;;  %v6617_v0 = vld [vmem:[#allocation11_spill] sm:$0xff] }
 0x254   : > { %v2559_v21 = vpop.f32.mrf.mxu0  ;;  %v2387_v50 = vadd.f32 %v6617_v0, %v6063_v40 }
 0x255   : > { %v2752_v27 = vpop.f32.mrf.mxu1  ;;  %v2855_v10 = vpack.c.bf16 %v2747_v61, %v2743_v57  ;;  %v2749_v29 = vadd.f32 %v2748_v25, %v2556_v24  ;;  %v2560_v19 = vadd.f32 %v2559_v21, %v2367_v45  ;;  %v2389_v24 = vadd.f32 %v6618_v41, %v6073_v28  ;;  %v6619_v21 = vld [vmem:[#allocation12_spill] sm:$0xff] }
 0x256   : > { %v2561_v34 = vpop.f32.mrf.mxu0 }
 0x257   : > { %v2754_v22 = vpop.f32.mrf.mxu1  ;;  %v2856_v38 = vpack.c.bf16 %v2749_v29, %v2745_v4  ;;  %v2562_v35 = vadd.f32 %v2561_v34, %v2369_v15  ;;  %v2753_v3 = vadd.f32 %v2752_v27, %v2560_v19  ;;  %v2391_v27 = vadd.f32 %v6619_v21, %v6063_v40 }
 0x258   : > { %v2563_v18 = vpop.f32.mrf.mxu0  ;;  %v2393_v34 = vadd.f32 %v5944_v6, %v6073_v28  ;;  %v6621_v6 = vld [vmem:[#allocation16_spill] sm:$0xff] }
 0x259   : > { %v2756_v37 = vpop.f32.mrf.mxu1  ;;  %v2564_v43 = vadd.f32 %v2563_v18, %v2371_v36  ;;  %3405 = vmatprep.mubr.bf16.mxu1 %v2856_v38  ;;  %v2755_v26 = vadd.f32 %v2754_v22, %v2562_v35 }
 0x25a   : > { %v2565_v39 = vpop.f32.mrf.mxu0  ;;  %3406 = vmatmul.mubr.bf16.gmra.mxu1 %v2855_v10 }
 0x25b   : > { %v2758_v11 = vpop.f32.mrf.mxu1  ;;  %v2757_v8 = vadd.f32 %v2756_v37, %v2564_v43  ;;  %v2566_v16 = vadd.f32 %v2565_v39, %v2373_v9  ;;  %v2397_v9 = vadd.f32 %v6620_v13, %v6063_v40 }
 0x25c   : > { %v2569_v51 = vpop.f32.mrf.mxu0 }
 0x25d   : > { %v2762_v44 = vpop.f32.mrf.mxu1  ;;  %v2859_v23 = vpack.c.bf16 %v2757_v8, %v2753_v3  ;;  %v2759_v30 = vadd.f32 %v2758_v11, %v2566_v16  ;;  %v2570_v49 = vadd.f32 %v2569_v51, %v2377_v33  ;;  %v2399_v8 = vadd.f32 %v6621_v6, %v6073_v28  ;;  %v6622_v16 = vld [vmem:[#allocation15_spill] sm:$0xff] }
 0x25e   : > { %v2571_v5 = vpop.f32.mrf.mxu0  ;;  %v2401_v51 = vadd.f32 %v6622_v16, %v6063_v40 }
 0x25f   : > { %v2764_v17 = vpop.f32.mrf.mxu1  ;;  %v2860_v58 = vpack.c.bf16 %v2759_v30, %v2755_v26  ;;  %v2572_v20 = vadd.f32 %v2571_v5, %v2379_v56  ;;  %v2763_v59 = vadd.f32 %v2762_v44, %v2570_v49 }
 0x260   : > { %v2573_v53 = vpop.f32.mrf.mxu0 }
 0x261   : > { %v2766_v48 = vpop.f32.mrf.mxu1  ;;  %v2574_v63 = vadd.f32 %v2573_v53, %v2381_v2  ;;  %3413 = vmatprep.mubr.bf16.mxu1 %v2860_v58  ;;  %v2765_v1 = vadd.f32 %v2764_v17, %v2572_v20 }
 0x262   : > { %v2575_v52 = vpop.f32.mrf.mxu0  ;;  %3414 = vmatmul.mubr.bf16.gmra.mxu1 %v2859_v23  ;;  %v6623_v23 = vld [vmem:[#allocation17_spill] sm:$0xff] }
 0x263   : > { %v2768_v32 = vpop.f32.mrf.mxu1  ;;  %v2767_v47 = vadd.f32 %v2766_v48, %v2574_v63  ;;  %v2576_v62 = vadd.f32 %v2575_v52, %v2383_v46  ;;  %v2403_v30 = vadd.f32 %v6623_v23, %v6073_v28  ;;  %v6624_v48 = vld [vmem:[#allocation19_spill] sm:$0xff] }
 0x264   : > { %v2579_v12 = vpop.f32.mrf.mxu0  ;;  %v2407_v46 = vadd.f32 %v6624_v48, %v6063_v40 }
 0x265   : > { %v2772_v7 = vpop.f32.mrf.mxu1  ;;  %v2863_v60 = vpack.c.bf16 %v2767_v47, %v2763_v59  ;;  %v2769_v25 = vadd.f32 %v2768_v32, %v2576_v62  ;;  %v2580_v4 = vadd.f32 %v2579_v12, %v2387_v50  ;;  %v6625_v47 = vld [vmem:[#allocation18_spill] sm:$0xff]  ;;  %v6626_v12 = vld [vmem:[#allocation20_spill] sm:$0xff] }
 0x266   : > { %v2581_v57 = vpop.f32.mrf.mxu0  ;;  %v2409_v62 = vadd.f32 %v6625_v47, %v6073_v28 }
 0x267   : > { %v2774_v61 = vpop.f32.mrf.mxu1  ;;  %v2864_v45 = vpack.c.bf16 %v2769_v25, %v2765_v1  ;;  %v2582_v22 = vadd.f32 %v2581_v57, %v2389_v24  ;;  %v2773_v36 = vadd.f32 %v2772_v7, %v2580_v4  ;;  %v2411_v7 = vadd.f32 %v6626_v12, %v6063_v40  ;;  %v6627_v25 = vld [vmem:[#allocation22_spill] sm:$0xff] }
 0x268   : > { %v2583_v10 = vpop.f32.mrf.mxu0  ;;  %v2413_v57 = vadd.f32 %v6627_v25, %v6073_v28 }
 0x269   : > { %v2776_v29 = vpop.f32.mrf.mxu1  ;;  %v2584_v55 = vadd.f32 %v2583_v10, %v2391_v27  ;;  %3421 = vmatprep.mubr.bf16.mxu1 %v2864_v45  ;;  %v2775_v35 = vadd.f32 %v2774_v61, %v2582_v22 }
 0x26a   : > { %v2585_v15 = vpop.f32.mrf.mxu0  ;;  %3422 = vmatmul.mubr.bf16.gmra.mxu1 %v2863_v60 }
 0x26b   : > { %v2778_v31 = vpop.f32.mrf.mxu1  ;;  %v2777_v38 = vadd.f32 %v2776_v29, %v2584_v55  ;;  %v2586_v19 = vadd.f32 %v2585_v15, %v2393_v34  ;;  %v6628_v34 = vld [vmem:[#allocation21_spill] sm:$0xff] }
 0x26c   : > { %v2589_v18 = vpop.f32.mrf.mxu0  ;;  %v2417_v22 = vadd.f32 %v6628_v34, %v6063_v40 }
 0x26d   : > { %v2782_v37 = vpop.f32.mrf.mxu1  ;;  %v2867_v43 = vpack.c.bf16 %v2777_v38, %v2773_v36  ;;  %v2779_v39 = vadd.f32 %v2778_v31, %v2586_v19  ;;  %v2590_v42 = vadd.f32 %v2589_v18, %v2397_v9  ;;  %v6629_v19 = vld [vmem:[#allocation23_spill] sm:$0xff] }
 0x26e   : > { %v2591_v11 = vpop.f32.mrf.mxu0  ;;  %v2419_v18 = vadd.f32 %v6629_v19, %v6073_v28 }
 0x26f   : > { %v2784_v3 = vpop.f32.mrf.mxu1  ;;  %v2868_v44 = vpack.c.bf16 %v2779_v39, %v2775_v35  ;;  %v2592_v5 = vadd.f32 %v2591_v11, %v2399_v8  ;;  %v2783_v54 = vadd.f32 %v2782_v37, %v2590_v42  ;;  %v6630_v37 = vld [vmem:[#allocation48_spill] sm:$0xff]  ;;  %v6631_v11 = vld [vmem:[#allocation49_spill] sm:$0xff] }
 0x270   : > { %v2593_v33 = vpop.f32.mrf.mxu0  ;;  %v2421_v13 = vadd.f32 %v6630_v37, %v6063_v40 }
 0x271   : > { %v2786_v26 = vpop.f32.mrf.mxu1  ;;  %v2594_v17 = vadd.f32 %v2593_v33, %v2401_v51  ;;  %3429 = vmatprep.mubr.bf16.mxu1 %v2868_v44  ;;  %v2785_v20 = vadd.f32 %v2784_v3, %v2592_v5  ;;  %v2423_v3 = vadd.f32 %v6631_v11, %v6073_v28 }
 0x272   : > { %v2595_v14 = vpop.f32.mrf.mxu0  ;;  %3430 = vmatmul.mubr.bf16.gmra.mxu1 %v2867_v43 }
 0x273   : > { %v2788_v56 = vpop.f32.mrf.mxu1  ;;  %v2787_v2 = vadd.f32 %v2786_v26, %v2594_v17  ;;  %v2596_v58 = vadd.f32 %v2595_v14, %v2403_v30  ;;  %v6632_v30 = vld [vmem:[#allocation24_spill] sm:$0xff] }
 0x274   : > { %v2599_v49 = vpop.f32.mrf.mxu0  ;;  %v2427_v5 = vadd.f32 %v6632_v30, %v6063_v40 }
 0x275   : > { %v2792_v53 = vpop.f32.mrf.mxu1  ;;  %v2871_v63 = vpack.c.bf16 %v2787_v2, %v2783_v54  ;;  %v2789_v52 = vadd.f32 %v2788_v56, %v2596_v58  ;;  %v2600_v50 = vadd.f32 %v2599_v49, %v2407_v46  ;;  %v6633_v58 = vld [vmem:[#allocation25_spill] sm:$0xff] }
 0x276   : > { %v2601_v32 = vpop.f32.mrf.mxu0  ;;  %v2429_v49 = vadd.f32 %v6633_v58, %v6073_v28 }
 0x277   : > { %v2794_v59 = vpop.f32.mrf.mxu1  ;;  %v2872_v0 = vpack.c.bf16 %v2789_v52, %v2785_v20  ;;  %v2602_v61 = vadd.f32 %v2601_v32, %v2409_v62  ;;  %v2793_v27 = vadd.f32 %v2792_v53, %v2600_v50  ;;  %v6634_v53 = vld [vmem:[#allocation2_spill] sm:$0xff] }
 0x278   : > { %v2603_v1 = vpop.f32.mrf.mxu0  ;;  %v2431_v48 = vadd.f32 %v6634_v53, %v6063_v40  ;;  %v6635_v32 = vld [vmem:[#allocation50_spill] sm:$0xff] }
 0x279   : > { %v2796_v60 = vpop.f32.mrf.mxu1  ;;  %v2604_v41 = vadd.f32 %v2603_v1, %v2411_v7  ;;  %3437 = vmatprep.mubr.bf16.mxu1 %v2872_v0  ;;  %v2795_v55 = vadd.f32 %v2794_v59, %v2602_v61  ;;  %v2433_v59 = vadd.f32 %v6635_v32, %v6073_v28 }
 0x27a   : > { %v2605_v24 = vpop.f32.mrf.mxu0  ;;  %3438 = vmatmul.mubr.bf16.gmra.mxu1 %v2871_v63 }
 0x27b   : > { %v2798_v21 = vpop.f32.mrf.mxu1  ;;  %v2797_v45 = vadd.f32 %v2796_v60, %v2604_v41  ;;  %v2606_v4 = vadd.f32 %v2605_v24, %v2413_v57 }
 0x27c   : > { %v2609_v10 = vpop.f32.mrf.mxu0 }
 0x27d   : > { %v2802_v29 = vpop.f32.mrf.mxu1  ;;  %v2875_v15 = vpack.c.bf16 %v2797_v45, %v2793_v27  ;;  %v2799_v31 = vadd.f32 %v2798_v21, %v2606_v4  ;;  %v2610_v35 = vadd.f32 %v2609_v10, %v2417_v22 }
 0x27e   : > { %v2611_v36 = vpop.f32.mrf.mxu0 }
 0x27f   : > { %v2804_v38 = vpop.f32.mrf.mxu1  ;;  %v2876_v9 = vpack.c.bf16 %v2799_v31, %v2795_v55  ;;  %v2612_v6 = vadd.f32 %v2611_v36, %v2419_v18  ;;  %v2803_v44 = vadd.f32 %v2802_v29, %v2610_v35 }
 0x280   : > { %v2613_v43 = vpop.f32.mrf.mxu0 }
 0x281   : > { %v2806_v39 = vpop.f32.mrf.mxu1  ;;  %v2614_v8 = vadd.f32 %v2613_v43, %v2421_v13  ;;  %3445 = vmatprep.mubr.bf16.mxu1 %v2876_v9  ;;  %v2805_v17 = vadd.f32 %v2804_v38, %v2612_v6 }
 0x282   : > { %v2615_v16 = vpop.f32.mrf.mxu0  ;;  %3446 = vmatmul.mubr.bf16.gmra.mxu1 %v2875_v15 }
 0x283   : > { %v2808_v51 = vpop.f32.mrf.mxu1  ;;  %v2807_v42 = vadd.f32 %v2806_v39, %v2614_v8  ;;  %v2616_v33 = vadd.f32 %v2615_v16, %v2423_v3 }
 0x284   : > { %v2619_v26 = vpop.f32.mrf.mxu0 }
 0x285   : > { %v2812_v23 = vpop.f32.mrf.mxu1  ;;  %v2879_v14 = vpack.c.bf16 %v2807_v42, %v2803_v44  ;;  %v2809_v56 = vadd.f32 %v2808_v51, %v2616_v33  ;;  %v2620_v20 = vadd.f32 %v2619_v26, %v2427_v5  ;;  %v6303_v26 = vld [vmem:[%s6451_s4] ss:$0 sm:$0xff] }
 0x286   : > { %v2621_v54 = vpop.f32.mrf.mxu0 }
 0x287   : > { %v2814_v2 = vpop.f32.mrf.mxu1  ;;  %v2880_v46 = vpack.c.bf16 %v2809_v56, %v2805_v17  ;;  %v2622_v47 = vadd.f32 %v2621_v54, %v2429_v49  ;;  %v2813_v7 = vadd.f32 %v2812_v23, %v2620_v20 }
 0x288   : > { %v2623_v63 = vpop.f32.mrf.mxu0 }
 0x289   : > { %v2816_v52 = vpop.f32.mrf.mxu1  ;;  %v2624_v62 = vadd.f32 %v2623_v63, %v2431_v48  ;;  %3453 = vmatprep.mubr.bf16.mxu1 %v2880_v46  ;;  %v2815_v25 = vadd.f32 %v2814_v2, %v2622_v47 }
 0x28a   : > { %v2625_v12 = vpop.f32.mrf.mxu0  ;;  %3454 = vmatmul.mubr.bf16.gmra.mxu1 %v2879_v14 }
 0x28b   : > { %v2817_v0 = vadd.f32 %v2816_v52, %v2624_v62  ;;  %v2626_v50 = vadd.f32 %v2625_v12, %v2433_v59  ;;  %v2818_v1 = vpop.f32.mrf.mxu1 }
 0x28c   : > { %v3874_v60 = vpop.f32.mrf.mxu0 }
 0x28d   : > { %v2883_v57 = vpack.c.bf16 %v2817_v0, %v2813_v7  ;;  %v2819_v40 = vadd.f32 %v2818_v1, %v2626_v50 }
 0x28e   : > { %v3875_v61 = vpop.f32.mrf.mxu0 }
 0x28f   : > { %v2884_v41 = vpack.c.bf16 %v2819_v40, %v2815_v25  ;;  %v3876_v33 = vadd.f32 %v3875_v61, %v3874_v60 }
 0x290   : > { %v3877_v24 = vpop.f32.mrf.mxu0 }
 0x291   : > { %3461 = vmatprep.mubr.bf16.mxu1 %v2884_v41  ;;  %v3183_v17 = vadd.f32 %v3876_v33, %v6303_v26 }
 0x292   : > { %v3878_v21 = vpop.f32.mrf.mxu0  ;;  %3462 = vmatmul.mubr.bf16.gmra.mxu1 %v2883_v57 }
 0x293   : > { %v3879_v14 = vadd.f32 %v3878_v21, %v3877_v24 }
 0x294   : > { %v3880_v28 = vpop.f32.mrf.mxu0 }
 0x295   : > { %v3186_v53 = vadd.f32 %v3879_v14, %v6303_v26 }
 0x296   : > { %v3881_v27 = vpop.f32.mrf.mxu0 }
 0x297   : > { %v3882_v48 = vadd.f32 %v3881_v27, %v3880_v28 }
 0x298   : > { %v3883_v45 = vpop.f32.mrf.mxu0 }
 0x299   : > { %v3191_v59 = vadd.f32 %v3882_v48, %v6303_v26 }
 0x29a   : > { %v3884_v4 = vpop.f32.mrf.mxu0 }
 0x29b   : > { %v3885_v47 = vadd.f32 %v3884_v4, %v3883_v45 }
 0x29c   : > { %v3886_v10 = vpop.f32.mrf.mxu0 }
 0x29d   : > { %v3194_v1 = vadd.f32 %v3885_v47, %v6303_v26 }
 0x29e   : > { %v3887_v29 = vpop.f32.mrf.mxu0 }
 0x29f   : > { %v3888_v60 = vadd.f32 %v3887_v29, %v3886_v10 }
 0x2a0   : > { %v3889_v34 = vpop.f32.mrf.mxu0 }
 0x2a1   : > { %v3199_v24 = vadd.f32 %v3888_v60, %v6303_v26 }
 0x2a2   : > { %v3890_v22 = vpop.f32.mrf.mxu0 }
 0x2a3   : > { %v3891_v21 = vadd.f32 %v3890_v22, %v3889_v34 }
 0x2a4   : > { %v6258_v55 = vpop.f32.mrf.mxu0 }
 0x2a5   : > { %v3202_v10 = vadd.f32 %v3891_v21, %v6303_v26 }
 0x2a6   : > { %v6260_v15 = vpop.f32.mrf.mxu0 }
 0x2a7   : > { %v3894_v29 = vadd.f32 %v6260_v15, %v6258_v55 }
 0x2a8   : > { %v6262_v31 = vpop.f32.mrf.mxu0 }
 0x2a9   : > { %v3207_v14 = vadd.f32 %v3894_v29, %v6303_v26 }
 0x2aa   : > { %v6264_v36 = vpop.f32.mrf.mxu0 }
 0x2ac   : > { %v6266_v38 = vpop.f32.mrf.mxu0 }
 0x2ae   : > { %v6268_v19 = vpop.f32.mrf.mxu0 }
 0x2af   : > { %v3900_v48 = vadd.f32 %v6268_v19, %v6266_v38 }
 0x2b0   : > { %v6270_v18 = vpop.f32.mrf.mxu0 }
 0x2b2   : > { %v6272_v37 = vpop.f32.mrf.mxu0 }
 0x2b4   : > { %v6274_v13 = vpop.f32.mrf.mxu0 }
 0x2b6   : > { %v6276_v9 = vpop.f32.mrf.mxu0 }
 0x2b8   : > { %v6278_v35 = vpop.f32.mrf.mxu0 }
 0x2ba   : > { %v6280_v43 = vpop.f32.mrf.mxu0 }
 0x2bc   : > { %v6282_v39 = vpop.f32.mrf.mxu0 }
 0x2be   : > { %v6284_v11 = vpop.f32.mrf.mxu0 }
 0x2c0   : > { %v6286_v3 = vpop.f32.mrf.mxu0 }
 0x2c2   : > { %v6288_v6 = vpop.f32.mrf.mxu0 }
 0x2c4   : > { %v6290_v8 = vpop.f32.mrf.mxu0 }
 0x2c6   : > { %v6292_v16 = vpop.f32.mrf.mxu0 }
 0x2c8   : > { %v6294_v51 = vpop.f32.mrf.mxu0 }
 0x2ca   : > { %v6296_v44 = vpop.f32.mrf.mxu0 }
 0x2cc   : > { %v6298_v42 = vpop.f32.mrf.mxu0 }
 0x2ce   : > { %v6305_v23 = vpop.f32.mrf.mxu0 }
 0x2d0   : > { %v6309_v54 = vpop.f32.mrf.mxu0 }
 0x2d2   : > { %v6318_v20 = vpop.f32.mrf.mxu0 }
 0x2d4   : > { %v6322_v12 = vpop.f32.mrf.mxu0 }
 0x2d6   : > { %v6326_v57 = vpop.f32.mrf.mxu0 }
 0x2d8   : > { %v6330_v27 = vpop.f32.mrf.mxu0 }
 0x2da   : > { %v3986_v30 = vpop.f32.mrf.mxu1 }
 0x2dc   : > { %v3987_v5 = vpop.f32.mrf.mxu1 }
 0x2dd   : > { %v3988_v56 = vadd.f32 %v3987_v5, %v3986_v30  ;;  %v6336_v5 = vpop.f32.mrf.mxu0 }
 0x2de   : > { %v3989_v2 = vpop.f32.mrf.mxu1 }
 0x2df   : > { %v3344_v58 = vadd.f32 %v3988_v56, %v3183_v17  ;;  %v3897_v56 = vadd.f32 %v6264_v36, %v6262_v31 }
 0x2e0   : > { %v3990_v49 = vpop.f32.mrf.mxu1 }
 0x2e1   : > { %3470 = vst [vmem:[%s6314_s28] sm:$0xff] %v3344_v58  ;;  %v3991_v46 = vadd.f32 %v3990_v49, %v3989_v2  ;;  %v6342_v58 = vpop.f32.mrf.mxu0 }
 0x2e2   : > { %v3992_v63 = vpop.f32.mrf.mxu1 }
 0x2e3   : > { %v3347_v52 = vadd.f32 %v3991_v46, %v3186_v53  ;;  %v3210_v53 = vadd.f32 %v3897_v56, %v6303_v26  ;;  %v3918_v56 = vadd.f32 %v6292_v16, %v6290_v8 }
 0x2e4   : > { %v3993_v32 = vpop.f32.mrf.mxu1 }
 0x2e5   : > { %3471 = vst [vmem:[%s6314_s28 + $0x8] sm:$0xff] %v3347_v52  ;;  %v3994_v62 = vadd.f32 %v3993_v32, %v3992_v63  ;;  %v6348_v63 = vpop.f32.mrf.mxu0  ;;  %v3215_v32 = vadd.f32 %v3900_v48, %v6303_v26 }
 0x2e6   : > { %v3995_v7 = vpop.f32.mrf.mxu1 }
 0x2e7   : > { %v3352_v0 = vadd.f32 %v3994_v62, %v3191_v59  ;;  %v3903_v59 = vadd.f32 %v6272_v37, %v6270_v18  ;;  %v6354_v62 = vpop.f32.mrf.mxu0 }
 0x2e8   : > { %v3996_v50 = vpop.f32.mrf.mxu1 }
 0x2e9   : > { %3472 = vst [vmem:[%s6314_s28 + $0x10] sm:$0xff] %v3352_v0  ;;  %v3997_v25 = vadd.f32 %v3996_v50, %v3995_v7  ;;  %v3218_v0 = vadd.f32 %v3903_v59, %v6303_v26  ;;  %v3906_v50 = vadd.f32 %v6276_v9, %v6274_v13  ;;  %v6360_v60 = vpop.f32.mrf.mxu0 }
 0x2ea   : > { %v3998_v40 = vpop.f32.mrf.mxu1 }
 0x2eb   : > { %v3355_v61 = vadd.f32 %v3997_v25, %v3194_v1 }
 0x2ec   : > { %v3999_v41 = vpop.f32.mrf.mxu1 }
 0x2ed   : > { %3473 = vst [vmem:[%s6314_s28 + $0x18] sm:$0xff] %v3355_v61  ;;  %v4000_v28 = vadd.f32 %v3999_v41, %v3998_v40  ;;  %v3223_v40 = vadd.f32 %v3906_v50, %v6303_v26  ;;  %v3909_v61 = vadd.f32 %v6280_v43, %v6278_v35 }
 0x2ee   : > { %v4001_v45 = vpop.f32.mrf.mxu1 }
 0x2ef   : > { %v3360_v4 = vadd.f32 %v4000_v28, %v3199_v24  ;;  %v6366_v24 = vpop.f32.mrf.mxu0  ;;  %v3226_v28 = vadd.f32 %v3909_v61, %v6303_v26 }
 0x2f0   : > { %v4002_v33 = vpop.f32.mrf.mxu1 }
 0x2f1   : > { %3474 = vst [vmem:[%s6314_s28 + $0x20] sm:$0xff] %v3360_v4  ;;  %v4003_v30 = vadd.f32 %v4002_v33, %v4001_v45  ;;  %v3912_v45 = vadd.f32 %v6284_v11, %v6282_v39  ;;  %v6372_v33 = vpop.f32.mrf.mxu0 }
 0x2f2   : > { %v4004_v17 = vpop.f32.mrf.mxu1 }
 0x2f3   : > { %v3363_v34 = vadd.f32 %v4003_v30, %v3202_v10  ;;  %v3231_v29 = vadd.f32 %v3912_v45, %v6303_v26  ;;  %v3915_v30 = vadd.f32 %v6288_v6, %v6286_v3 }
 0x2f4   : > { %v4005_v22 = vpop.f32.mrf.mxu1 }
 0x2f5   : > { %3475 = vst [vmem:[%s6314_s28 + $0x28] sm:$0xff] %v3363_v34  ;;  %v4006_v2 = vadd.f32 %v4005_v22, %v4004_v17  ;;  %v6378_v34 = vpop.f32.mrf.mxu0 }
 0x2f6   : > { %v4007_v49 = vpop.f32.mrf.mxu1 }
 0x2f7   : > { %v3368_v55 = vadd.f32 %v4006_v2, %v3207_v14  ;;  %v3234_v14 = vadd.f32 %v3915_v30, %v6303_v26 }
 0x2f8   : > { %v4008_v15 = vpop.f32.mrf.mxu1 }
 0x2f9   : > { %3476 = vst [vmem:[%s6314_s28 + $0x30] sm:$0xff] %v3368_v55  ;;  %v4009_v46 = vadd.f32 %v4008_v15, %v4007_v49  ;;  %v6384_v49 = vpop.f32.mrf.mxu0  ;;  %v3239_v15 = vadd.f32 %v3918_v56, %v6303_v26 }
 0x2fa   : > { %v4010_v52 = vpop.f32.mrf.mxu1 }
 0x2fb   : > { %v3371_v31 = vadd.f32 %v4009_v46, %v3210_v53  ;;  %v3921_v53 = vadd.f32 %v6296_v44, %v6294_v51  ;;  %v6390_v46 = vpop.f32.mrf.mxu0 }
 0x2fc   : > { %v4011_v36 = vpop.f32.mrf.mxu1 }
 0x2fd   : > { %3477 = vst [vmem:[%s6314_s28 + $0x38] sm:$0xff] %v3371_v31  ;;  %v4012_v47 = vadd.f32 %v4011_v36, %v4010_v52  ;;  %v3242_v31 = vadd.f32 %v3921_v53, %v6303_v26  ;;  %v3924_v36 = vadd.f32 %v6305_v23, %v6298_v42  ;;  %v3947_v59 = vpop.f32.mrf.mxu0  ;;  %v3930_v23 = vadd.f32 %v6326_v57, %v6322_v12 }
 0x2fe   : > { %v4013_v7 = vpop.f32.mrf.mxu1  ;;  %v3936_v57 = vadd.f32 %v6348_v63, %v6342_v58  ;;  %v3942_v63 = vadd.f32 %v6372_v33, %v6366_v24  ;;  %v3948_v33 = vadd.f32 %v3947_v59, %v6390_v46 }
 0x2ff   : > { %v3376_v38 = vadd.f32 %v4012_v47, %v3215_v32  ;;  %v3247_v44 = vadd.f32 %v3924_v36, %v6303_v26 }
 0x300   : > { %v4014_v19 = vpop.f32.mrf.mxu1 }
 0x301   : > { %3478 = vst [vmem:[%s6314_s28 + $0x40] sm:$0xff] %v3376_v38  ;;  %v4015_v1 = vadd.f32 %v4014_v19, %v4013_v7  ;;  %v3927_v38 = vadd.f32 %v6318_v20, %v6309_v54  ;;  %v3255_v54 = vadd.f32 %v3930_v23, %v6303_v26  ;;  %v3933_v20 = vadd.f32 %v6336_v5, %v6330_v27 }
 0x302   : > { %v4016_v25 = vpop.f32.mrf.mxu1  ;;  %v3263_v27 = vadd.f32 %v3936_v57, %v6303_v26  ;;  %v3939_v5 = vadd.f32 %v6360_v60, %v6354_v62  ;;  %v3271_v62 = vadd.f32 %v3942_v63, %v6303_v26  ;;  %v3945_v60 = vadd.f32 %v6384_v49, %v6378_v34 }
 0x303   : > { %v3379_v18 = vadd.f32 %v4015_v1, %v3218_v0  ;;  %v3949_v0 = vpop.f32.mrf.mxu0  ;;  %v3250_v42 = vadd.f32 %v3927_v38, %v6303_v26  ;;  %v3258_v12 = vadd.f32 %v3933_v20, %v6303_v26  ;;  %v3279_v34 = vadd.f32 %v3948_v33, %v6303_v26 }
 0x304   : > { %v4017_v37 = vpop.f32.mrf.mxu1  ;;  %v3266_v58 = vadd.f32 %v3939_v5, %v6303_v26  ;;  %v3274_v24 = vadd.f32 %v3945_v60, %v6303_v26 }
 0x305   : > { %3479 = vst [vmem:[%s6314_s28 + $0x48] sm:$0xff] %v3379_v18  ;;  %v4018_v41 = vadd.f32 %v4017_v37, %v4016_v25  ;;  %v3950_v37 = vpop.f32.mrf.mxu0 }
 0x306   : > { %v4019_v21 = vpop.f32.mrf.mxu1  ;;  %v3951_v49 = vadd.f32 %v3950_v37, %v3949_v0 }
 0x307   : > { %v3384_v13 = vadd.f32 %v4018_v41, %v3223_v40 }
 0x308   : > { %v4020_v9 = vpop.f32.mrf.mxu1 }
 0x309   : > { %3480 = vst [vmem:[%s6314_s28 + $0x50] sm:$0xff] %v3384_v13  ;;  %v4021_v4 = vadd.f32 %v4020_v9, %v4019_v21  ;;  %v3952_v13 = vpop.f32.mrf.mxu0 }
 0x30a   : > { %v4022_v10 = vpop.f32.mrf.mxu1 }
 0x30b   : > { %v3387_v35 = vadd.f32 %v4021_v4, %v3226_v28 }
 0x30c   : > { %v4023_v43 = vpop.f32.mrf.mxu1 }
 0x30d   : > { %3481 = vst [vmem:[%s6314_s28 + $0x58] sm:$0xff] %v3387_v35  ;;  %v4024_v17 = vadd.f32 %v4023_v43, %v4022_v10  ;;  %v3953_v10 = vpop.f32.mrf.mxu0 }
 0x30e   : > { %v4025_v22 = vpop.f32.mrf.mxu1  ;;  %v3954_v46 = vadd.f32 %v3953_v10, %v3952_v13 }
 0x30f   : > { %v3392_v39 = vadd.f32 %v4024_v17, %v3231_v29  ;;  %v3955_v17 = vpop.f32.mrf.mxu0 }
 0x310   : > { %v4026_v11 = vpop.f32.mrf.mxu1  ;;  %v3287_v23 = vadd.f32 %v3954_v46, %v6303_v26 }
 0x311   : > { %3482 = vst [vmem:[%s6314_s28 + $0x60] sm:$0xff] %v3392_v39  ;;  %v4027_v2 = vadd.f32 %v4026_v11, %v4025_v22  ;;  %v3956_v56 = vpop.f32.mrf.mxu0 }
 0x312   : > { %v4028_v55 = vpop.f32.mrf.mxu1  ;;  %v3957_v0 = vadd.f32 %v3956_v56, %v3955_v17 }
 0x313   : > { %v3395_v3 = vadd.f32 %v4027_v2, %v3234_v14 }
 0x314   : > { %v4029_v6 = vpop.f32.mrf.mxu1 }
 0x315   : > { %3483 = vst [vmem:[%s6314_s28 + $0x68] sm:$0xff] %v3395_v3  ;;  %v4030_v48 = vadd.f32 %v4029_v6, %v4028_v55 }
 0x316   : > { %v4031_v52 = vpop.f32.mrf.mxu1 }
 0x317   : > { %v3400_v8 = vadd.f32 %v4030_v48, %v3239_v15  ;;  %v3958_v15 = vpop.f32.mrf.mxu0 }
 0x318   : > { %v4032_v16 = vpop.f32.mrf.mxu1 }
 0x319   : > { %3484 = vst [vmem:[%s6314_s28 + $0x70] sm:$0xff] %v3400_v8  ;;  %v4033_v32 = vadd.f32 %v4032_v16, %v4031_v52  ;;  %v3959_v16 = vpop.f32.mrf.mxu0 }
 0x31a   : > { %v4034_v47 = vpop.f32.mrf.mxu1  ;;  %v3960_v20 = vadd.f32 %v3959_v16, %v3958_v15 }
 0x31b   : > { %v3403_v7 = vadd.f32 %v4033_v32, %v3242_v31 }
 0x31c   : > { %v4035_v51 = vpop.f32.mrf.mxu1 }
 0x31d   : > { %3485 = vst [vmem:[%s6314_s28 + $0x78] sm:$0xff] %v3403_v7  ;;  %v4036_v19 = vadd.f32 %v4035_v51, %v4034_v47  ;;  %v3961_v7 = vpop.f32.mrf.mxu0 }
 0x31e   : > { %v4037_v50 = vpop.f32.mrf.mxu1 }
 0x31f   : > { %v3408_v1 = vadd.f32 %v4036_v19, %v3247_v44  ;;  %v3282_v19 = vadd.f32 %v3951_v49, %v6303_v26 }
 0x320   : > { %v4038_v25 = vpop.f32.mrf.mxu1 }
 0x321   : > { %3486 = vst [vmem:[%s6314_s28 + $0x80] sm:$0xff] %v3408_v1  ;;  %v4039_v18 = vadd.f32 %v4038_v25, %v4037_v50  ;;  %v3962_v50 = vpop.f32.mrf.mxu0 }
 0x322   : > { %v4040_v40 = vpop.f32.mrf.mxu1  ;;  %v3963_v57 = vadd.f32 %v3962_v50, %v3961_v7 }
 0x323   : > { %v3411_v61 = vadd.f32 %v4039_v18, %v3250_v42  ;;  %v3964_v37 = vpop.f32.mrf.mxu0 }
 0x324   : > { %v4041_v41 = vpop.f32.mrf.mxu1 }
 0x325   : > { %3487 = vst [vmem:[%s6314_s28 + $0x88] sm:$0xff] %v3411_v61  ;;  %v4042_v21 = vadd.f32 %v4041_v41, %v4040_v40  ;;  %v3965_v13 = vpop.f32.mrf.mxu0 }
 0x326   : > { %v4043_v9 = vpop.f32.mrf.mxu1  ;;  %v3966_v5 = vadd.f32 %v3965_v13, %v3964_v37 }
 0x327   : > { %v3416_v28 = vadd.f32 %v4042_v21, %v3255_v54  ;;  %v3290_v54 = vadd.f32 %v3957_v0, %v6303_v26  ;;  %v3967_v10 = vpop.f32.mrf.mxu0 }
 0x328   : > { %v4044_v45 = vpop.f32.mrf.mxu1 }
 0x329   : > { %3488 = vst [vmem:[%s6314_s28 + $0x90] sm:$0xff] %v3416_v28  ;;  %v4045_v4 = vadd.f32 %v4044_v45, %v4043_v9  ;;  %v3968_v17 = vpop.f32.mrf.mxu0 }
 0x32a   : > { %v4046_v35 = vpop.f32.mrf.mxu1  ;;  %v3969_v63 = vadd.f32 %v3968_v17, %v3967_v10 }
 0x32b   : > { %v3419_v43 = vadd.f32 %v4045_v4, %v3258_v12  ;;  %v3295_v12 = vadd.f32 %v3960_v20, %v6303_v26 }
 0x32c   : > { %v4047_v29 = vpop.f32.mrf.mxu1 }
 0x32d   : > { %3489 = vst [vmem:[%s6314_s28 + $0x98] sm:$0xff] %v3419_v43  ;;  %v4048_v30 = vadd.f32 %v4047_v29, %v4046_v35 }
 0x32e   : > { %v4049_v22 = vpop.f32.mrf.mxu1 }
 0x32f   : > { %v3424_v39 = vadd.f32 %v4048_v30, %v3263_v27  ;;  %v3298_v27 = vadd.f32 %v3963_v57, %v6303_v26 }
 0x330   : > { %v4050_v11 = vpop.f32.mrf.mxu1 }
 0x331   : > { %3490 = vst [vmem:[%s6314_s28 + $0xa0] sm:$0xff] %v3424_v39  ;;  %v4051_v14 = vadd.f32 %v4050_v11, %v4049_v22 }
 0x332   : > { %v4052_v2 = vpop.f32.mrf.mxu1 }
 0x333   : > { %v3427_v55 = vadd.f32 %v4051_v14, %v3266_v58  ;;  %v3303_v58 = vadd.f32 %v3966_v5, %v6303_v26 }
 0x334   : > { %v4053_v3 = vpop.f32.mrf.mxu1 }
 0x335   : > { %3491 = vst [vmem:[%s6314_s28 + $0xa8] sm:$0xff] %v3427_v55  ;;  %v4054_v6 = vadd.f32 %v4053_v3, %v4052_v2  ;;  %v3306_v3 = vadd.f32 %v3969_v63, %v6303_v26 }
 0x336   : > { %v4055_v53 = vpop.f32.mrf.mxu1 }
 0x337   : > { %v3432_v48 = vadd.f32 %v4054_v6, %v3271_v62 }
 0x338   : > { %v4056_v52 = vpop.f32.mrf.mxu1 }
 0x339   : > { %3492 = vst [vmem:[%s6314_s28 + $0xb0] sm:$0xff] %v3432_v48  ;;  %v4057_v8 = vadd.f32 %v4056_v52, %v4055_v53 }
 0x33a   : > { %v4058_v31 = vpop.f32.mrf.mxu1 }
 0x33b   : > { %v3435_v36 = vadd.f32 %v4057_v8, %v3274_v24 }
 0x33c   : > { %v4059_v32 = vpop.f32.mrf.mxu1 }
 0x33d   : > { %3493 = vst [vmem:[%s6314_s28 + $0xb8] sm:$0xff] %v3435_v36  ;;  %v4060_v47 = vadd.f32 %v4059_v32, %v4058_v31 }
 0x33e   : > { %v4061_v51 = vpop.f32.mrf.mxu1 }
 0x33f   : > { %v3440_v44 = vadd.f32 %v4060_v47, %v3279_v34 }
 0x340   : > { %v4062_v38 = vpop.f32.mrf.mxu1 }
 0x341   : > { %3494 = vst [vmem:[%s6314_s28 + $0xc0] sm:$0xff] %v3440_v44  ;;  %v4063_v59 = vadd.f32 %v4062_v38, %v4061_v51 }
 0x342   : > { %v4064_v1 = vpop.f32.mrf.mxu1 }
 0x343   : > { %v3443_v25 = vadd.f32 %v4063_v59, %v3282_v19 }
 0x344   : > { %v4065_v42 = vpop.f32.mrf.mxu1 }
 0x345   : > { %3495 = vst [vmem:[%s6314_s28 + $0xc8] sm:$0xff] %v3443_v25  ;;  %v4066_v18 = vadd.f32 %v4065_v42, %v4064_v1 }
 0x346   : > { %v4067_v40 = vpop.f32.mrf.mxu1 }
 0x347   : > { %v3448_v61 = vadd.f32 %v4066_v18, %v3287_v23 }
 0x348   : > { %v4068_v41 = vpop.f32.mrf.mxu1 }
 0x349   : > { %3496 = vst [vmem:[%s6314_s28 + $0xd0] sm:$0xff] %v3448_v61  ;;  %v4069_v21 = vadd.f32 %v4068_v41, %v4067_v40 }
 0x34a   : > { %v4070_v9 = vpop.f32.mrf.mxu1 }
 0x34b   : > { %v3451_v28 = vadd.f32 %v4069_v21, %v3290_v54 }
 0x34c   : > { %v4071_v45 = vpop.f32.mrf.mxu1 }
 0x34d   : > { %3497 = vst [vmem:[%s6314_s28 + $0xd8] sm:$0xff] %v3451_v28  ;;  %v4072_v4 = vadd.f32 %v4071_v45, %v4070_v9 }
 0x34e   : > { %v4073_v35 = vpop.f32.mrf.mxu1 }
 0x34f   : > { %v3456_v43 = vadd.f32 %v4072_v4, %v3295_v12 }
 0x350   : > { %v4074_v29 = vpop.f32.mrf.mxu1 }
 0x351   : > { %3498 = vst [vmem:[%s6314_s28 + $0xe0] sm:$0xff] %v3456_v43  ;;  %v4075_v30 = vadd.f32 %v4074_v29, %v4073_v35 }
 0x352   : > { %v4076_v22 = vpop.f32.mrf.mxu1 }
 0x353   : > { %v3459_v39 = vadd.f32 %v4075_v30, %v3298_v27 }
 0x354   : > { %v4077_v11 = vpop.f32.mrf.mxu1 }
 0x355   : > { %3499 = vst [vmem:[%s6314_s28 + $0xe8] sm:$0xff] %v3459_v39  ;;  %v4078_v14 = vadd.f32 %v4077_v11, %v4076_v22 }
 0x356   : > { %v4079_v56 = vpop.f32.mrf.mxu1 }
 0x357   : > { %v3464_v2 = vadd.f32 %v4078_v14, %v3303_v58 }
 0x358   : > { %v4080_v55 = vpop.f32.mrf.mxu1 }
 0x359   : > { %3500 = vst [vmem:[%s6314_s28 + $0xf0] sm:$0xff] %v3464_v2  ;;  %v4081_v62 = vadd.f32 %v4080_v55, %v4079_v56 }
 0x35b   : > { %v3467_v60 = vadd.f32 %v4081_v62, %v3306_v3 }
 0x35d   : > { %3501 = vst [vmem:[%s6314_s28 + $0xf8] sm:$0xff] %v3467_v60 }
 0x35e PF: > { %s15_s18 = sadd.s32 1, %s4491_s18  }
 0x35f   : > { %p12_p4 = scmp.ge.s32.totalorder %s15_s18, 4  }
 0x361   :  { %14 = sbr.rel (!%p12_p4) target bundleno = 1 (0x1), region = 70 }

</bundles_post_ra>
